<compile_context>
chip_gen: v7x
topology: tpu7x:2x2x1
jax: 0.10.0
libtpu: 0.0.40
codegen_flags: <defaults>
</compile_context>

<pallas_src>
import functools

import jax
import jax.numpy as jnp
import numpy as np
from jax.experimental import pallas as pl
from jax.experimental.pallas import tpu as pltpu

LANE = 128
N_CLASSES = 10
C1_OUT, C2_OUT, FC1_OUT = 10, 20, 50
KSIZE = 5
IMG = 28
K1_PAD = 32           # image row width 28 -> 32 lanes (zero pad)
C1_PAD = 16           # conv1 channels 10 -> 16
C2_PAD = 32           # conv2 channels 20 -> 32 (4 pooled cols * 32 = 128 lanes)
F1_PAD = 128          # fc1 features 50 -> 128


# ------------------------------- Pallas kernel -------------------------------

def _fused_kernel(x_ref, w1e_ref, w1o_ref, b1_ref, w2e_ref, w2o_ref, b2_ref,
                  wf1_ref, bf1_ref, wf2_ref, bf2_ref, o_ref, *, n_classes):
    """Whole TutorialCNN forward for one batch tile.

    x_ref : [28, TB, 32]   input rows: major=y, sublanes=batch, lanes=x (padded)
    w1e/o : [5, 32, 192]   conv1 weights for even/odd output columns, per dy
    w2e/o : [5, 192, 128]  conv2 weights for even/odd output columns, per dy
    wf1   : [4, 128, 128]  fc1 weights per pooled row (lanes packed (xq, co))
    wf2   : [128, 128]     fc2 weights (K and class dims zero padded)
    o_ref : [TB, 128]      log_softmax(logits); valid first n_classes lanes
    """
    f32 = jnp.float32
    x = x_ref[...]
    tb, k1 = x.shape[1], x.shape[2]
    n1 = w1e_ref.shape[-1]                 # 12 * C1_PAD
    n2 = w2e_ref.shape[-1]                 # 4 * C2_PAD = 128
    h1 = x.shape[0] - KSIZE + 1            # 24 conv1 rows
    hp1 = h1 // 2                          # 12 pooled rows
    h2 = hp1 - KSIZE + 1                   # 8 conv2 rows
    hp2 = h2 // 2                          # 4 pooled rows

    # conv1: 5 y-shifted matmuls; even/odd output-column split -> x-pool is an
    # elementwise max; y-pool is a reshape+max over row pairs; then bias + relu.
    acc_e = jnp.zeros((h1 * tb, n1), f32)
    acc_o = jnp.zeros((h1 * tb, n1), f32)
    for dy in range(KSIZE):
        lhs = x[dy:dy + h1].reshape(h1 * tb, k1)
        acc_e = acc_e + jnp.dot(lhs, w1e_ref[dy], preferred_element_type=f32)
        acc_o = acc_o + jnp.dot(lhs, w1o_ref[dy], preferred_element_type=f32)
    m = jnp.maximum(acc_e, acc_o).reshape(hp1, 2, tb, n1).max(axis=1)
    a1 = jnp.maximum(m + b1_ref[...], 0.0).astype(w2e_ref.dtype)   # [12, TB, n1]

    # conv2 (Dropout2d is identity in eval mode) + 2x2 max-pool + relu.
    acc_e = jnp.zeros((h2 * tb, n2), f32)
    acc_o = jnp.zeros((h2 * tb, n2), f32)
    for dy in range(KSIZE):
        lhs = a1[dy:dy + h2].reshape(h2 * tb, n1)
        acc_e = acc_e + jnp.dot(lhs, w2e_ref[dy], preferred_element_type=f32)
        acc_o = acc_o + jnp.dot(lhs, w2o_ref[dy], preferred_element_type=f32)
    m = jnp.maximum(acc_e, acc_o).reshape(hp2, 2, tb, n2).max(axis=1)
    a2 = jnp.maximum(m + b2_ref[...], 0.0).astype(wf1_ref.dtype)   # [4, TB, 128]

    # fc1 + relu: flatten is implicit; 4 dots with 128-lane packed activations.
    hid = jnp.zeros((tb, wf1_ref.shape[-1]), f32)
    for yq in range(hp2):
        hid = hid + jnp.dot(a2[yq], wf1_ref[yq], preferred_element_type=f32)
    hid = jnp.maximum(hid + bf1_ref[...], 0.0).astype(wf2_ref.dtype)

    # fc2 + masked log_softmax over the first n_classes lanes.
    logits = jnp.dot(hid, wf2_ref[...], preferred_element_type=f32) + bf2_ref[...]
    col = jax.lax.broadcasted_iota(jnp.int32, logits.shape, 1)
    valid = col < n_classes
    zm = jnp.where(valid, logits, jnp.float32(-1e30))
    mx = jnp.max(zm, axis=-1, keepdims=True)
    ex = jnp.where(valid, jnp.exp(logits - mx), 0.0)
    lse = jnp.log(jnp.sum(ex, axis=-1, keepdims=True))
    o_ref[...] = jnp.where(valid, logits - mx - lse, 0.0)


# ------------------------------ Pallas wrapper -------------------------------

def _fused_forward_call(xr, prep, *, tb):
    """xr: [28, B_pad, 32] -> [B_pad, 128] log-probs (valid first 10 lanes)."""
    rows, b_pad, k1 = xr.shape
    n1 = prep["w1e"].shape[-1]
    n2 = prep["w2e"].shape[-1]
    f1p = prep["wf1"].shape[-1]
    h1 = rows - KSIZE + 1
    h2 = h1 // 2 - KSIZE + 1

    def wspec(a):
        return pl.BlockSpec(a.shape, lambda i, _n=a.ndim: (0,) * _n)

    weights = [prep[k] for k in ("w1e", "w1o", "b1", "w2e", "w2o", "b2",
                                 "wf1", "bf1", "wf2", "bf2")]
    wbytes = sum(int(w.size) * w.dtype.itemsize for w in weights)
    flops = b_pad * 2 * (KSIZE * 2 * h1 * k1 * n1 + KSIZE * 2 * h2 * n1 * n2
                         + (h2 // 2) * n2 * f1p + f1p * LANE)
    bytes_accessed = int(xr.size) * xr.dtype.itemsize + wbytes + b_pad * LANE * 4

    return pl.pallas_call(
        functools.partial(_fused_kernel, n_classes=N_CLASSES),
        out_shape=jax.ShapeDtypeStruct((b_pad, LANE), jnp.float32),
        grid=(b_pad // tb,),
        in_specs=[pl.BlockSpec((rows, tb, k1), lambda i: (0, i, 0))]
                 + [wspec(w) for w in weights],
        out_specs=pl.BlockSpec((tb, LANE), lambda i: (i, 0)),
        compiler_params=pltpu.CompilerParams(
            dimension_semantics=("parallel",),
            vmem_limit_bytes=32 * 1024 * 1024),
        cost_estimate=pl.CostEstimate(flops=int(flops),
                                      transcendentals=int(b_pad * LANE),
                                      bytes_accessed=int(bytes_accessed)),
    )(xr, *weights)


def tutorial_cnn_forward(prep, x, *, tb=None):
    """x: [B, 1, 28, 28] NCHW -> [B, 10] log-probabilities (eval-mode forward)."""
    B = x.shape[0]
    dt = prep["w1e"].dtype
    if tb is None:
        tb = min(64, -(-B // 8) * 8)               # multiple of 8, VMEM-bounded
    b_pad = -(-B // tb) * tb
    xr = jnp.transpose(x[:, 0, :, :], (1, 0, 2))   # [28, B, 28]: batch -> sublanes
    xr = jnp.pad(xr, ((0, 0), (0, b_pad - B), (0, K1_PAD - IMG))).astype(dt)
    out = _fused_forward_call(xr, prep, tb=tb)     # [B_pad, 128]
    return out[:B, :N_CLASSES]


# ------------------------- one-time weight repacking --------------------------

def _pool_shift_matrix(in_len, out_len, k, parity):
    """E[x, o, d] = 1 iff x == 2*o + parity + d (conv column selection)."""
    e = np.zeros((in_len, out_len, k), np.float32)
    for o in range(out_len):
        for d in range(k):
            e[2 * o + parity + d, o, d] = 1.0
    return e


def prepare_params(params, dtype=jnp.bfloat16):
    """Repack PyTorch-layout weights into the kernel's padded layouts (numpy, exact)."""
    n1, n2 = 12 * C1_PAD, 4 * C2_PAD
    w1 = np.asarray(params["conv1_w"], np.float32)        # [10, 1, 5, 5]
    w2 = np.asarray(params["conv2_w"], np.float32)        # [20, 10, 5, 5]
    fc1w = np.asarray(params["fc1_w"], np.float32)        # [50, 320]
    fc2w = np.asarray(params["fc2_w"], np.float32)        # [10, 50]

    def conv1_mat(par):
        e = _pool_shift_matrix(IMG, 12, KSIZE, par)                    # [28,12,5]
        t = np.einsum("xpd,cyd->yxpc", e, w1[:, 0])                    # [5,28,12,10]
        t = np.pad(t, ((0, 0), (0, K1_PAD - IMG), (0, 0), (0, C1_PAD - C1_OUT)))
        return t.reshape(KSIZE, K1_PAD, n1)

    def conv2_mat(par):
        e = _pool_shift_matrix(12, 4, KSIZE, par)                      # [12,4,5]
        t = np.einsum("xqd,oiyd->yxiqo", e, w2)                        # [5,12,10,4,20]
        t = np.pad(t, ((0, 0), (0, 0), (0, C1_PAD - C1_OUT), (0, 0),
                       (0, C2_PAD - C2_OUT)))
        return t.reshape(KSIZE, n1, n2)

    # fc1 consumes x.view(-1, 320) with (channel, y, x) flatten order; split per
    # pooled row yq and pack lanes as (xq, channel) to match the a2 layout.
    wf1 = fc1w.reshape(FC1_OUT, C2_OUT, 4, 4).transpose(2, 3, 1, 0)    # [yq,xq,co,f]
    wf1 = np.pad(wf1, ((0, 0), (0, 0), (0, C2_PAD - C2_OUT),
                       (0, F1_PAD - FC1_OUT))).reshape(4, n2, F1_PAD)
    wf2 = np.pad(fc2w.T, ((0, F1_PAD - FC1_OUT), (0, LANE - N_CLASSES)))

    b1 = np.tile(np.pad(np.asarray(params["conv1_b"], np.float32),
                        (0, C1_PAD - C1_OUT)), 12).reshape(1, n1)
    b2 = np.tile(np.pad(np.asarray(params["conv2_b"], np.float32),
                        (0, C2_PAD - C2_OUT)), 4).reshape(1, n2)
    bf1 = np.pad(np.asarray(params["fc1_b"], np.float32),
                 (0, F1_PAD - FC1_OUT)).reshape(1, F1_PAD)
    bf2 = np.pad(np.asarray(params["fc2_b"], np.float32),
                 (0, LANE - N_CLASSES)).reshape(1, LANE)

    prep = {"w1e": conv1_mat(0), "w1o": conv1_mat(1),
            "w2e": conv2_mat(0), "w2o": conv2_mat(1),
            "wf1": wf1, "wf2": wf2,
            "b1": b1, "b2": b2, "bf1": bf1, "bf2": bf2}
    # weights in compute dtype; biases stay f32 (added to f32 accumulators).
    return {k: jnp.asarray(v, dtype if k.startswith("w") else jnp.float32)
            for k, v in prep.items()}


# ----------------------------- init / reference ------------------------------

def init_params(key):
    ks = jax.random.split(key, 8)

    def u(k, shape, fan_in):
        bound = 1.0 / jnp.sqrt(jnp.float32(fan_in))
        return jax.random.uniform(k, shape, jnp.float32, -bound, bound)

    return {
        "conv1_w": u(ks[0], (C1_OUT, 1, KSIZE, KSIZE), 1 * KSIZE * KSIZE),
        "conv1_b": u(ks[1], (C1_OUT,), 1 * KSIZE * KSIZE),
        "conv2_w": u(ks[2], (C2_OUT, C1_OUT, KSIZE, KSIZE), C1_OUT * KSIZE * KSIZE),
        "conv2_b": u(ks[3], (C2_OUT,), C1_OUT * KSIZE * KSIZE),
        "fc1_w": u(ks[4], (FC1_OUT, 320), 320),
        "fc1_b": u(ks[5], (FC1_OUT,), 320),
        "fc2_w": u(ks[6], (N_CLASSES, FC1_OUT), FC1_OUT),
        "fc2_b": u(ks[7], (N_CLASSES,), FC1_OUT),
    }


def reference_forward(params, x):
    """Pure-JAX/XLA reference (HIGHEST precision) of the same eval-mode forward."""
    dn = ("NCHW", "OIHW", "NCHW")
    prec = jax.lax.Precision.HIGHEST

    def conv(a, w, b):
        y = jax.lax.conv_general_dilated(a, w, (1, 1), "VALID",
                                         dimension_numbers=dn, precision=prec)
        return y + b[None, :, None, None]

    def pool_relu(a):
        B, C, H, W = a.shape
        a = a.reshape(B, C, H // 2, 2, W // 2, 2).max(axis=(3, 5))
        return jnp.maximum(a, 0.0)

    y = pool_relu(conv(x, params["conv1_w"], params["conv1_b"]))
    y = pool_relu(conv(y, params["conv2_w"], params["conv2_b"]))
    y = y.reshape(y.shape[0], -1)
    y = jnp.maximum(jnp.dot(y, params["fc1_w"].T, precision=prec) + params["fc1_b"], 0.0)
    y = jnp.dot(y, params["fc2_w"].T, precision=prec) + params["fc2_b"]
    return jax.nn.log_softmax(y, axis=-1)


if __name__ == "__main__":
    key = jax.random.PRNGKey(0)
    pkey, xkey = jax.random.split(key)
    params = init_params(pkey)
    x = jax.random.normal(xkey, (2, 1, 28, 28), jnp.float32)

    ref = reference_forward(params, x)
    fwd = jax.jit(tutorial_cnn_forward)

    # f32 path: tight check that the weight repacking / flatten order is correct.
    prep32 = prepare_params(params, jnp.float32)
    out32 = jax.block_until_ready(fwd(prep32, x))
    assert out32.shape == (2, N_CLASSES)
    assert bool(jnp.all(jnp.isfinite(out32)))
    assert bool(jnp.allclose(jnp.sum(jnp.exp(out32), axis=-1), 1.0, atol=1e-4))
    err32 = float(jnp.max(jnp.abs(out32 - ref)))
    assert err32 < 5e-3, f"f32 path error too large: {err32}"

    # bf16 path (default fast path): looser tolerance for reduced-precision matmuls.
    prep16 = prepare_params(params, jnp.bfloat16)
    out16 = jax.block_until_ready(fwd(prep16, x))
    assert bool(jnp.all(jnp.isfinite(out16)))
    assert bool(jnp.allclose(jnp.sum(jnp.exp(out16), axis=-1), 1.0, atol=1e-3))
    err16 = float(jnp.max(jnp.abs(out16 - ref)))
    assert err16 < 5e-2, f"bf16 path error too large: {err16}"

    print("KERNEL_OK")
</pallas_src>

<mosaic_0001>
module attributes {stable_mosaic.version = 11 : i64} {
  func.func @_fused_kernel(%arg0: i32, %arg1: memref<28x8x32xf32, #tpu.memory_space<vmem>>, %arg2: memref<5x32x192xf32, #tpu.memory_space<vmem>>, %arg3: memref<5x32x192xf32, #tpu.memory_space<vmem>>, %arg4: memref<1x192xf32, #tpu.memory_space<vmem>>, %arg5: memref<5x192x128xf32, #tpu.memory_space<vmem>>, %arg6: memref<5x192x128xf32, #tpu.memory_space<vmem>>, %arg7: memref<1x128xf32, #tpu.memory_space<vmem>>, %arg8: memref<4x128x128xf32, #tpu.memory_space<vmem>>, %arg9: memref<1x128xf32, #tpu.memory_space<vmem>>, %arg10: memref<128x128xf32, #tpu.memory_space<vmem>>, %arg11: memref<1x128xf32, #tpu.memory_space<vmem>>, %arg12: memref<8x128xf32, #tpu.memory_space<vmem>>) attributes {dimension_semantics = [#tpu.dimension_semantics<parallel>], iteration_bounds = array<i64: 1>, scalar_prefetch = 0 : i64, scratch_operands = 0 : i64, tpu.core_type = #tpu.core_type<tc>, window_params = [{transform_indices = @transform_0, window_bounds = array<i64: 28, 8, 32>}, {pipeline_mode = #tpu.pipeline_mode<synchronous>, transform_indices = @transform_1, window_bounds = array<i64: 5, 32, 192>}, {pipeline_mode = #tpu.pipeline_mode<synchronous>, transform_indices = @transform_2, window_bounds = array<i64: 5, 32, 192>}, {pipeline_mode = #tpu.pipeline_mode<synchronous>, transform_indices = @transform_3, window_bounds = array<i64: 1, 192>}, {pipeline_mode = #tpu.pipeline_mode<synchronous>, transform_indices = @transform_4, window_bounds = array<i64: 5, 192, 128>}, {pipeline_mode = #tpu.pipeline_mode<synchronous>, transform_indices = @transform_5, window_bounds = array<i64: 5, 192, 128>}, {pipeline_mode = #tpu.pipeline_mode<synchronous>, transform_indices = @transform_6, window_bounds = array<i64: 1, 128>}, {pipeline_mode = #tpu.pipeline_mode<synchronous>, transform_indices = @transform_7, window_bounds = array<i64: 4, 128, 128>}, {pipeline_mode = #tpu.pipeline_mode<synchronous>, transform_indices = @transform_8, window_bounds = array<i64: 1, 128>}, {pipeline_mode = #tpu.pipeline_mode<synchronous>, transform_indices = @transform_9, window_bounds = array<i64: 128, 128>}, {pipeline_mode = #tpu.pipeline_mode<synchronous>, transform_indices = @transform_10, window_bounds = array<i64: 1, 128>}, {transform_indices = @transform_11, window_bounds = array<i64: 8, 128>}]} {
    %c0 = arith.constant 0 : index
    %c0_0 = arith.constant 0 : index
    %c0_1 = arith.constant 0 : index
    %0 = vector.load %arg1[%c0, %c0_0, %c0_1] : memref<28x8x32xf32, #tpu.memory_space<vmem>>, vector<28x8x32xf32>
    %cst = arith.constant 0.000000e+00 : f32
    %1 = vector.broadcast %cst : f32 to vector<192x192xf32>
    %cst_2 = arith.constant 0.000000e+00 : f32
    %2 = vector.broadcast %cst_2 : f32 to vector<192x192xf32>
    %3 = vector.extract_strided_slice %0 {offsets = [0, 0, 0], sizes = [24, 8, 32], strides = [1, 1, 1]} : vector<28x8x32xf32> to vector<24x8x32xf32>
    %4 = vector.shape_cast %3 : vector<24x8x32xf32> to vector<192x32xf32>
    %c0_3 = arith.constant 0 : index
    %c0_4 = arith.constant 0 : index
    %c0_5 = arith.constant 0 : index
    %5 = vector.load %arg2[%c0_3, %c0_4, %c0_5] : memref<5x32x192xf32, #tpu.memory_space<vmem>>, vector<1x32x192xf32>
    %6 = vector.shape_cast %5 : vector<1x32x192xf32> to vector<32x192xf32>
    %cst_6 = arith.constant dense<0.000000e+00> : vector<192x192xf32>
    %7 = tpu.matmul %4, %6, %cst_6 {dimension_numbers = #tpu.dot_dimension_numbers<[1], [0], [0], [1], [0, 0, 1, 1], [], []>} : vector<192x32xf32>, vector<32x192xf32>, vector<192x192xf32> -> vector<192x192xf32>
    %8 = arith.addf %1, %7 : vector<192x192xf32>
    %c0_7 = arith.constant 0 : index
    %c0_8 = arith.constant 0 : index
    %c0_9 = arith.constant 0 : index
    %9 = vector.load %arg3[%c0_7, %c0_8, %c0_9] : memref<5x32x192xf32, #tpu.memory_space<vmem>>, vector<1x32x192xf32>
    %10 = vector.shape_cast %9 : vector<1x32x192xf32> to vector<32x192xf32>
    %cst_10 = arith.constant dense<0.000000e+00> : vector<192x192xf32>
    %11 = tpu.matmul %4, %10, %cst_10 {dimension_numbers = #tpu.dot_dimension_numbers<[1], [0], [0], [1], [0, 0, 1, 1], [], []>} : vector<192x32xf32>, vector<32x192xf32>, vector<192x192xf32> -> vector<192x192xf32>
    %12 = arith.addf %2, %11 : vector<192x192xf32>
    %13 = vector.extract_strided_slice %0 {offsets = [1, 0, 0], sizes = [24, 8, 32], strides = [1, 1, 1]} : vector<28x8x32xf32> to vector<24x8x32xf32>
    %14 = vector.shape_cast %13 : vector<24x8x32xf32> to vector<192x32xf32>
    %c1 = arith.constant 1 : index
    %c0_11 = arith.constant 0 : index
    %c0_12 = arith.constant 0 : index
    %15 = vector.load %arg2[%c1, %c0_11, %c0_12] : memref<5x32x192xf32, #tpu.memory_space<vmem>>, vector<1x32x192xf32>
    %16 = vector.shape_cast %15 : vector<1x32x192xf32> to vector<32x192xf32>
    %cst_13 = arith.constant dense<0.000000e+00> : vector<192x192xf32>
    %17 = tpu.matmul %14, %16, %cst_13 {dimension_numbers = #tpu.dot_dimension_numbers<[1], [0], [0], [1], [0, 0, 1, 1], [], []>} : vector<192x32xf32>, vector<32x192xf32>, vector<192x192xf32> -> vector<192x192xf32>
    %18 = arith.addf %8, %17 : vector<192x192xf32>
    %c1_14 = arith.constant 1 : index
    %c0_15 = arith.constant 0 : index
    %c0_16 = arith.constant 0 : index
    %19 = vector.load %arg3[%c1_14, %c0_15, %c0_16] : memref<5x32x192xf32, #tpu.memory_space<vmem>>, vector<1x32x192xf32>
    %20 = vector.shape_cast %19 : vector<1x32x192xf32> to vector<32x192xf32>
    %cst_17 = arith.constant dense<0.000000e+00> : vector<192x192xf32>
    %21 = tpu.matmul %14, %20, %cst_17 {dimension_numbers = #tpu.dot_dimension_numbers<[1], [0], [0], [1], [0, 0, 1, 1], [], []>} : vector<192x32xf32>, vector<32x192xf32>, vector<192x192xf32> -> vector<192x192xf32>
    %22 = arith.addf %12, %21 : vector<192x192xf32>
    %23 = vector.extract_strided_slice %0 {offsets = [2, 0, 0], sizes = [24, 8, 32], strides = [1, 1, 1]} : vector<28x8x32xf32> to vector<24x8x32xf32>
    %24 = vector.shape_cast %23 : vector<24x8x32xf32> to vector<192x32xf32>
    %c2 = arith.constant 2 : index
    %c0_18 = arith.constant 0 : index
    %c0_19 = arith.constant 0 : index
    %25 = vector.load %arg2[%c2, %c0_18, %c0_19] : memref<5x32x192xf32, #tpu.memory_space<vmem>>, vector<1x32x192xf32>
    %26 = vector.shape_cast %25 : vector<1x32x192xf32> to vector<32x192xf32>
    %cst_20 = arith.constant dense<0.000000e+00> : vector<192x192xf32>
    %27 = tpu.matmul %24, %26, %cst_20 {dimension_numbers = #tpu.dot_dimension_numbers<[1], [0], [0], [1], [0, 0, 1, 1], [], []>} : vector<192x32xf32>, vector<32x192xf32>, vector<192x192xf32> -> vector<192x192xf32>
    %28 = arith.addf %18, %27 : vector<192x192xf32>
    %c2_21 = arith.constant 2 : index
    %c0_22 = arith.constant 0 : index
    %c0_23 = arith.constant 0 : index
    %29 = vector.load %arg3[%c2_21, %c0_22, %c0_23] : memref<5x32x192xf32, #tpu.memory_space<vmem>>, vector<1x32x192xf32>
    %30 = vector.shape_cast %29 : vector<1x32x192xf32> to vector<32x192xf32>
    %cst_24 = arith.constant dense<0.000000e+00> : vector<192x192xf32>
    %31 = tpu.matmul %24, %30, %cst_24 {dimension_numbers = #tpu.dot_dimension_numbers<[1], [0], [0], [1], [0, 0, 1, 1], [], []>} : vector<192x32xf32>, vector<32x192xf32>, vector<192x192xf32> -> vector<192x192xf32>
    %32 = arith.addf %22, %31 : vector<192x192xf32>
    %33 = vector.extract_strided_slice %0 {offsets = [3, 0, 0], sizes = [24, 8, 32], strides = [1, 1, 1]} : vector<28x8x32xf32> to vector<24x8x32xf32>
    %34 = vector.shape_cast %33 : vector<24x8x32xf32> to vector<192x32xf32>
    %c3 = arith.constant 3 : index
    %c0_25 = arith.constant 0 : index
    %c0_26 = arith.constant 0 : index
    %35 = vector.load %arg2[%c3, %c0_25, %c0_26] : memref<5x32x192xf32, #tpu.memory_space<vmem>>, vector<1x32x192xf32>
    %36 = vector.shape_cast %35 : vector<1x32x192xf32> to vector<32x192xf32>
    %cst_27 = arith.constant dense<0.000000e+00> : vector<192x192xf32>
    %37 = tpu.matmul %34, %36, %cst_27 {dimension_numbers = #tpu.dot_dimension_numbers<[1], [0], [0], [1], [0, 0, 1, 1], [], []>} : vector<192x32xf32>, vector<32x192xf32>, vector<192x192xf32> -> vector<192x192xf32>
    %38 = arith.addf %28, %37 : vector<192x192xf32>
    %c3_28 = arith.constant 3 : index
    %c0_29 = arith.constant 0 : index
    %c0_30 = arith.constant 0 : index
    %39 = vector.load %arg3[%c3_28, %c0_29, %c0_30] : memref<5x32x192xf32, #tpu.memory_space<vmem>>, vector<1x32x192xf32>
    %40 = vector.shape_cast %39 : vector<1x32x192xf32> to vector<32x192xf32>
    %cst_31 = arith.constant dense<0.000000e+00> : vector<192x192xf32>
    %41 = tpu.matmul %34, %40, %cst_31 {dimension_numbers = #tpu.dot_dimension_numbers<[1], [0], [0], [1], [0, 0, 1, 1], [], []>} : vector<192x32xf32>, vector<32x192xf32>, vector<192x192xf32> -> vector<192x192xf32>
    %42 = arith.addf %32, %41 : vector<192x192xf32>
    %43 = vector.extract_strided_slice %0 {offsets = [4, 0, 0], sizes = [24, 8, 32], strides = [1, 1, 1]} : vector<28x8x32xf32> to vector<24x8x32xf32>
    %44 = vector.shape_cast %43 : vector<24x8x32xf32> to vector<192x32xf32>
    %c4 = arith.constant 4 : index
    %c0_32 = arith.constant 0 : index
    %c0_33 = arith.constant 0 : index
    %45 = vector.load %arg2[%c4, %c0_32, %c0_33] : memref<5x32x192xf32, #tpu.memory_space<vmem>>, vector<1x32x192xf32>
    %46 = vector.shape_cast %45 : vector<1x32x192xf32> to vector<32x192xf32>
    %cst_34 = arith.constant dense<0.000000e+00> : vector<192x192xf32>
    %47 = tpu.matmul %44, %46, %cst_34 {dimension_numbers = #tpu.dot_dimension_numbers<[1], [0], [0], [1], [0, 0, 1, 1], [], []>} : vector<192x32xf32>, vector<32x192xf32>, vector<192x192xf32> -> vector<192x192xf32>
    %48 = arith.addf %38, %47 : vector<192x192xf32>
    %c4_35 = arith.constant 4 : index
    %c0_36 = arith.constant 0 : index
    %c0_37 = arith.constant 0 : index
    %49 = vector.load %arg3[%c4_35, %c0_36, %c0_37] : memref<5x32x192xf32, #tpu.memory_space<vmem>>, vector<1x32x192xf32>
    %50 = vector.shape_cast %49 : vector<1x32x192xf32> to vector<32x192xf32>
    %cst_38 = arith.constant dense<0.000000e+00> : vector<192x192xf32>
    %51 = tpu.matmul %44, %50, %cst_38 {dimension_numbers = #tpu.dot_dimension_numbers<[1], [0], [0], [1], [0, 0, 1, 1], [], []>} : vector<192x32xf32>, vector<32x192xf32>, vector<192x192xf32> -> vector<192x192xf32>
    %52 = arith.addf %42, %51 : vector<192x192xf32>
    %53 = arith.maximumf %48, %52 : vector<192x192xf32>
    %54 = vector.shape_cast %53 : vector<192x192xf32> to vector<12x2x8x192xf32>
    %cst_39 = arith.constant dense<0xFF800000> : vector<12x8x192xf32>
    %55 = vector.multi_reduction <maximumf>, %54, %cst_39 [1] : vector<12x2x8x192xf32> to vector<12x8x192xf32>
    %c0_40 = arith.constant 0 : index
    %c0_41 = arith.constant 0 : index
    %56 = vector.load %arg4[%c0_40, %c0_41] : memref<1x192xf32, #tpu.memory_space<vmem>>, vector<1x192xf32>
    %57 = vector.shape_cast %56 : vector<1x192xf32> to vector<1x1x192xf32>
    %58 = vector.broadcast %57 : vector<1x1x192xf32> to vector<12x8x192xf32>
    %59 = arith.addf %55, %58 : vector<12x8x192xf32>
    %cst_42 = arith.constant 0.000000e+00 : f32
    %60 = vector.broadcast %cst_42 : f32 to vector<12x8x192xf32>
    %61 = arith.maximumf %59, %60 : vector<12x8x192xf32>
    %cst_43 = arith.constant 0.000000e+00 : f32
    %62 = vector.broadcast %cst_43 : f32 to vector<64x128xf32>
    %cst_44 = arith.constant 0.000000e+00 : f32
    %63 = vector.broadcast %cst_44 : f32 to vector<64x128xf32>
    %64 = vector.extract_strided_slice %61 {offsets = [0, 0, 0], sizes = [8, 8, 192], strides = [1, 1, 1]} : vector<12x8x192xf32> to vector<8x8x192xf32>
    %65 = vector.shape_cast %64 : vector<8x8x192xf32> to vector<64x192xf32>
    %c0_45 = arith.constant 0 : index
    %c0_46 = arith.constant 0 : index
    %c0_47 = arith.constant 0 : index
    %66 = vector.load %arg5[%c0_45, %c0_46, %c0_47] : memref<5x192x128xf32, #tpu.memory_space<vmem>>, vector<1x192x128xf32>
    %67 = vector.shape_cast %66 : vector<1x192x128xf32> to vector<192x128xf32>
    %cst_48 = arith.constant dense<0.000000e+00> : vector<64x128xf32>
    %68 = tpu.matmul %65, %67, %cst_48 {dimension_numbers = #tpu.dot_dimension_numbers<[1], [0], [0], [1], [0, 0, 1, 1], [], []>} : vector<64x192xf32>, vector<192x128xf32>, vector<64x128xf32> -> vector<64x128xf32>
    %69 = arith.addf %62, %68 : vector<64x128xf32>
    %c0_49 = arith.constant 0 : index
    %c0_50 = arith.constant 0 : index
    %c0_51 = arith.constant 0 : index
    %70 = vector.load %arg6[%c0_49, %c0_50, %c0_51] : memref<5x192x128xf32, #tpu.memory_space<vmem>>, vector<1x192x128xf32>
    %71 = vector.shape_cast %70 : vector<1x192x128xf32> to vector<192x128xf32>
    %cst_52 = arith.constant dense<0.000000e+00> : vector<64x128xf32>
    %72 = tpu.matmul %65, %71, %cst_52 {dimension_numbers = #tpu.dot_dimension_numbers<[1], [0], [0], [1], [0, 0, 1, 1], [], []>} : vector<64x192xf32>, vector<192x128xf32>, vector<64x128xf32> -> vector<64x128xf32>
    %73 = arith.addf %63, %72 : vector<64x128xf32>
    %74 = vector.extract_strided_slice %61 {offsets = [1, 0, 0], sizes = [8, 8, 192], strides = [1, 1, 1]} : vector<12x8x192xf32> to vector<8x8x192xf32>
    %75 = vector.shape_cast %74 : vector<8x8x192xf32> to vector<64x192xf32>
    %c1_53 = arith.constant 1 : index
    %c0_54 = arith.constant 0 : index
    %c0_55 = arith.constant 0 : index
    %76 = vector.load %arg5[%c1_53, %c0_54, %c0_55] : memref<5x192x128xf32, #tpu.memory_space<vmem>>, vector<1x192x128xf32>
    %77 = vector.shape_cast %76 : vector<1x192x128xf32> to vector<192x128xf32>
    %cst_56 = arith.constant dense<0.000000e+00> : vector<64x128xf32>
    %78 = tpu.matmul %75, %77, %cst_56 {dimension_numbers = #tpu.dot_dimension_numbers<[1], [0], [0], [1], [0, 0, 1, 1], [], []>} : vector<64x192xf32>, vector<192x128xf32>, vector<64x128xf32> -> vector<64x128xf32>
    %79 = arith.addf %69, %78 : vector<64x128xf32>
    %c1_57 = arith.constant 1 : index
    %c0_58 = arith.constant 0 : index
    %c0_59 = arith.constant 0 : index
    %80 = vector.load %arg6[%c1_57, %c0_58, %c0_59] : memref<5x192x128xf32, #tpu.memory_space<vmem>>, vector<1x192x128xf32>
    %81 = vector.shape_cast %80 : vector<1x192x128xf32> to vector<192x128xf32>
    %cst_60 = arith.constant dense<0.000000e+00> : vector<64x128xf32>
    %82 = tpu.matmul %75, %81, %cst_60 {dimension_numbers = #tpu.dot_dimension_numbers<[1], [0], [0], [1], [0, 0, 1, 1], [], []>} : vector<64x192xf32>, vector<192x128xf32>, vector<64x128xf32> -> vector<64x128xf32>
    %83 = arith.addf %73, %82 : vector<64x128xf32>
    %84 = vector.extract_strided_slice %61 {offsets = [2, 0, 0], sizes = [8, 8, 192], strides = [1, 1, 1]} : vector<12x8x192xf32> to vector<8x8x192xf32>
    %85 = vector.shape_cast %84 : vector<8x8x192xf32> to vector<64x192xf32>
    %c2_61 = arith.constant 2 : index
    %c0_62 = arith.constant 0 : index
    %c0_63 = arith.constant 0 : index
    %86 = vector.load %arg5[%c2_61, %c0_62, %c0_63] : memref<5x192x128xf32, #tpu.memory_space<vmem>>, vector<1x192x128xf32>
    %87 = vector.shape_cast %86 : vector<1x192x128xf32> to vector<192x128xf32>
    %cst_64 = arith.constant dense<0.000000e+00> : vector<64x128xf32>
    %88 = tpu.matmul %85, %87, %cst_64 {dimension_numbers = #tpu.dot_dimension_numbers<[1], [0], [0], [1], [0, 0, 1, 1], [], []>} : vector<64x192xf32>, vector<192x128xf32>, vector<64x128xf32> -> vector<64x128xf32>
    %89 = arith.addf %79, %88 : vector<64x128xf32>
    %c2_65 = arith.constant 2 : index
    %c0_66 = arith.constant 0 : index
    %c0_67 = arith.constant 0 : index
    %90 = vector.load %arg6[%c2_65, %c0_66, %c0_67] : memref<5x192x128xf32, #tpu.memory_space<vmem>>, vector<1x192x128xf32>
    %91 = vector.shape_cast %90 : vector<1x192x128xf32> to vector<192x128xf32>
    %cst_68 = arith.constant dense<0.000000e+00> : vector<64x128xf32>
    %92 = tpu.matmul %85, %91, %cst_68 {dimension_numbers = #tpu.dot_dimension_numbers<[1], [0], [0], [1], [0, 0, 1, 1], [], []>} : vector<64x192xf32>, vector<192x128xf32>, vector<64x128xf32> -> vector<64x128xf32>
    %93 = arith.addf %83, %92 : vector<64x128xf32>
    %94 = vector.extract_strided_slice %61 {offsets = [3, 0, 0], sizes = [8, 8, 192], strides = [1, 1, 1]} : vector<12x8x192xf32> to vector<8x8x192xf32>
    %95 = vector.shape_cast %94 : vector<8x8x192xf32> to vector<64x192xf32>
    %c3_69 = arith.constant 3 : index
    %c0_70 = arith.constant 0 : index
    %c0_71 = arith.constant 0 : index
    %96 = vector.load %arg5[%c3_69, %c0_70, %c0_71] : memref<5x192x128xf32, #tpu.memory_space<vmem>>, vector<1x192x128xf32>
    %97 = vector.shape_cast %96 : vector<1x192x128xf32> to vector<192x128xf32>
    %cst_72 = arith.constant dense<0.000000e+00> : vector<64x128xf32>
    %98 = tpu.matmul %95, %97, %cst_72 {dimension_numbers = #tpu.dot_dimension_numbers<[1], [0], [0], [1], [0, 0, 1, 1], [], []>} : vector<64x192xf32>, vector<192x128xf32>, vector<64x128xf32> -> vector<64x128xf32>
    %99 = arith.addf %89, %98 : vector<64x128xf32>
    %c3_73 = arith.constant 3 : index
    %c0_74 = arith.constant 0 : index
    %c0_75 = arith.constant 0 : index
    %100 = vector.load %arg6[%c3_73, %c0_74, %c0_75] : memref<5x192x128xf32, #tpu.memory_space<vmem>>, vector<1x192x128xf32>
    %101 = vector.shape_cast %100 : vector<1x192x128xf32> to vector<192x128xf32>
    %cst_76 = arith.constant dense<0.000000e+00> : vector<64x128xf32>
    %102 = tpu.matmul %95, %101, %cst_76 {dimension_numbers = #tpu.dot_dimension_numbers<[1], [0], [0], [1], [0, 0, 1, 1], [], []>} : vector<64x192xf32>, vector<192x128xf32>, vector<64x128xf32> -> vector<64x128xf32>
    %103 = arith.addf %93, %102 : vector<64x128xf32>
    %104 = vector.extract_strided_slice %61 {offsets = [4, 0, 0], sizes = [8, 8, 192], strides = [1, 1, 1]} : vector<12x8x192xf32> to vector<8x8x192xf32>
    %105 = vector.shape_cast %104 : vector<8x8x192xf32> to vector<64x192xf32>
    %c4_77 = arith.constant 4 : index
    %c0_78 = arith.constant 0 : index
    %c0_79 = arith.constant 0 : index
    %106 = vector.load %arg5[%c4_77, %c0_78, %c0_79] : memref<5x192x128xf32, #tpu.memory_space<vmem>>, vector<1x192x128xf32>
    %107 = vector.shape_cast %106 : vector<1x192x128xf32> to vector<192x128xf32>
    %cst_80 = arith.constant dense<0.000000e+00> : vector<64x128xf32>
    %108 = tpu.matmul %105, %107, %cst_80 {dimension_numbers = #tpu.dot_dimension_numbers<[1], [0], [0], [1], [0, 0, 1, 1], [], []>} : vector<64x192xf32>, vector<192x128xf32>, vector<64x128xf32> -> vector<64x128xf32>
    %109 = arith.addf %99, %108 : vector<64x128xf32>
    %c4_81 = arith.constant 4 : index
    %c0_82 = arith.constant 0 : index
    %c0_83 = arith.constant 0 : index
    %110 = vector.load %arg6[%c4_81, %c0_82, %c0_83] : memref<5x192x128xf32, #tpu.memory_space<vmem>>, vector<1x192x128xf32>
    %111 = vector.shape_cast %110 : vector<1x192x128xf32> to vector<192x128xf32>
    %cst_84 = arith.constant dense<0.000000e+00> : vector<64x128xf32>
    %112 = tpu.matmul %105, %111, %cst_84 {dimension_numbers = #tpu.dot_dimension_numbers<[1], [0], [0], [1], [0, 0, 1, 1], [], []>} : vector<64x192xf32>, vector<192x128xf32>, vector<64x128xf32> -> vector<64x128xf32>
    %113 = arith.addf %103, %112 : vector<64x128xf32>
    %114 = arith.maximumf %109, %113 : vector<64x128xf32>
    %115 = vector.shape_cast %114 : vector<64x128xf32> to vector<4x2x8x128xf32>
    %cst_85 = arith.constant dense<0xFF800000> : vector<4x8x128xf32>
    %116 = vector.multi_reduction <maximumf>, %115, %cst_85 [1] : vector<4x2x8x128xf32> to vector<4x8x128xf32>
    %c0_86 = arith.constant 0 : index
    %c0_87 = arith.constant 0 : index
    %117 = vector.load %arg7[%c0_86, %c0_87] : memref<1x128xf32, #tpu.memory_space<vmem>>, vector<1x128xf32>
    %118 = vector.shape_cast %117 : vector<1x128xf32> to vector<1x1x128xf32>
    %119 = vector.broadcast %118 : vector<1x1x128xf32> to vector<4x8x128xf32>
    %120 = arith.addf %116, %119 : vector<4x8x128xf32>
    %cst_88 = arith.constant 0.000000e+00 : f32
    %121 = vector.broadcast %cst_88 : f32 to vector<4x8x128xf32>
    %122 = arith.maximumf %120, %121 : vector<4x8x128xf32>
    %cst_89 = arith.constant 0.000000e+00 : f32
    %123 = vector.broadcast %cst_89 : f32 to vector<8x128xf32>
    %124 = vector.extract_strided_slice %122 {offsets = [0, 0, 0], sizes = [1, 8, 128], strides = [1, 1, 1]} : vector<4x8x128xf32> to vector<1x8x128xf32>
    %125 = vector.shape_cast %124 : vector<1x8x128xf32> to vector<8x128xf32>
    %c0_90 = arith.constant 0 : index
    %c0_91 = arith.constant 0 : index
    %c0_92 = arith.constant 0 : index
    %126 = vector.load %arg8[%c0_90, %c0_91, %c0_92] : memref<4x128x128xf32, #tpu.memory_space<vmem>>, vector<1x128x128xf32>
    %127 = vector.shape_cast %126 : vector<1x128x128xf32> to vector<128x128xf32>
    %cst_93 = arith.constant dense<0.000000e+00> : vector<8x128xf32>
    %128 = tpu.matmul %125, %127, %cst_93 {dimension_numbers = #tpu.dot_dimension_numbers<[1], [0], [0], [1], [0, 0, 1, 1], [], []>} : vector<8x128xf32>, vector<128x128xf32>, vector<8x128xf32> -> vector<8x128xf32>
    %129 = arith.addf %123, %128 : vector<8x128xf32>
    %130 = vector.extract_strided_slice %122 {offsets = [1, 0, 0], sizes = [1, 8, 128], strides = [1, 1, 1]} : vector<4x8x128xf32> to vector<1x8x128xf32>
    %131 = vector.shape_cast %130 : vector<1x8x128xf32> to vector<8x128xf32>
    %c1_94 = arith.constant 1 : index
    %c0_95 = arith.constant 0 : index
    %c0_96 = arith.constant 0 : index
    %132 = vector.load %arg8[%c1_94, %c0_95, %c0_96] : memref<4x128x128xf32, #tpu.memory_space<vmem>>, vector<1x128x128xf32>
    %133 = vector.shape_cast %132 : vector<1x128x128xf32> to vector<128x128xf32>
    %cst_97 = arith.constant dense<0.000000e+00> : vector<8x128xf32>
    %134 = tpu.matmul %131, %133, %cst_97 {dimension_numbers = #tpu.dot_dimension_numbers<[1], [0], [0], [1], [0, 0, 1, 1], [], []>} : vector<8x128xf32>, vector<128x128xf32>, vector<8x128xf32> -> vector<8x128xf32>
    %135 = arith.addf %129, %134 : vector<8x128xf32>
    %136 = vector.extract_strided_slice %122 {offsets = [2, 0, 0], sizes = [1, 8, 128], strides = [1, 1, 1]} : vector<4x8x128xf32> to vector<1x8x128xf32>
    %137 = vector.shape_cast %136 : vector<1x8x128xf32> to vector<8x128xf32>
    %c2_98 = arith.constant 2 : index
    %c0_99 = arith.constant 0 : index
    %c0_100 = arith.constant 0 : index
    %138 = vector.load %arg8[%c2_98, %c0_99, %c0_100] : memref<4x128x128xf32, #tpu.memory_space<vmem>>, vector<1x128x128xf32>
    %139 = vector.shape_cast %138 : vector<1x128x128xf32> to vector<128x128xf32>
    %cst_101 = arith.constant dense<0.000000e+00> : vector<8x128xf32>
    %140 = tpu.matmul %137, %139, %cst_101 {dimension_numbers = #tpu.dot_dimension_numbers<[1], [0], [0], [1], [0, 0, 1, 1], [], []>} : vector<8x128xf32>, vector<128x128xf32>, vector<8x128xf32> -> vector<8x128xf32>
    %141 = arith.addf %135, %140 : vector<8x128xf32>
    %142 = vector.extract_strided_slice %122 {offsets = [3, 0, 0], sizes = [1, 8, 128], strides = [1, 1, 1]} : vector<4x8x128xf32> to vector<1x8x128xf32>
    %143 = vector.shape_cast %142 : vector<1x8x128xf32> to vector<8x128xf32>
    %c3_102 = arith.constant 3 : index
    %c0_103 = arith.constant 0 : index
    %c0_104 = arith.constant 0 : index
    %144 = vector.load %arg8[%c3_102, %c0_103, %c0_104] : memref<4x128x128xf32, #tpu.memory_space<vmem>>, vector<1x128x128xf32>
    %145 = vector.shape_cast %144 : vector<1x128x128xf32> to vector<128x128xf32>
    %cst_105 = arith.constant dense<0.000000e+00> : vector<8x128xf32>
    %146 = tpu.matmul %143, %145, %cst_105 {dimension_numbers = #tpu.dot_dimension_numbers<[1], [0], [0], [1], [0, 0, 1, 1], [], []>} : vector<8x128xf32>, vector<128x128xf32>, vector<8x128xf32> -> vector<8x128xf32>
    %147 = arith.addf %141, %146 : vector<8x128xf32>
    %c0_106 = arith.constant 0 : index
    %c0_107 = arith.constant 0 : index
    %148 = vector.load %arg9[%c0_106, %c0_107] : memref<1x128xf32, #tpu.memory_space<vmem>>, vector<1x128xf32>
    %149 = vector.broadcast %148 : vector<1x128xf32> to vector<8x128xf32>
    %150 = arith.addf %147, %149 : vector<8x128xf32>
    %cst_108 = arith.constant 0.000000e+00 : f32
    %151 = vector.broadcast %cst_108 : f32 to vector<8x128xf32>
    %152 = arith.maximumf %150, %151 : vector<8x128xf32>
    %c0_109 = arith.constant 0 : index
    %c0_110 = arith.constant 0 : index
    %153 = vector.load %arg10[%c0_109, %c0_110] : memref<128x128xf32, #tpu.memory_space<vmem>>, vector<128x128xf32>
    %cst_111 = arith.constant dense<0.000000e+00> : vector<8x128xf32>
    %154 = tpu.matmul %152, %153, %cst_111 {dimension_numbers = #tpu.dot_dimension_numbers<[1], [0], [0], [1], [0, 0, 1, 1], [], []>} : vector<8x128xf32>, vector<128x128xf32>, vector<8x128xf32> -> vector<8x128xf32>
    %c0_112 = arith.constant 0 : index
    %c0_113 = arith.constant 0 : index
    %155 = vector.load %arg11[%c0_112, %c0_113] : memref<1x128xf32, #tpu.memory_space<vmem>>, vector<1x128xf32>
    %156 = vector.broadcast %155 : vector<1x128xf32> to vector<8x128xf32>
    %157 = arith.addf %154, %156 : vector<8x128xf32>
    %158 = tpu.iota {dimensions = array<i32: 1>} : vector<8x128xi32>
    %c10_i32 = arith.constant 10 : i32
    %159 = vector.broadcast %c10_i32 : i32 to vector<8x128xi32>
    %160 = arith.cmpi slt, %158, %159 : vector<8x128xi32>
    %cst_114 = arith.constant -1.000000e+30 : f32
    %161 = vector.broadcast %cst_114 : f32 to vector<8x128xf32>
    %162 = arith.select %160, %157, %161 : vector<8x128xi1>, vector<8x128xf32>
    %cst_115 = arith.constant dense<0xFF800000> : vector<8xf32>
    %163 = vector.multi_reduction <maximumf>, %162, %cst_115 [1] : vector<8x128xf32> to vector<8xf32>
    %164 = vector.shape_cast %163 : vector<8xf32> to vector<8x1xf32>
    %165 = vector.broadcast %164 : vector<8x1xf32> to vector<8x128xf32>
    %166 = arith.subf %157, %165 : vector<8x128xf32>
    %167 = math.exp %166 : vector<8x128xf32>
    %cst_116 = arith.constant 0.000000e+00 : f32
    %168 = vector.broadcast %cst_116 : f32 to vector<8x128xf32>
    %169 = arith.select %160, %167, %168 : vector<8x128xi1>, vector<8x128xf32>
    %cst_117 = arith.constant dense<0.000000e+00> : vector<8xf32>
    %170 = vector.multi_reduction <add>, %169, %cst_117 [1] : vector<8x128xf32> to vector<8xf32>
    %171 = vector.shape_cast %170 : vector<8xf32> to vector<8x1xf32>
    %172 = math.log %171 : vector<8x1xf32>
    %173 = vector.broadcast %164 : vector<8x1xf32> to vector<8x128xf32>
    %174 = arith.subf %157, %173 : vector<8x128xf32>
    %175 = vector.broadcast %172 : vector<8x1xf32> to vector<8x128xf32>
    %176 = arith.subf %174, %175 : vector<8x128xf32>
    %cst_118 = arith.constant 0.000000e+00 : f32
    %177 = vector.broadcast %cst_118 : f32 to vector<8x128xf32>
    %178 = arith.select %160, %176, %177 : vector<8x128xi1>, vector<8x128xf32>
    %c0_119 = arith.constant 0 : index
    %c0_120 = arith.constant 0 : index
    %179 = vector.load %arg12[%c0_119, %c0_120] : memref<8x128xf32, #tpu.memory_space<vmem>>, vector<8x128xf32>
    tpu.vector_store %arg12[%c0_119, %c0_120], %178 {strides = array<i32>} : memref<8x128xf32, #tpu.memory_space<vmem>>, vector<8x128xf32>,
    return
  }
  func.func @transform_0(%arg0: i32) -> (i32, i32, i32) {
    %c0_i32 = arith.constant 0 : i32
    %c0_i32_0 = arith.constant 0 : i32
    %c0_i32_1 = arith.constant 0 : i32
    return %c0_i32, %arg0, %c0_i32_0 : i32, i32, i32
  }
  func.func @transform_1(%arg0: i32) -> (i32, i32, i32) {
    %c0_i32 = arith.constant 0 : i32
    %c0_i32_0 = arith.constant 0 : i32
    %c0_i32_1 = arith.constant 0 : i32
    %c0_i32_2 = arith.constant 0 : i32
    return %c0_i32, %c0_i32_0, %c0_i32_1 : i32, i32, i32
  }
  func.func @transform_2(%arg0: i32) -> (i32, i32, i32) {
    %c0_i32 = arith.constant 0 : i32
    %c0_i32_0 = arith.constant 0 : i32
    %c0_i32_1 = arith.constant 0 : i32
    %c0_i32_2 = arith.constant 0 : i32
    return %c0_i32, %c0_i32_0, %c0_i32_1 : i32, i32, i32
  }
  func.func @transform_3(%arg0: i32) -> (i32, i32) {
    %c0_i32 = arith.constant 0 : i32
    %c0_i32_0 = arith.constant 0 : i32
    %c0_i32_1 = arith.constant 0 : i32
    return %c0_i32, %c0_i32_0 : i32, i32
  }
  func.func @transform_4(%arg0: i32) -> (i32, i32, i32) {
    %c0_i32 = arith.constant 0 : i32
    %c0_i32_0 = arith.constant 0 : i32
    %c0_i32_1 = arith.constant 0 : i32
    %c0_i32_2 = arith.constant 0 : i32
    return %c0_i32, %c0_i32_0, %c0_i32_1 : i32, i32, i32
  }
  func.func @transform_5(%arg0: i32) -> (i32, i32, i32) {
    %c0_i32 = arith.constant 0 : i32
    %c0_i32_0 = arith.constant 0 : i32
    %c0_i32_1 = arith.constant 0 : i32
    %c0_i32_2 = arith.constant 0 : i32
    return %c0_i32, %c0_i32_0, %c0_i32_1 : i32, i32, i32
  }
  func.func @transform_6(%arg0: i32) -> (i32, i32) {
    %c0_i32 = arith.constant 0 : i32
    %c0_i32_0 = arith.constant 0 : i32
    %c0_i32_1 = arith.constant 0 : i32
    return %c0_i32, %c0_i32_0 : i32, i32
  }
  func.func @transform_7(%arg0: i32) -> (i32, i32, i32) {
    %c0_i32 = arith.constant 0 : i32
    %c0_i32_0 = arith.constant 0 : i32
    %c0_i32_1 = arith.constant 0 : i32
    %c0_i32_2 = arith.constant 0 : i32
    return %c0_i32, %c0_i32_0, %c0_i32_1 : i32, i32, i32
  }
  func.func @transform_8(%arg0: i32) -> (i32, i32) {
    %c0_i32 = arith.constant 0 : i32
    %c0_i32_0 = arith.constant 0 : i32
    %c0_i32_1 = arith.constant 0 : i32
    return %c0_i32, %c0_i32_0 : i32, i32
  }
  func.func @transform_9(%arg0: i32) -> (i32, i32) {
    %c0_i32 = arith.constant 0 : i32
    %c0_i32_0 = arith.constant 0 : i32
    %c0_i32_1 = arith.constant 0 : i32
    return %c0_i32, %c0_i32_0 : i32, i32
  }
  func.func @transform_10(%arg0: i32) -> (i32, i32) {
    %c0_i32 = arith.constant 0 : i32
    %c0_i32_0 = arith.constant 0 : i32
    %c0_i32_1 = arith.constant 0 : i32
    return %c0_i32, %c0_i32_0 : i32, i32
  }
  func.func @transform_11(%arg0: i32) -> (i32, i32) {
    %c0_i32 = arith.constant 0 : i32
    %c0_i32_0 = arith.constant 0 : i32
    return %arg0, %c0_i32 : i32, i32
  }
}

</mosaic_0001>

<bundles_post_ra>
// kernel: tutorial_cnn_forward.1
= control target key start
LH: loop header
LB: loop body
LE: loop exit
PB: predicated region body
PF: predicated region fallthrough
CT: control target
= control target key end

     0   :  { %16 = vsyncpa [#allocation3], 0  ;;  %s8459_s0 = inlined_call_operand.vmem [shape: f32[28,8,32], index: 0, kind: input, shape index: {}]   ;;  %s8460_s1 = inlined_call_operand.vmem [shape: f32[5,32,192], index: 1, kind: input, shape index: {}]   ;;  %s8461_s2 = inlined_call_operand.hbm [shape: f32[5,32,192], index: 2, kind: input, shape index: {}]   ;;  %s8462_s3 = inlined_call_operand.vmem [shape: f32[1,192], index: 3, kind: input, shape index: {}]   ;;  %s8463_s4 = inlined_call_operand.hbm [shape: f32[5,192,128], index: 4, kind: input, shape index: {}]   ;;  %s8464_s5 = inlined_call_operand.hbm [shape: f32[5,192,128], index: 5, kind: input, shape index: {}]   ;;  %s8465_s6 = inlined_call_operand.vmem [shape: f32[1,128], index: 6, kind: input, shape index: {}]   ;;  %s8466_s7 = inlined_call_operand.hbm [shape: f32[4,128,128], index: 7, kind: input, shape index: {}]   ;;  %s8467_s8 = inlined_call_operand.vmem [shape: f32[1,128], index: 8, kind: input, shape index: {}]   ;;  %s8468_s9 = inlined_call_operand.hbm [shape: f32[128,128], index: 9, kind: input, shape index: {}]   ;;  %s8469_s10 = inlined_call_operand.vmem [shape: f32[1,128], index: 10, kind: input, shape index: {}]   ;;  %s8470_s11 = inlined_call_operand.vmem [shape: f32[8,128], index: 11, kind: output, shape index: {}]  }
   0x1   :  { %17 = vsyncpa [#allocation5], 0 }
   0x2   :  { %18 = vsyncpa [#allocation8], 0  ;;  %s6570_s17 = smov [#allocation4]   ;;  %s6454_s21 = scalar_lea.hbm %s8463_s4, 15360 }
   0x3   :  { %s42_s18 = sshll.u32 %s6570_s17, 4  ;;  %p6455_p0 = scmp.ne.s32.totalorder %s8463_s4, %s6454_s21  ;;  %s43_s18 = int_to_ptr.vmem [resolvable:$true] %s42_s18 }
   0x4   :  { %p6458_p1 = scmp.lt.u32.totalorder %s6454_s21, %s8463_s4 }
   0x6   :  { %p6460_p2 = pnand %p6458_p1, %p6455_p0 }
   0x8   :  { %6463 = shalt.err (!%p6460_p2)
}
   0x9   :  { %s6464_s26 = scalar_lea.vmem %s43_s18, 15360  ;;  %p6469_p4 = scmp.lt.s32.totalorder %s43_s18, %s43_s18 }
   0xa   :  { %p6465_p3 = scmp.ne.s32.totalorder %s43_s18, %s6464_s26  ;;  %p6470_p5 = scmp.lt.s32.totalorder %s6464_s26, %s6464_s26 }
   0xc   :  { %p6471_p6 = por %p6470_p5, %p6469_p4 }
   0xe   :  { %p6472_p7 = pnand %p6471_p6, %p6465_p3 }
  0x10   :  { %6475 = shalt.err (!%p6472_p7)
}
  0x11   :  { %s6571_s27 = smov 128   ;;  %s6572_s28 = smov 8  }
  0x12   :  { %48 = dma.hbm_to_vmem [thread:$0]  %s8463_s4, 15360, %s43_s18, [#allocation5], %s6571_s27, %s6571_s27, %s6572_s28  }
  0x13   :  { %s6573_s12 = smov [#allocation7]   ;;  %s6574_s14 = smov [#allocation2]  }
  0x14   :  { %s68_s13 = sshll.u32 %s6573_s12, 4  ;;  %s28_s15 = sshll.u32 %s6574_s14, 4  ;;  %s69_s13 = int_to_ptr.vmem [resolvable:$true] %s68_s13  ;;  %s29_s15 = int_to_ptr.vmem [resolvable:$true] %s28_s15 }
  0x15   :  { %s6476_s19 = scalar_lea.hbm %s8466_s7, 8192 }
  0x16   :  { %p6477_p8 = scmp.ne.s32.totalorder %s8466_s7, %s6476_s19  ;;  %p6480_p9 = scmp.lt.u32.totalorder %s6476_s19, %s8466_s7 }
  0x18   :  { %p6482_p10 = pnand %p6480_p9, %p6477_p8 }
  0x1a   :  { %6485 = shalt.err (!%p6482_p10)
}
  0x1b   :  { %s6486_s4 = scalar_lea.vmem %s69_s13, 8192  ;;  %p6491_p12 = scmp.lt.s32.totalorder %s69_s13, %s69_s13 }
  0x1c   :  { %p6487_p11 = scmp.ne.s32.totalorder %s69_s13, %s6486_s4  ;;  %p6492_p13 = scmp.lt.s32.totalorder %s6486_s4, %s6486_s4 }
  0x1e   :  { %p6493_p0 = por %p6492_p13, %p6491_p12 }
  0x20   :  { %p6494_p1 = pnand %p6493_p0, %p6487_p11 }
  0x22   :  { %6497 = shalt.err (!%p6494_p1)
}
  0x23   :  { %74 = dma.hbm_to_vmem [thread:$0]  %s8466_s7, 8192, %s69_s13, [#allocation8], %s6571_s27, %s6571_s27, %s6572_s28  }
  0x24   :  { %s6498_s29 = scalar_lea.hbm %s8461_s2, 5120 }
  0x25   :  { %p6499_p2 = scmp.ne.s32.totalorder %s8461_s2, %s6498_s29  ;;  %p6502_p3 = scmp.lt.u32.totalorder %s6498_s29, %s8461_s2 }
  0x27   :  { %p6504_p4 = pnand %p6502_p3, %p6499_p2 }
  0x29   :  { %6507 = shalt.err (!%p6504_p4)
}
  0x2a   :  { %s6508_s17 = scalar_lea.vmem %s29_s15, 5120  ;;  %p6513_p6 = scmp.lt.s32.totalorder %s29_s15, %s29_s15 }
  0x2b   :  { %p6509_p5 = scmp.ne.s32.totalorder %s29_s15, %s6508_s17  ;;  %p6514_p7 = scmp.lt.s32.totalorder %s6508_s17, %s6508_s17 }
  0x2d   :  { %p6515_p8 = por %p6514_p7, %p6513_p6 }
  0x2f   :  { %p6516_p9 = pnand %p6515_p8, %p6509_p5 }
  0x31   :  { %6519 = shalt.err (!%p6516_p9)
}
  0x32   :  { %s6575_s7 = smov 256   ;;  %s6576_s13 = smov 16  }
  0x33   :  { %34 = dma.hbm_to_vmem [thread:$0]  %s8461_s2, 5120, %s29_s15, [#allocation3], %s6575_s7, %s6575_s7, %s6576_s13  }
  0x34   :  { %s6577_s21 = smov [#allocation6]   ;;  %s6578_s23 = smov [#allocation9]  }
  0x35   :  { %s54_s22 = sshll.u32 %s6577_s21, 4  ;;  %s82_s4 = sshll.u32 %s6578_s23, 4  ;;  %s55_s22 = int_to_ptr.vmem [resolvable:$true] %s54_s22  ;;  %s83_s4 = int_to_ptr.vmem [resolvable:$true] %s82_s4 }
  0x36   :  { %s6520_s25 = scalar_lea.hbm %s8464_s5, 15360 }
  0x37   :  { %p6521_p10 = scmp.ne.s32.totalorder %s8464_s5, %s6520_s25  ;;  %p6524_p11 = scmp.lt.u32.totalorder %s6520_s25, %s8464_s5 }
  0x39   :  { %p6526_p12 = pnand %p6524_p11, %p6521_p10 }
  0x3b   :  { %6529 = shalt.err (!%p6526_p12)
}
  0x3c   :  { %s6530_s2 = scalar_lea.vmem %s55_s22, 15360  ;;  %p6535_p0 = scmp.lt.s32.totalorder %s55_s22, %s55_s22 }
  0x3d   :  { %p6531_p13 = scmp.ne.s32.totalorder %s55_s22, %s6530_s2  ;;  %p6536_p1 = scmp.lt.s32.totalorder %s6530_s2, %s6530_s2 }
  0x3f   :  { %p6537_p2 = por %p6536_p1, %p6535_p0 }
  0x41   :  { %p6538_p3 = pnand %p6537_p2, %p6531_p13 }
  0x43   :  { %6541 = shalt.err (!%p6538_p3)
}
  0x44   :  { %60 = dma.hbm_to_vmem [thread:$0]  %s8464_s5, 15360, %s55_s22, [#allocation5], %s6571_s27, %s6571_s27, %s6572_s28  }
  0x45   :  { %s6542_s7 = scalar_lea.hbm %s8468_s9, 2048 }
  0x46   :  { %p6543_p4 = scmp.ne.s32.totalorder %s8468_s9, %s6542_s7  ;;  %p6546_p5 = scmp.lt.u32.totalorder %s6542_s7, %s8468_s9 }
  0x48   :  { %p6548_p6 = pnand %p6546_p5, %p6543_p4 }
  0x4a   :  { %6551 = shalt.err (!%p6548_p6)
}
  0x4b   :  { %s6552_s23 = scalar_lea.vmem %s83_s4, 2048  ;;  %p6557_p8 = scmp.lt.s32.totalorder %s83_s4, %s83_s4 }
  0x4c   :  { %p6553_p7 = scmp.ne.s32.totalorder %s83_s4, %s6552_s23  ;;  %p6558_p9 = scmp.lt.s32.totalorder %s6552_s23, %s6552_s23 }
  0x4e   :  { %p6559_p10 = por %p6558_p9, %p6557_p8 }
  0x50   :  { %p6560_p11 = pnand %p6559_p10, %p6553_p7 }
  0x52   :  { %6563 = shalt.err (!%p6560_p11)
}
  0x53   :  { %88 = dma.hbm_to_vmem [thread:$0]  %s8468_s9, 2048, %s83_s4, [#allocation8], %s6571_s27, %s6571_s27, %s6572_s28  }
  0x54   :  { %6564 = dma.done.wait [#allocation3], 5120  }
  0x55   :  { %6565 = vsyncadd [#allocation3], 4294962176 }
  0x56   :  { %6566 = dma.done.wait [#allocation5], 30720  }
  0x57   :  { %6567 = vsyncadd [#allocation5], 4294936576 }
  0x58   :  { %6568 = dma.done.wait [#allocation8], 10240  }
  0x59   :  { %6569 = vsyncadd [#allocation8], 4294957056  ;;  %v6579_v0 = vmov 0.0   ;;  %v4727_v1 = vld [vmem:[%s8460_s1 + $0x48] sm:$0xff]  ;;  %v4729_v2 = vld [vmem:[%s8460_s1 + $0x58] sm:$0xff]  ;;  %vm159_vm0 = vcmask 261120  }
  0x5a   :  { %296 = vmatprep.mubr.f32.mxu0 %v6579_v0  ;;  %416 = vmatprep.mubr.f32.mxu1 %v6579_v0  ;;  %v4726_v3 = vld [vmem:[%s8460_s1 + $0x40] sm:$0xff]  ;;  %v5341_v4 = vpack.c.bf16 %v4729_v2, %v4727_v1  ;;  %v4728_v5 = vld [vmem:[%s8460_s1 + $0x50] sm:$0xff]  ;;  %v4731_v6 = vld [vmem:[%s8460_s1 + $0x68] sm:$0xff]  ;;  %vm2734_vm1 = vcmask 523264   ;;  %vm6581_vm2 = vmmov 0  }
  0x5b   :  { %v4733_v7 = vld [vmem:[%s8460_s1 + $0x78] sm:$0xff]  ;;  %v5343_v8 = vpack.c.bf16 %v4728_v5, %v4726_v3  ;;  %v4730_v10 = vld [vmem:[%s8460_s1 + $0x60] sm:$0xff]  ;;  %v4732_v11 = vld [vmem:[%s8460_s1 + $0x70] sm:$0xff] }
  0x5c   :  { %v5345_v9 = vpack.c.bf16 %v4733_v7, %v4731_v6  ;;  %5342 = vmatprep.subr.bf16.mxu0 %v5341_v4  ;;  %5901 = vmatprep.subr.bf16.mxu1 %v5341_v4  ;;  %v655_v12 = vld [vmem:[#allocation2 + $0x48] sm:$0xff]  ;;  %v657_v13 = vld [vmem:[#allocation2 + $0x58] sm:$0xff]  ;;  %v5347_v14 = vpack.c.bf16 %v4732_v11, %v4730_v10  ;;  %v654_v16 = vld [vmem:[#allocation2 + $0x40] sm:$0xff] }
  0x5d   :  { %5344 = vmatpush1.bf16.msra.mxu0 %v5343_v8  ;;  %5903 = vmatpush1.bf16.msra.mxu1 %v5343_v8  ;;  %v5357_v15 = vpack.c.bf16 %v657_v13, %v655_v12  ;;  %v656_v17 = vld [vmem:[#allocation2 + $0x50] sm:$0xff]  ;;  %v659_v18 = vld [vmem:[#allocation2 + $0x68] sm:$0xff]  ;;  %v661_v19 = vld [vmem:[#allocation2 + $0x78] sm:$0xff] }
  0x5e   :  { %5346 = vmatprep.subr.bf16.mxu0 %v5345_v9  ;;  %5902 = vmatprep.subr.bf16.mxu1 %v5345_v9  ;;  %v6743_v20 = vld [vmem:[%s8459_s0 + $0x8] sm:$0xff]  ;;  %v5359_v22 = vpack.c.bf16 %v656_v17, %v654_v16  ;;  %v5361_v23 = vpack.c.bf16 %v661_v19, %v659_v18  ;;  %v658_v24 = vld [vmem:[#allocation2 + $0x60] sm:$0xff]  ;;  %v660_v25 = vld [vmem:[#allocation2 + $0x70] sm:$0xff] }
  0x5f   :  { %v6748_v21 = vld [vmem:[%s8459_s0 + $0xa8] sm:$0xff]  ;;  %v145_v27 = vld [vmem:[#allocation2 + $0x18] sm:$0xff]  ;;  %v134_v30 = vld [vmem:[%s8460_s1] sm:$0xff]  ;;  %v5363_v35 = vpack.c.bf16 %v660_v25, %v658_v24 }
  0x60   :  { %v143_v26 = vld [vmem:[#allocation2 + $0x8] sm:$0xff]  ;;  %v137_v29 = vld [vmem:[%s8460_s1 + $0x18] sm:$0xff]  ;;  %v6767_v31 = vld [vmem:[%s8459_s0 + $0x10] sm:$0xff] }
  0x61   :  { %5348 = vmatpush1.bf16.msra.mxu0 %v5347_v14  ;;  %5904 = vmatpush1.bf16.msra.mxu1 %v5347_v14  ;;  %v135_v28 = vld [vmem:[%s8460_s1 + $0x8] sm:$0xff]  ;;  %v6772_v32 = vld [vmem:[%s8459_s0 + $0xb0] sm:$0xff]  ;;  %v5365_v37 = vpack.c.bf16 %v145_v27, %v143_v26  ;;  %v6787_v38 = vld [vmem:[%s8459_s0 + $0x18] sm:$0xff] }
  0x62   :  { %5358 = vmatprep.subr.bf16.mxu1 %v5357_v15  ;;  %v5349_v33 = vpack.c.bf16 %v137_v29, %v135_v28  ;;  %v136_v34 = vld [vmem:[%s8460_s1 + $0x10] sm:$0xff]  ;;  %v6792_v39 = vld [vmem:[%s8459_s0 + $0xb8] sm:$0xff]  ;;  %v139_v40 = vld [vmem:[%s8460_s1 + $0x28] sm:$0xff] }
  0x63   :  { %v5351_v36 = vpack.c.bf16 %v136_v34, %v134_v30  ;;  %v141_v41 = vld [vmem:[%s8460_s1 + $0x38] sm:$0xff]  ;;  %v138_v42 = vld [vmem:[%s8460_s1 + $0x20] sm:$0xff]  ;;  %v140_v44 = vld [vmem:[%s8460_s1 + $0x30] sm:$0xff] }
  0x64   :  { %4734 = vmatmul.mubr.msk.f32.vlgmr.msra.gmra.mrb[0].mxu0 %vm159_vm0, %v6743_v20  ;;  %4754 = vmatmul.mubr.msk.f32.vlgmr.msra.gmra.mrb[0].mxu1 %vm159_vm0, %v6748_v21  ;;  %v5353_v43 = vpack.c.bf16 %v141_v41, %v139_v40  ;;  %v5355_v45 = vpack.c.bf16 %v140_v44, %v138_v42  ;;  %v4831_v46 = vld [vmem:[%s8460_s1 + $0x88] sm:$0xff]  ;;  %v4833_v47 = vld [vmem:[%s8460_s1 + $0x98] sm:$0xff]  ;;  %v6821_v48 = vld [vmem:[%s8459_s0 + $0x20] sm:$0xff] }
  0x65   :  { %5360 = vmatpush1.bf16.msra.mxu1 %v5359_v22  ;;  %302 = vmatprep.mubr.f32.mxu0 %v6579_v0  ;;  %v6826_v49 = vld [vmem:[%s8459_s0 + $0xc0] sm:$0xff]  ;;  %v144_v51 = vld [vmem:[#allocation2 + $0x10] sm:$0xff]  ;;  %v5373_v52 = vpack.c.bf16 %v4833_v47, %v4831_v46  ;;  %v147_v53 = vld [vmem:[#allocation2 + $0x28] sm:$0xff] }
  0x66   :  { %422 = vmatprep.mubr.f32.mxu1 %v6579_v0  ;;  %5362 = vmatprep.subr.bf16.mxu1 %v5361_v23  ;;  %v142_v50 = vld [vmem:[#allocation2] sm:$0xff]  ;;  %v149_v54 = vld [vmem:[#allocation2 + $0x38] sm:$0xff]  ;;  %v6837_v55 = vld [vmem:[%s8459_s0 + $0x28] sm:$0xff] }
  0x67   :  { %5350 = vmatprep.subr.bf16.mxu0 %v5349_v33  ;;  %v5367_v56 = vpack.c.bf16 %v144_v51, %v142_v50  ;;  %v5369_v57 = vpack.c.bf16 %v149_v54, %v147_v53  ;;  %v146_v58 = vld [vmem:[#allocation2 + $0x20] sm:$0xff]  ;;  %v148_v59 = vld [vmem:[#allocation2 + $0x30] sm:$0xff]  ;;  %v1351_v60 = vld [vmem:[#allocation2 + $0x88] sm:$0xff] }
  0x68   :  { %4735 = vmatmul.mubr.msk.f32.gmra.mrb[2].mxu0 %vm159_vm0, %v6767_v31  ;;  %4755 = vmatmul.mubr.msk.f32.gmra.mrb[2].mxu1 %vm159_vm0, %v6772_v32  ;;  %v1353_v61 = vld [vmem:[#allocation2 + $0x98] sm:$0xff]  ;;  %v6847_v62 = vld [vmem:[%s8459_s0 + $0x30] sm:$0xff]  ;;  %v5371_v63 = vpack.c.bf16 %v148_v59, %v146_v58  ;;  %v6870_v3 = vld [vmem:[%s8459_s0 + $0x40] sm:$0xff] }
  0x69   :  { %308 = vmatprep.mubr.f32.mxu0 %v6579_v0  ;;  %428 = vmatprep.mubr.f32.mxu1 %v6579_v0  ;;  %v5381_v1 = vpack.c.bf16 %v1353_v61, %v1351_v60  ;;  %v6859_v2 = vld [vmem:[%s8459_s0 + $0x38] sm:$0xff]  ;;  %v6881_v4 = vld [vmem:[%s8459_s0 + $0x48] sm:$0xff]  ;;  %v6892_v5 = vld [vmem:[%s8459_s0 + $0x50] sm:$0xff] }
  0x6a   :  { %5364 = vmatpush1.bf16.msra.mxu1 %v5363_v35  ;;  %5352 = vmatpush1.bf16.msra.mxu0 %v5351_v36  ;;  %v6903_v6 = vld [vmem:[%s8459_s0 + $0x58] sm:$0xff]  ;;  %v6914_v7 = vld [vmem:[%s8459_s0 + $0x60] sm:$0xff]  ;;  %v6925_v8 = vld [vmem:[%s8459_s0 + $0x68] sm:$0xff] }
  0x6b   :  { %5366 = vmatprep.subr.bf16.mxu1 %v5365_v37  ;;  %5354 = vmatprep.subr.bf16.mxu0 %v5353_v43  ;;  %v6936_v9 = vld [vmem:[%s8459_s0 + $0x70] sm:$0xff]  ;;  %v6947_v10 = vld [vmem:[%s8459_s0 + $0x78] sm:$0xff]  ;;  %v6958_v11 = vld [vmem:[%s8459_s0 + $0x80] sm:$0xff] }
  0x6c   :  { %4736 = vmatmul.mubr.msk.f32.gmra.mrb[4].mxu0 %vm159_vm0, %v6787_v38  ;;  %4756 = vmatmul.mubr.msk.f32.gmra.mrb[4].mxu1 %vm159_vm0, %v6792_v39  ;;  %v6969_v12 = vld [vmem:[%s8459_s0 + $0x88] sm:$0xff]  ;;  %v6980_v13 = vld [vmem:[%s8459_s0 + $0x90] sm:$0xff]  ;;  %v6991_v14 = vld [vmem:[%s8459_s0 + $0x98] sm:$0xff] }
  0x6d   :  { %314 = vmatprep.mubr.f32.mxu0 %v6579_v0  ;;  %434 = vmatprep.mubr.f32.mxu1 %v6579_v0  ;;  %v7002_v15 = vld [vmem:[%s8459_s0 + $0xa0] sm:$0xff]  ;;  %v4832_v17 = vld [vmem:[%s8460_s1 + $0x90] sm:$0xff]  ;;  %v4835_v18 = vld [vmem:[%s8460_s1 + $0xa8] sm:$0xff] }
  0x6e   :  { %5356 = vmatpush1.bf16.msra.mxu0 %v5355_v45  ;;  %v4830_v16 = vld [vmem:[%s8460_s1 + $0x80] sm:$0xff]  ;;  %v4837_v19 = vld [vmem:[%s8460_s1 + $0xb8] sm:$0xff]  ;;  %v4836_v26 = vld [vmem:[%s8460_s1 + $0xb0] sm:$0xff] }
  0x6f   :  { %5374 = vmatprep.subr.bf16.mxu0 %v5373_v52  ;;  %v106_v22 = vld [vmem:[%s8459_s0] sm:$0xff]  ;;  %v5375_v23 = vpack.c.bf16 %v4832_v17, %v4830_v16  ;;  %v5377_v24 = vpack.c.bf16 %v4837_v19, %v4835_v18  ;;  %v4887_v27 = vld [vmem:[%s8460_s1 + $0xc8] sm:$0xff]  ;;  %v4889_v28 = vld [vmem:[%s8460_s1 + $0xd8] sm:$0xff] }
  0x70   :  { %4737 = vmatmul.mubr.msk.f32.gmra.mrb[6].mxu0 %vm159_vm0, %v6821_v48  ;;  %4757 = vmatmul.mubr.msk.f32.gmra.mrb[6].mxu1 %vm159_vm0, %v6826_v49  ;;  %v4834_v25 = vld [vmem:[%s8460_s1 + $0xa0] sm:$0xff]  ;;  %v5389_v30 = vpack.c.bf16 %v4889_v28, %v4887_v27  ;;  %v1352_v34 = vld [vmem:[#allocation2 + $0x90] sm:$0xff]  ;;  %v1355_v35 = vld [vmem:[#allocation2 + $0xa8] sm:$0xff] }
  0x71   :  { %320 = vmatprep.mubr.f32.mxu0 %v6579_v0  ;;  %726 = vmatprep.mubr.f32.mxu1 %v6579_v0  ;;  %v5379_v29 = vpack.c.bf16 %v4836_v26, %v4834_v25  ;;  %v1350_v33 = vld [vmem:[#allocation2 + $0x80] sm:$0xff]  ;;  %v1357_v36 = vld [vmem:[#allocation2 + $0xb8] sm:$0xff]  ;;  %v1356_v42 = vld [vmem:[#allocation2 + $0xb0] sm:$0xff] }
  0x72   :  { %v5383_v37 = vpack.c.bf16 %v1352_v34, %v1350_v33  ;;  %v5385_v40 = vpack.c.bf16 %v1357_v36, %v1355_v35  ;;  %v1354_v41 = vld [vmem:[#allocation2 + $0xa0] sm:$0xff]  ;;  %v1886_v43 = vld [vmem:[#allocation2 + $0xc8] sm:$0xff]  ;;  %v1888_v44 = vld [vmem:[#allocation2 + $0xd8] sm:$0xff] }
  0x73   :  { %v5387_v45 = vpack.c.bf16 %v1356_v42, %v1354_v41  ;;  %v5397_v46 = vpack.c.bf16 %v1888_v44, %v1886_v43  ;;  %v4888_v47 = vld [vmem:[%s8460_s1 + $0xd0] sm:$0xff]  ;;  %v4891_v50 = vld [vmem:[%s8460_s1 + $0xe8] sm:$0xff]  ;;  %v4893_v51 = vld [vmem:[%s8460_s1 + $0xf8] sm:$0xff] }
  0x74   :  { %4738 = vmatmul.mubr.msk.f32.gmra.mrb[8].mxu0 %vm159_vm0, %v6837_v55  ;;  %4782 = vmatmul.mubr.msk.f32.vlgmr.msra.gmra.mrb[8].mxu1 %vm159_vm0, %v6743_v20  ;;  %v5393_v53 = vpack.c.bf16 %v4893_v51, %v4891_v50  ;;  %v4890_v54 = vld [vmem:[%s8460_s1 + $0xe0] sm:$0xff]  ;;  %v4945_v58 = vld [vmem:[%s8460_s1 + $0x118] sm:$0xff]  ;;  %v7360_v36 = vld [vmem:[%s8459_s0 + $0xc8] sm:$0xff] }
  0x75   :  { %5368 = vmatpush1.bf16.msra.mxu1 %v5367_v56  ;;  %326 = vmatprep.mubr.f32.mxu0 %v6579_v0  ;;  %v4892_v56 = vld [vmem:[%s8460_s1 + $0xf0] sm:$0xff]  ;;  %v1885_v61 = vld [vmem:[#allocation2 + $0xc0] sm:$0xff]  ;;  %v1892_v16 = vld [vmem:[#allocation2 + $0xf8] sm:$0xff] }
  0x76   :  { %732 = vmatprep.mubr.f32.mxu1 %v6579_v0  ;;  %5370 = vmatprep.subr.bf16.mxu1 %v5369_v57  ;;  %v4943_v57 = vld [vmem:[%s8460_s1 + $0x108] sm:$0xff]  ;;  %v5395_v59 = vpack.c.bf16 %v4892_v56, %v4890_v54  ;;  %v1889_v19 = vld [vmem:[#allocation2 + $0xe0] sm:$0xff]  ;;  %v4949_v42 = vld [vmem:[%s8460_s1 + $0x138] sm:$0xff] }
  0x77   :  { %v5405_v60 = vpack.c.bf16 %v4945_v58, %v4943_v57  ;;  %v4947_v41 = vld [vmem:[%s8460_s1 + $0x128] sm:$0xff]  ;;  %v2427_v51 = vld [vmem:[#allocation2 + $0x138] sm:$0xff]  ;;  %v2424_v54 = vld [vmem:[#allocation2 + $0x120] sm:$0xff]  ;;  %v6580_v58 = vmov 0.0|0.0  }
  0x78   :  { %4739 = vmatmul.mubr.msk.f32.gmra.mrb[10].mxu0 %vm159_vm0, %v6847_v62  ;;  %4783 = vmatmul.mubr.msk.f32.gmra.mrb[10].mxu1 %vm159_vm0, %v6767_v31  ;;  %v5409_v44 = vpack.c.bf16 %v4949_v42, %v4947_v41  ;;  %v2425_v50 = vld [vmem:[#allocation2 + $0x128] sm:$0xff]  ;;  %v2426_v56 = vld [vmem:[#allocation2 + $0x130] sm:$0xff]  ;;  %v3160_v41 = vld [vmem:[#allocation6 + $0xf8] sm:$0xff] }
  0x79   :  { %332 = vmatprep.mubr.f32.mxu0 %v6579_v0  ;;  %738 = vmatprep.mubr.f32.mxu1 %v6579_v0  ;;  %v5419_v57 = vpack.c.bf16 %v2426_v56, %v2424_v54  ;;  %v6452_v56 = vld [vmem:[%s8459_s0 + $0x98] sm:$0xff] }
  0x7a   :  { %5372 = vmatpush1.bf16.msra.mxu1 %v5371_v63  ;;  %v1887_v63 = vld [vmem:[#allocation2 + $0xd0] sm:$0xff] }
  0x7b   :  { %5382 = vmatprep.subr.bf16.mxu1 %v5381_v1  ;;  %v1890_v1 = vld [vmem:[#allocation2 + $0xe8] sm:$0xff]  ;;  %v5399_v17 = vpack.c.bf16 %v1887_v63, %v1885_v61  ;;  %v2894_v61 = vld [vmem:[#allocation4 + $0xd8] sm:$0xff] }
  0x7c   :  { %4740 = vmatmul.mubr.msk.f32.gmra.mrb[12].mxu0 %vm159_vm0, %v6859_v2  ;;  %4784 = vmatmul.mubr.msk.f32.gmra.mrb[12].mxu1 %vm159_vm0, %v6787_v38  ;;  %v5401_v18 = vpack.c.bf16 %v1892_v16, %v1890_v1  ;;  %v2895_v1 = vld [vmem:[#allocation4 + $0xe0] sm:$0xff]  ;;  %v2896_v16 = vld [vmem:[#allocation4 + $0xe8] sm:$0xff] }
  0x7d   :  { %338 = vmatprep.mubr.f32.mxu0 %v6579_v0  ;;  %744 = vmatprep.mubr.f32.mxu1 %v6579_v0 }
  0x80   :  { %4741 = vmatmul.mubr.msk.f32.gmra.mrb[14].mxu0 %vm159_vm0, %v6870_v3  ;;  %4785 = vmatmul.mubr.msk.f32.gmra.mrb[14].mxu1 %vm159_vm0, %v6821_v48 }
  0x81   :  { %344 = vmatprep.mubr.f32.mxu0 %v6579_v0  ;;  %750 = vmatprep.mubr.f32.mxu1 %v6579_v0 }
  0x84   :  { %4742 = vmatmul.mubr.msk.f32.gmra.mrb[16].mxu0 %vm159_vm0, %v6881_v4  ;;  %4786 = vmatmul.mubr.msk.f32.gmra.mrb[16].mxu1 %vm159_vm0, %v6837_v55 }
  0x85   :  { %350 = vmatprep.mubr.f32.mxu0 %v6579_v0  ;;  %756 = vmatprep.mubr.f32.mxu1 %v6579_v0 }
  0x88   :  { %4743 = vmatmul.mubr.msk.f32.gmra.mrb[18].mxu0 %vm159_vm0, %v6892_v5  ;;  %4787 = vmatmul.mubr.msk.f32.gmra.mrb[18].mxu1 %vm159_vm0, %v6847_v62 }
  0x89   :  { %356 = vmatprep.mubr.f32.mxu0 %v6579_v0  ;;  %762 = vmatprep.mubr.f32.mxu1 %v6579_v0 }
  0x8c   :  { %4744 = vmatmul.mubr.msk.f32.gmra.mrb[20].mxu0 %vm159_vm0, %v6903_v6  ;;  %4788 = vmatmul.mubr.msk.f32.gmra.mrb[20].mxu1 %vm159_vm0, %v6859_v2 }
  0x8d   :  { %362 = vmatprep.mubr.f32.mxu0 %v6579_v0  ;;  %768 = vmatprep.mubr.f32.mxu1 %v6579_v0 }
  0x90   :  { %4745 = vmatmul.mubr.msk.f32.gmra.mrb[22].mxu0 %vm159_vm0, %v6914_v7  ;;  %4789 = vmatmul.mubr.msk.f32.gmra.mrb[22].mxu1 %vm159_vm0, %v6870_v3 }
  0x91   :  { %368 = vmatprep.mubr.f32.mxu0 %v6579_v0  ;;  %774 = vmatprep.mubr.f32.mxu1 %v6579_v0 }
  0x94   :  { %4746 = vmatmul.mubr.msk.f32.gmra.mrb[24].mxu0 %vm159_vm0, %v6925_v8  ;;  %4790 = vmatmul.mubr.msk.f32.gmra.mrb[24].mxu1 %vm159_vm0, %v6881_v4 }
  0x95   :  { %374 = vmatprep.mubr.f32.mxu0 %v6579_v0  ;;  %780 = vmatprep.mubr.f32.mxu1 %v6579_v0 }
  0x98   :  { %4747 = vmatmul.mubr.msk.f32.gmra.mrb[26].mxu0 %vm159_vm0, %v6936_v9  ;;  %4791 = vmatmul.mubr.msk.f32.gmra.mrb[26].mxu1 %vm159_vm0, %v6892_v5 }
  0x99   :  { %380 = vmatprep.mubr.f32.mxu0 %v6579_v0  ;;  %786 = vmatprep.mubr.f32.mxu1 %v6579_v0 }
  0x9c   :  { %4748 = vmatmul.mubr.msk.f32.gmra.mrb[28].mxu0 %vm159_vm0, %v6947_v10  ;;  %4792 = vmatmul.mubr.msk.f32.gmra.mrb[28].mxu1 %vm159_vm0, %v6903_v6 }
  0x9d   :  { %386 = vmatprep.mubr.f32.mxu0 %v6579_v0  ;;  %792 = vmatprep.mubr.f32.mxu1 %v6579_v0 }
  0xa0   :  { %4749 = vmatmul.mubr.msk.f32.gmra.mrb[30].mxu0 %vm159_vm0, %v6958_v11  ;;  %4793 = vmatmul.mubr.msk.f32.gmra.mrb[30].mxu1 %vm159_vm0, %v6914_v7 }
  0xa1   :  { %392 = vmatprep.mubr.f32.mxu0 %v6579_v0  ;;  %798 = vmatprep.mubr.f32.mxu1 %v6579_v0 }
  0xa4   :  { %4750 = vmatmul.mubr.msk.f32.gmra.mrb[32].mxu0 %vm159_vm0, %v6969_v12  ;;  %4794 = vmatmul.mubr.msk.f32.gmra.mrb[32].mxu1 %vm159_vm0, %v6925_v8 }
  0xa5   :  { %398 = vmatprep.mubr.f32.mxu0 %v6579_v0  ;;  %804 = vmatprep.mubr.f32.mxu1 %v6579_v0 }
  0xa8   :  { %4751 = vmatmul.mubr.msk.f32.gmra.mrb[34].mxu0 %vm159_vm0, %v6980_v13  ;;  %4795 = vmatmul.mubr.msk.f32.gmra.mrb[34].mxu1 %vm159_vm0, %v6936_v9 }
  0xa9   :  { %404 = vmatprep.mubr.f32.mxu0 %v6579_v0  ;;  %810 = vmatprep.mubr.f32.mxu1 %v6579_v0 }
  0xac   :  { %4752 = vmatmul.mubr.msk.f32.gmra.mrb[36].mxu0 %vm159_vm0, %v6991_v14  ;;  %4796 = vmatmul.mubr.msk.f32.gmra.mrb[36].mxu1 %vm159_vm0, %v6947_v10 }
  0xad   :  { %410 = vmatprep.mubr.f32.mxu0 %v6579_v0  ;;  %816 = vmatprep.mubr.f32.mxu1 %v6579_v0 }
  0xb0   :  { %4753 = vmatmul.mubr.msk.f32.gmra.mrb[38].mxu0 %vm159_vm0, %v7002_v15  ;;  %4797 = vmatmul.mubr.msk.f32.gmra.mrb[38].mxu1 %vm159_vm0, %v6958_v11 }
  0xb1   :  { %508 = vmatprep.mubr.f32.mxu0 %v6579_v0  ;;  %822 = vmatprep.mubr.f32.mxu1 %v6579_v0 }
  0xb4   :  { %4758 = vmatmul.mubr.msk.f32.vlgmr.msra.gmra.mrb[0].mxu0 %vm159_vm0, %v106_v22  ;;  %4798 = vmatmul.mubr.msk.f32.gmra.mrb[40].mxu1 %vm159_vm0, %v6969_v12 }
  0xb5   :  { %514 = vmatprep.mubr.f32.mxu0 %v6579_v0  ;;  %828 = vmatprep.mubr.f32.mxu1 %v6579_v0 }
  0xb6   :  { %5376 = vmatpush1.bf16.msra.mxu0 %v5375_v23  ;;  %v2421_v23 = vld [vmem:[#allocation2 + $0x108] sm:$0xff] }
  0xb7   :  { %5378 = vmatprep.subr.bf16.mxu0 %v5377_v24  ;;  %v2423_v24 = vld [vmem:[#allocation2 + $0x118] sm:$0xff] }
  0xb8   :  { %4759 = vmatmul.mubr.msk.f32.gmra.mrb[2].mxu0 %vm159_vm0, %v6743_v20  ;;  %4799 = vmatmul.mubr.msk.f32.gmra.mrb[42].mxu1 %vm159_vm0, %v6980_v13  ;;  %v5413_v27 = vpack.c.bf16 %v2423_v24, %v2421_v23  ;;  %v3155_v23 = vld [vmem:[#allocation6 + $0xd0] sm:$0xff]  ;;  %v3156_v24 = vld [vmem:[#allocation6 + $0xd8] sm:$0xff] }
  0xb9   :  { %520 = vmatprep.mubr.f32.mxu0 %v6579_v0  ;;  %834 = vmatprep.mubr.f32.mxu1 %v6579_v0 }
  0xba   :  { %5380 = vmatpush1.bf16.msra.mxu0 %v5379_v29 }
  0xbb   :  { %5390 = vmatprep.subr.bf16.mxu0 %v5389_v30 }
  0xbc   :  { %4760 = vmatmul.mubr.msk.f32.gmra.mrb[4].mxu0 %vm159_vm0, %v6767_v31  ;;  %4800 = vmatmul.mubr.msk.f32.gmra.mrb[44].mxu1 %vm159_vm0, %v6991_v14 }
  0xbd   :  { %526 = vmatprep.mubr.f32.mxu0 %v6579_v0  ;;  %840 = vmatprep.mubr.f32.mxu1 %v6579_v0 }
  0xc0   :  { %4761 = vmatmul.mubr.msk.f32.gmra.mrb[6].mxu0 %vm159_vm0, %v6787_v38  ;;  %4801 = vmatmul.mubr.msk.f32.gmra.mrb[46].mxu1 %vm159_vm0, %v7002_v15 }
  0xc1   :  { %532 = vmatprep.mubr.f32.mxu0 %v6579_v0  ;;  %846 = vmatprep.mubr.f32.mxu1 %v6579_v0 }
  0xc4   :  { %4762 = vmatmul.mubr.msk.f32.gmra.mrb[8].mxu0 %vm159_vm0, %v6821_v48  ;;  %4802 = vmatmul.mubr.msk.f32.gmra.mrb[48].mxu1 %vm159_vm0, %v6748_v21 }
  0xc5   :  { %538 = vmatprep.mubr.f32.mxu0 %v6579_v0  ;;  %852 = vmatprep.mubr.f32.mxu1 %v6579_v0 }
  0xc8   :  { %4763 = vmatmul.mubr.msk.f32.gmra.mrb[10].mxu0 %vm159_vm0, %v6837_v55  ;;  %4803 = vmatmul.mubr.msk.f32.gmra.mrb[50].mxu1 %vm159_vm0, %v6772_v32 }
  0xc9   :  { %544 = vmatprep.mubr.f32.mxu0 %v6579_v0  ;;  %858 = vmatprep.mubr.f32.mxu1 %v6579_v0 }
  0xcc   :  { %4764 = vmatmul.mubr.msk.f32.gmra.mrb[12].mxu0 %vm159_vm0, %v6847_v62  ;;  %4804 = vmatmul.mubr.msk.f32.gmra.mrb[52].mxu1 %vm159_vm0, %v6792_v39 }
  0xcd   :  { %550 = vmatprep.mubr.f32.mxu0 %v6579_v0  ;;  %864 = vmatprep.mubr.f32.mxu1 %v6579_v0 }
  0xd0   :  { %4765 = vmatmul.mubr.msk.f32.gmra.mrb[14].mxu0 %vm159_vm0, %v6859_v2  ;;  %4805 = vmatmul.mubr.msk.f32.gmra.mrb[54].mxu1 %vm159_vm0, %v6826_v49 }
  0xd1   :  { %556 = vmatprep.mubr.f32.mxu0 %v6579_v0  ;;  %935 = vmatprep.mubr.f32.mxu1 %v6579_v0 }
  0xd4   :  { %4766 = vmatmul.mubr.msk.f32.gmra.mrb[16].mxu0 %vm159_vm0, %v6870_v3  ;;  %4806 = vmatmul.mubr.msk.f32.vlgmr.msra.gmra.mrb[8].mxu1 %vm159_vm0, %v106_v22  ;;  %v1891_v22 = vld [vmem:[#allocation2 + $0xf0] sm:$0xff] }
  0xd5   :  { %5384 = vmatpush1.bf16.msra.mxu1 %v5383_v37  ;;  %562 = vmatprep.mubr.f32.mxu0 %v6579_v0  ;;  %v5403_v25 = vpack.c.bf16 %v1891_v22, %v1889_v19  ;;  %v4942_v37 = vld [vmem:[%s8460_s1 + $0x100] sm:$0xff]  ;;  %v7566_v19 = vld [vmem:[%s8459_s0 + $0xb0] sm:$0xff]  ;;  %v3154_v22 = vld [vmem:[#allocation6 + $0xc8] sm:$0xff] }
  0xd6   :  { %941 = vmatprep.mubr.f32.mxu1 %v6579_v0  ;;  %5386 = vmatprep.subr.bf16.mxu1 %v5385_v40  ;;  %v4944_v40 = vld [vmem:[%s8460_s1 + $0x110] sm:$0xff] }
  0xd7   :  { %v5407_v43 = vpack.c.bf16 %v4944_v40, %v4942_v37  ;;  %v3159_v40 = vld [vmem:[#allocation6 + $0xf0] sm:$0xff] }
  0xd8   :  { %4767 = vmatmul.mubr.msk.f32.gmra.mrb[18].mxu0 %vm159_vm0, %v6881_v4  ;;  %4807 = vmatmul.mubr.msk.f32.gmra.mrb[10].mxu1 %vm159_vm0, %v6743_v20  ;;  %v4886_v20 = vld [vmem:[%s8460_s1 + $0xc0] sm:$0xff]  ;;  %v5503_v42 = vpack.c.bf16 %v3160_v41, %v3159_v40 }
  0xd9   :  { %568 = vmatprep.mubr.f32.mxu0 %v6579_v0  ;;  %947 = vmatprep.mubr.f32.mxu1 %v6579_v0  ;;  %v5391_v52 = vpack.c.bf16 %v4888_v47, %v4886_v20  ;;  %v2422_v47 = vld [vmem:[#allocation2 + $0x110] sm:$0xff]  ;;  %v2911_v41 = vld [vmem:[#allocation4 + $0x160] sm:$0xff] }
  0xda   :  { %5388 = vmatpush1.bf16.msra.mxu1 %v5387_v45  ;;  %v4946_v45 = vld [vmem:[%s8460_s1 + $0x120] sm:$0xff] }
  0xdb   :  { %5398 = vmatprep.subr.bf16.mxu1 %v5397_v46  ;;  %v4948_v46 = vld [vmem:[%s8460_s1 + $0x130] sm:$0xff] }
  0xdc   :  { %4768 = vmatmul.mubr.msk.f32.gmra.mrb[20].mxu0 %vm159_vm0, %v6892_v5  ;;  %4808 = vmatmul.mubr.msk.f32.gmra.mrb[12].mxu1 %vm159_vm0, %v6767_v31  ;;  %v5411_v20 = vpack.c.bf16 %v4948_v46, %v4946_v45  ;;  %v6449_v45 = vld [vmem:[%s8459_s0 + $0x80] sm:$0xff]  ;;  %v6450_v46 = vld [vmem:[%s8459_s0 + $0x88] sm:$0xff] }
  0xdd   :  { %574 = vmatprep.mubr.f32.mxu0 %v6579_v0  ;;  %953 = vmatprep.mubr.f32.mxu1 %v6579_v0 }
  0xe0   :  { %4769 = vmatmul.mubr.msk.f32.gmra.mrb[22].mxu0 %vm159_vm0, %v6903_v6  ;;  %4809 = vmatmul.mubr.msk.f32.gmra.mrb[14].mxu1 %vm159_vm0, %v6787_v38 }
  0xe1   :  { %580 = vmatprep.mubr.f32.mxu0 %v6579_v0  ;;  %959 = vmatprep.mubr.f32.mxu1 %v6579_v0 }
  0xe4   :  { %4770 = vmatmul.mubr.msk.f32.gmra.mrb[24].mxu0 %vm159_vm0, %v6914_v7  ;;  %4810 = vmatmul.mubr.msk.f32.gmra.mrb[16].mxu1 %vm159_vm0, %v6821_v48 }
  0xe5   :  { %586 = vmatprep.mubr.f32.mxu0 %v6579_v0  ;;  %965 = vmatprep.mubr.f32.mxu1 %v6579_v0 }
  0xe8   :  { %4771 = vmatmul.mubr.msk.f32.gmra.mrb[26].mxu0 %vm159_vm0, %v6925_v8  ;;  %4811 = vmatmul.mubr.msk.f32.gmra.mrb[18].mxu1 %vm159_vm0, %v6837_v55 }
  0xe9   :  { %592 = vmatprep.mubr.f32.mxu0 %v6579_v0  ;;  %971 = vmatprep.mubr.f32.mxu1 %v6579_v0 }
  0xec   :  { %4772 = vmatmul.mubr.msk.f32.gmra.mrb[28].mxu0 %vm159_vm0, %v6936_v9  ;;  %4812 = vmatmul.mubr.msk.f32.gmra.mrb[20].mxu1 %vm159_vm0, %v6847_v62 }
  0xed   :  { %598 = vmatprep.mubr.f32.mxu0 %v6579_v0  ;;  %977 = vmatprep.mubr.f32.mxu1 %v6579_v0 }
  0xf0   :  { %4773 = vmatmul.mubr.msk.f32.gmra.mrb[30].mxu0 %vm159_vm0, %v6947_v10  ;;  %4813 = vmatmul.mubr.msk.f32.gmra.mrb[22].mxu1 %vm159_vm0, %v6859_v2 }
  0xf1   :  { %604 = vmatprep.mubr.f32.mxu0 %v6579_v0  ;;  %983 = vmatprep.mubr.f32.mxu1 %v6579_v0 }
  0xf4   :  { %4774 = vmatmul.mubr.msk.f32.gmra.mrb[32].mxu0 %vm159_vm0, %v6958_v11  ;;  %4814 = vmatmul.mubr.msk.f32.gmra.mrb[24].mxu1 %vm159_vm0, %v6870_v3 }
  0xf5   :  { %610 = vmatprep.mubr.f32.mxu0 %v6579_v0  ;;  %989 = vmatprep.mubr.f32.mxu1 %v6579_v0 }
  0xf8   :  { %4775 = vmatmul.mubr.msk.f32.gmra.mrb[34].mxu0 %vm159_vm0, %v6969_v12  ;;  %4815 = vmatmul.mubr.msk.f32.gmra.mrb[26].mxu1 %vm159_vm0, %v6881_v4 }
  0xf9   :  { %616 = vmatprep.mubr.f32.mxu0 %v6579_v0  ;;  %995 = vmatprep.mubr.f32.mxu1 %v6579_v0 }
  0xfc   :  { %4776 = vmatmul.mubr.msk.f32.gmra.mrb[36].mxu0 %vm159_vm0, %v6980_v13  ;;  %4816 = vmatmul.mubr.msk.f32.gmra.mrb[28].mxu1 %vm159_vm0, %v6892_v5 }
  0xfd   :  { %622 = vmatprep.mubr.f32.mxu0 %v6579_v0  ;;  %1001 = vmatprep.mubr.f32.mxu1 %v6579_v0 }
 0x100   :  { %4777 = vmatmul.mubr.msk.f32.gmra.mrb[38].mxu0 %vm159_vm0, %v6991_v14  ;;  %4817 = vmatmul.mubr.msk.f32.gmra.mrb[30].mxu1 %vm159_vm0, %v6903_v6 }
 0x101   :  { %628 = vmatprep.mubr.f32.mxu0 %v6579_v0  ;;  %1007 = vmatprep.mubr.f32.mxu1 %v6579_v0 }
 0x104   :  { %4778 = vmatmul.mubr.msk.f32.gmra.mrb[40].mxu0 %vm159_vm0, %v7002_v15  ;;  %4818 = vmatmul.mubr.msk.f32.gmra.mrb[32].mxu1 %vm159_vm0, %v6914_v7 }
 0x105   :  { %634 = vmatprep.mubr.f32.mxu0 %v6579_v0  ;;  %1013 = vmatprep.mubr.f32.mxu1 %v6579_v0 }
 0x108   :  { %4779 = vmatmul.mubr.msk.f32.gmra.mrb[42].mxu0 %vm159_vm0, %v6748_v21  ;;  %4819 = vmatmul.mubr.msk.f32.gmra.mrb[34].mxu1 %vm159_vm0, %v6925_v8 }
 0x109   :  { %640 = vmatprep.mubr.f32.mxu0 %v6579_v0  ;;  %1019 = vmatprep.mubr.f32.mxu1 %v6579_v0 }
 0x10c   :  { %4780 = vmatmul.mubr.msk.f32.gmra.mrb[44].mxu0 %vm159_vm0, %v6772_v32  ;;  %4820 = vmatmul.mubr.msk.f32.gmra.mrb[36].mxu1 %vm159_vm0, %v6936_v9 }
 0x10d   :  { %646 = vmatprep.mubr.f32.mxu0 %v6579_v0  ;;  %1025 = vmatprep.mubr.f32.mxu1 %v6579_v0 }
 0x110   :  { %4781 = vmatmul.mubr.msk.f32.gmra.mrb[46].mxu0 %vm159_vm0, %v6792_v39  ;;  %4821 = vmatmul.mubr.msk.f32.gmra.mrb[38].mxu1 %vm159_vm0, %v6947_v10 }
 0x111   :  { %1031 = vmatprep.mubr.f32.mxu1 %v6579_v0  ;;  %1156 = vmatprep.mubr.f32.mxu0 %v6579_v0 }
 0x114   :  { %4822 = vmatmul.mubr.msk.f32.gmra.mrb[40].mxu1 %vm159_vm0, %v6958_v11  ;;  %4838 = vmatmul.mubr.msk.f32.vlgmr.msra.gmra.mrb[0].mxu0 %vm159_vm0, %v6767_v31 }
 0x115   :  { %1037 = vmatprep.mubr.f32.mxu1 %v6579_v0  ;;  %1162 = vmatprep.mubr.f32.mxu0 %v6579_v0 }
 0x116   :  { %5392 = vmatpush1.bf16.msra.mxu0 %v5391_v52 }
 0x117   :  { %5394 = vmatprep.subr.bf16.mxu0 %v5393_v53  ;;  %v5417_v53 = vpack.c.bf16 %v2427_v51, %v2425_v50  ;;  %v3161_v50 = vld [vmem:[#allocation6 + $0x100] sm:$0xff]  ;;  %v7736_v51 = vld [vmem:[%s8459_s0 + $0xd8] sm:$0xff] }
 0x118   :  { %4823 = vmatmul.mubr.msk.f32.gmra.mrb[42].mxu1 %vm159_vm0, %v6969_v12  ;;  %4839 = vmatmul.mubr.msk.f32.gmra.mrb[2].mxu0 %vm159_vm0, %v6787_v38 }
 0x119   :  { %1043 = vmatprep.mubr.f32.mxu1 %v6579_v0  ;;  %1168 = vmatprep.mubr.f32.mxu0 %v6579_v0 }
 0x11a   :  { %5396 = vmatpush1.bf16.msra.mxu0 %v5395_v59 }
 0x11b   :  { %5406 = vmatprep.subr.bf16.mxu0 %v5405_v60  ;;  %v2893_v60 = vld [vmem:[#allocation4 + $0xd0] sm:$0xff] }
 0x11c   :  { %4824 = vmatmul.mubr.msk.f32.gmra.mrb[44].mxu1 %vm159_vm0, %v6980_v13  ;;  %4840 = vmatmul.mubr.msk.f32.gmra.mrb[4].mxu0 %vm159_vm0, %v6821_v48  ;;  %v5425_v63 = vpack.c.bf16 %v2894_v61, %v2893_v60  ;;  %v3164_v61 = vld [vmem:[#allocation6 + $0x118] sm:$0xff] }
 0x11d   :  { %1049 = vmatprep.mubr.f32.mxu1 %v6579_v0  ;;  %1174 = vmatprep.mubr.f32.mxu0 %v6579_v0 }
 0x120   :  { %4825 = vmatmul.mubr.msk.f32.gmra.mrb[46].mxu1 %vm159_vm0, %v6991_v14  ;;  %4841 = vmatmul.mubr.msk.f32.gmra.mrb[6].mxu0 %vm159_vm0, %v6837_v55 }
 0x121   :  { %1055 = vmatprep.mubr.f32.mxu1 %v6579_v0  ;;  %1180 = vmatprep.mubr.f32.mxu0 %v6579_v0 }
 0x124   :  { %4826 = vmatmul.mubr.msk.f32.gmra.mrb[48].mxu1 %vm159_vm0, %v7002_v15  ;;  %4842 = vmatmul.mubr.msk.f32.gmra.mrb[8].mxu0 %vm159_vm0, %v6847_v62 }
 0x125   :  { %1061 = vmatprep.mubr.f32.mxu1 %v6579_v0  ;;  %1186 = vmatprep.mubr.f32.mxu0 %v6579_v0 }
 0x128   :  { %4827 = vmatmul.mubr.msk.f32.gmra.mrb[50].mxu1 %vm159_vm0, %v6748_v21  ;;  %4843 = vmatmul.mubr.msk.f32.gmra.mrb[10].mxu0 %vm159_vm0, %v6859_v2 }
 0x129   :  { %1067 = vmatprep.mubr.f32.mxu1 %v6579_v0  ;;  %1192 = vmatprep.mubr.f32.mxu0 %v6579_v0 }
 0x12c   :  { %4828 = vmatmul.mubr.msk.f32.gmra.mrb[52].mxu1 %vm159_vm0, %v6772_v32  ;;  %4844 = vmatmul.mubr.msk.f32.gmra.mrb[12].mxu0 %vm159_vm0, %v6870_v3 }
 0x12d   :  { %1073 = vmatprep.mubr.f32.mxu1 %v6579_v0  ;;  %1198 = vmatprep.mubr.f32.mxu0 %v6579_v0 }
 0x130   :  { %4829 = vmatmul.mubr.msk.f32.gmra.mrb[54].mxu1 %vm159_vm0, %v6792_v39  ;;  %4845 = vmatmul.mubr.msk.f32.gmra.mrb[14].mxu0 %vm159_vm0, %v6881_v4 }
 0x131   :  { %1204 = vmatprep.mubr.f32.mxu0 %v6579_v0  ;;  %1422 = vmatprep.mubr.f32.mxu1 %v6579_v0 }
 0x134   :  { %4846 = vmatmul.mubr.msk.f32.gmra.mrb[16].mxu0 %vm159_vm0, %v6892_v5  ;;  %4862 = vmatmul.mubr.msk.f32.vlgmr.msra.gmra.mrb[8].mxu1 %vm159_vm0, %v6767_v31 }
 0x135   :  { %5400 = vmatpush1.bf16.msra.mxu1 %v5399_v17  ;;  %1210 = vmatprep.mubr.f32.mxu0 %v6579_v0  ;;  %v2897_v17 = vld [vmem:[#allocation4 + $0xf0] sm:$0xff] }
 0x136   :  { %1428 = vmatprep.mubr.f32.mxu1 %v6579_v0  ;;  %5402 = vmatprep.subr.bf16.mxu1 %v5401_v18  ;;  %v2898_v18 = vld [vmem:[#allocation4 + $0xf8] sm:$0xff] }
 0x137   :  { %v7257_v26 = vpop.f32.mrb[0].mxu1 }
 0x138   :  { %v7259_v28 = vpop.f32.mrb[1].mxu1  ;;  %4847 = vmatmul.mubr.msk.f32.gmra.mrb[18].mxu0 %vm159_vm0, %v6903_v6  ;;  %4863 = vmatmul.mubr.msk.f32.gmra.mrb[10].mxu1 %vm159_vm0, %v6787_v38 }
 0x139   :  { %1216 = vmatprep.mubr.f32.mxu0 %v6579_v0  ;;  %1434 = vmatprep.mubr.f32.mxu1 %v6579_v0 }
 0x13a   :  { %5404 = vmatpush1.bf16.msra.mxu1 %v5403_v25  ;;  %v3157_v25 = vld [vmem:[#allocation6 + $0xe0] sm:$0xff] }
 0x13b   :  { %v7267_v31 = vpop.f32.mrb[2].mxu1  ;;  %5414 = vmatprep.subr.bf16.mxu1 %v5413_v27  ;;  %v3158_v27 = vld [vmem:[#allocation6 + $0xe8] sm:$0xff] }
 0x13c   :  { %v7269_v29 = vpop.f32.mrb[3].mxu1  ;;  %4848 = vmatmul.mubr.msk.f32.gmra.mrb[20].mxu0 %vm159_vm0, %v6914_v7  ;;  %4864 = vmatmul.mubr.msk.f32.gmra.mrb[12].mxu1 %vm159_vm0, %v6821_v48  ;;  %v5500_v37 = vpack.c.bf16 %v3158_v27, %v3157_v25  ;;  %v2910_v27 = vld [vmem:[#allocation4 + $0x158] sm:$0xff] }
 0x13d   :  { %1222 = vmatprep.mubr.f32.mxu0 %v6579_v0  ;;  %1440 = vmatprep.mubr.f32.mxu1 %v6579_v0 }
 0x13f   :  { %v7277_v30 = vpop.f32.mrb[4].mxu1 }
 0x140   :  { %v7279_v33 = vpop.f32.mrb[5].mxu1  ;;  %4849 = vmatmul.mubr.msk.f32.gmra.mrb[22].mxu0 %vm159_vm0, %v6925_v8  ;;  %4865 = vmatmul.mubr.msk.f32.gmra.mrb[14].mxu1 %vm159_vm0, %v6837_v55 }
 0x141   :  { %1228 = vmatprep.mubr.f32.mxu0 %v6579_v0  ;;  %1446 = vmatprep.mubr.f32.mxu1 %v6579_v0 }
 0x143   :  { %v7287_v34 = vpop.f32.mrb[6].mxu1 }
 0x144   :  { %v7289_v35 = vpop.f32.mrb[7].mxu1  ;;  %4850 = vmatmul.mubr.msk.f32.gmra.mrb[24].mxu0 %vm159_vm0, %v6936_v9  ;;  %4866 = vmatmul.mubr.msk.f32.gmra.mrb[16].mxu1 %vm159_vm0, %v6847_v62 }
 0x145   :  { %1234 = vmatprep.mubr.f32.mxu0 %v6579_v0  ;;  %1452 = vmatprep.mubr.f32.mxu1 %v6579_v0 }
 0x148   :  { %4851 = vmatmul.mubr.msk.f32.gmra.mrb[26].mxu0 %vm159_vm0, %v6947_v10  ;;  %4867 = vmatmul.mubr.msk.f32.gmra.mrb[18].mxu1 %vm159_vm0, %v6859_v2 }
 0x149   :  { %1240 = vmatprep.mubr.f32.mxu0 %v6579_v0  ;;  %1458 = vmatprep.mubr.f32.mxu1 %v6579_v0 }
 0x14c   :  { %4852 = vmatmul.mubr.msk.f32.gmra.mrb[28].mxu0 %vm159_vm0, %v6958_v11  ;;  %4868 = vmatmul.mubr.msk.f32.gmra.mrb[20].mxu1 %vm159_vm0, %v6870_v3 }
 0x14d   :  { %1246 = vmatprep.mubr.f32.mxu0 %v6579_v0  ;;  %1464 = vmatprep.mubr.f32.mxu1 %v6579_v0 }
 0x150   :  { %4853 = vmatmul.mubr.msk.f32.gmra.mrb[30].mxu0 %vm159_vm0, %v6969_v12  ;;  %4869 = vmatmul.mubr.msk.f32.gmra.mrb[22].mxu1 %vm159_vm0, %v6881_v4 }
 0x151   :  { %1252 = vmatprep.mubr.f32.mxu0 %v6579_v0  ;;  %1470 = vmatprep.mubr.f32.mxu1 %v6579_v0 }
 0x154   :  { %4854 = vmatmul.mubr.msk.f32.gmra.mrb[32].mxu0 %vm159_vm0, %v6980_v13  ;;  %4870 = vmatmul.mubr.msk.f32.gmra.mrb[24].mxu1 %vm159_vm0, %v6892_v5 }
 0x155   :  { %1258 = vmatprep.mubr.f32.mxu0 %v6579_v0  ;;  %1476 = vmatprep.mubr.f32.mxu1 %v6579_v0 }
 0x158   :  { %4855 = vmatmul.mubr.msk.f32.gmra.mrb[34].mxu0 %vm159_vm0, %v6991_v14  ;;  %4871 = vmatmul.mubr.msk.f32.gmra.mrb[26].mxu1 %vm159_vm0, %v6903_v6 }
 0x159   :  { %1264 = vmatprep.mubr.f32.mxu0 %v6579_v0  ;;  %1482 = vmatprep.mubr.f32.mxu1 %v6579_v0 }
 0x15c   :  { %4856 = vmatmul.mubr.msk.f32.gmra.mrb[36].mxu0 %vm159_vm0, %v7002_v15  ;;  %4872 = vmatmul.mubr.msk.f32.gmra.mrb[28].mxu1 %vm159_vm0, %v6914_v7 }
 0x15d   :  { %1270 = vmatprep.mubr.f32.mxu0 %v6579_v0  ;;  %1488 = vmatprep.mubr.f32.mxu1 %v6579_v0 }
 0x160   :  { %4857 = vmatmul.mubr.msk.f32.gmra.mrb[38].mxu0 %vm159_vm0, %v6748_v21  ;;  %4873 = vmatmul.mubr.msk.f32.gmra.mrb[30].mxu1 %vm159_vm0, %v6925_v8 }
 0x161   :  { %1276 = vmatprep.mubr.f32.mxu0 %v6579_v0  ;;  %1494 = vmatprep.mubr.f32.mxu1 %v6579_v0 }
 0x164   :  { %4858 = vmatmul.mubr.msk.f32.gmra.mrb[40].mxu0 %vm159_vm0, %v6772_v32  ;;  %4874 = vmatmul.mubr.msk.f32.gmra.mrb[32].mxu1 %vm159_vm0, %v6936_v9 }
 0x165   :  { %1282 = vmatprep.mubr.f32.mxu0 %v6579_v0  ;;  %1500 = vmatprep.mubr.f32.mxu1 %v6579_v0 }
 0x168   :  { %4859 = vmatmul.mubr.msk.f32.gmra.mrb[42].mxu0 %vm159_vm0, %v6792_v39  ;;  %4875 = vmatmul.mubr.msk.f32.gmra.mrb[34].mxu1 %vm159_vm0, %v6947_v10 }
 0x169   :  { %1288 = vmatprep.mubr.f32.mxu0 %v6579_v0  ;;  %1506 = vmatprep.mubr.f32.mxu1 %v6579_v0 }
 0x16c   :  { %4860 = vmatmul.mubr.msk.f32.gmra.mrb[44].mxu0 %vm159_vm0, %v6826_v49  ;;  %4876 = vmatmul.mubr.msk.f32.gmra.mrb[36].mxu1 %vm159_vm0, %v6958_v11 }
 0x16d   :  { %1294 = vmatprep.mubr.f32.mxu0 %v6579_v0  ;;  %1512 = vmatprep.mubr.f32.mxu1 %v6579_v0 }
 0x170   :  { %4861 = vmatmul.mubr.msk.f32.gmra.mrb[46].mxu0 %vm159_vm0, %v7360_v36  ;;  %4877 = vmatmul.mubr.msk.f32.gmra.mrb[38].mxu1 %vm159_vm0, %v6969_v12 }
 0x171   :  { %1518 = vmatprep.mubr.f32.mxu1 %v6579_v0  ;;  %1691 = vmatprep.mubr.f32.mxu0 %v6579_v0 }
 0x174   :  { %4878 = vmatmul.mubr.msk.f32.gmra.mrb[40].mxu1 %vm159_vm0, %v6980_v13  ;;  %4894 = vmatmul.mubr.msk.f32.vlgmr.msra.gmra.mrb[0].mxu0 %vm159_vm0, %v6787_v38 }
 0x175   :  { %1524 = vmatprep.mubr.f32.mxu1 %v6579_v0  ;;  %1697 = vmatprep.mubr.f32.mxu0 %v6579_v0 }
 0x176   :  { %5408 = vmatpush1.bf16.msra.mxu0 %v5407_v43  ;;  %v6442_v43 = vld [vmem:[%s8459_s0 + $0x48] sm:$0xff] }
 0x177   :  { %5410 = vmatprep.subr.bf16.mxu0 %v5409_v44  ;;  %v6448_v44 = vld [vmem:[%s8459_s0 + $0x78] sm:$0xff] }
 0x178   :  { %4879 = vmatmul.mubr.msk.f32.gmra.mrb[42].mxu1 %vm159_vm0, %v6991_v14  ;;  %4895 = vmatmul.mubr.msk.f32.gmra.mrb[2].mxu0 %vm159_vm0, %v6821_v48 }
 0x179   :  { %1530 = vmatprep.mubr.f32.mxu1 %v6579_v0  ;;  %1703 = vmatprep.mubr.f32.mxu0 %v6579_v0 }
 0x17a   :  { %5412 = vmatpush1.bf16.msra.mxu0 %v5411_v20  ;;  %v6451_v20 = vld [vmem:[%s8459_s0 + $0x90] sm:$0xff] }
 0x17b   :  { %5421 = vmatprep.subr.bf16.mxu0 %v6580_v58 }
 0x17c   :  { %4880 = vmatmul.mubr.msk.f32.gmra.mrb[44].mxu1 %vm159_vm0, %v7002_v15  ;;  %4896 = vmatmul.mubr.msk.f32.gmra.mrb[4].mxu0 %vm159_vm0, %v6837_v55 }
 0x17d   :  { %1536 = vmatprep.mubr.f32.mxu1 %v6579_v0  ;;  %1709 = vmatprep.mubr.f32.mxu0 %v6579_v0 }
 0x180   :  { %4881 = vmatmul.mubr.msk.f32.gmra.mrb[46].mxu1 %vm159_vm0, %v6748_v21  ;;  %4897 = vmatmul.mubr.msk.f32.gmra.mrb[6].mxu0 %vm159_vm0, %v6847_v62  ;;  %v2420_v21 = vld [vmem:[#allocation2 + $0x100] sm:$0xff] }
 0x181   :  { %1542 = vmatprep.mubr.f32.mxu1 %v6579_v0  ;;  %1715 = vmatprep.mubr.f32.mxu0 %v6579_v0  ;;  %v5415_v52 = vpack.c.bf16 %v2422_v47, %v2420_v21  ;;  %v2899_v21 = vld [vmem:[#allocation4 + $0x100] sm:$0xff]  ;;  %v2900_v47 = vld [vmem:[#allocation4 + $0x108] sm:$0xff] }
 0x184   :  { %4882 = vmatmul.mubr.msk.f32.gmra.mrb[48].mxu1 %vm159_vm0, %v6772_v32  ;;  %4898 = vmatmul.mubr.msk.f32.gmra.mrb[8].mxu0 %vm159_vm0, %v6859_v2 }
 0x185   :  { %1548 = vmatprep.mubr.f32.mxu1 %v6579_v0  ;;  %1721 = vmatprep.mubr.f32.mxu0 %v6579_v0 }
 0x188   :  { %4883 = vmatmul.mubr.msk.f32.gmra.mrb[50].mxu1 %vm159_vm0, %v6792_v39  ;;  %4899 = vmatmul.mubr.msk.f32.gmra.mrb[10].mxu0 %vm159_vm0, %v6870_v3 }
 0x189   :  { %1554 = vmatprep.mubr.f32.mxu1 %v6579_v0  ;;  %1727 = vmatprep.mubr.f32.mxu0 %v6579_v0 }
 0x18c   :  { %4884 = vmatmul.mubr.msk.f32.gmra.mrb[52].mxu1 %vm159_vm0, %v6826_v49  ;;  %4900 = vmatmul.mubr.msk.f32.gmra.mrb[12].mxu0 %vm159_vm0, %v6881_v4 }
 0x18d   :  { %1560 = vmatprep.mubr.f32.mxu1 %v6579_v0  ;;  %1733 = vmatprep.mubr.f32.mxu0 %v6579_v0 }
 0x190   :  { %4885 = vmatmul.mubr.msk.f32.gmra.mrb[54].mxu1 %vm159_vm0, %v7360_v36  ;;  %4901 = vmatmul.mubr.msk.f32.gmra.mrb[14].mxu0 %vm159_vm0, %v6892_v5 }
 0x191   :  { %1739 = vmatprep.mubr.f32.mxu0 %v6579_v0  ;;  %1957 = vmatprep.mubr.f32.mxu1 %v6579_v0 }
 0x194   :  { %4902 = vmatmul.mubr.msk.f32.gmra.mrb[16].mxu0 %vm159_vm0, %v6903_v6  ;;  %4918 = vmatmul.mubr.msk.f32.vlgmr.msra.gmra.mrb[8].mxu1 %vm159_vm0, %v6787_v38  ;;  %v7497_v38 = vld [vmem:[%s8459_s0 + $0xa8] sm:$0xff] }
 0x195   :  { %5416 = vmatpush1.bf16.msra.mxu1 %v5415_v52  ;;  %1745 = vmatprep.mubr.f32.mxu0 %v6579_v0  ;;  %v5434_v52 = vpack.c.bf16 %v2900_v47, %v2899_v21 }
 0x196   :  { %1963 = vmatprep.mubr.f32.mxu1 %v6579_v0  ;;  %5418 = vmatprep.subr.bf16.mxu1 %v5417_v53  ;;  %v3162_v53 = vld [vmem:[#allocation6 + $0x108] sm:$0xff] }
 0x197   :  { %v5506_v54 = vpack.c.bf16 %v3162_v53, %v3161_v50 }
 0x198   :  { %4903 = vmatmul.mubr.msk.f32.gmra.mrb[18].mxu0 %vm159_vm0, %v6914_v7  ;;  %4919 = vmatmul.mubr.msk.f32.gmra.mrb[10].mxu1 %vm159_vm0, %v6821_v48 }
 0x199   :  { %1751 = vmatprep.mubr.f32.mxu0 %v6579_v0  ;;  %1969 = vmatprep.mubr.f32.mxu1 %v6579_v0 }
 0x19a   :  { %5420 = vmatpush1.bf16.msra.mxu1 %v5419_v57  ;;  %v6453_v57 = vld [vmem:[%s8459_s0 + $0xa0] sm:$0xff] }
 0x19b   :  { %5493 = vmatprep.subr.bf16.mxu1 %v6580_v58 }
 0x19c   :  { %4904 = vmatmul.mubr.msk.f32.gmra.mrb[20].mxu0 %vm159_vm0, %v6925_v8  ;;  %4920 = vmatmul.mubr.msk.f32.gmra.mrb[12].mxu1 %vm159_vm0, %v6837_v55 }
 0x19d   :  { %1757 = vmatprep.mubr.f32.mxu0 %v6579_v0  ;;  %1975 = vmatprep.mubr.f32.mxu1 %v6579_v0 }
 0x1a0   :  { %4905 = vmatmul.mubr.msk.f32.gmra.mrb[22].mxu0 %vm159_vm0, %v6936_v9  ;;  %4921 = vmatmul.mubr.msk.f32.gmra.mrb[14].mxu1 %vm159_vm0, %v6847_v62 }
 0x1a1   :  { %1763 = vmatprep.mubr.f32.mxu0 %v6579_v0  ;;  %1981 = vmatprep.mubr.f32.mxu1 %v6579_v0 }
 0x1a4   :  { %4906 = vmatmul.mubr.msk.f32.gmra.mrb[24].mxu0 %vm159_vm0, %v6947_v10  ;;  %4922 = vmatmul.mubr.msk.f32.gmra.mrb[16].mxu1 %vm159_vm0, %v6859_v2 }
 0x1a5   :  { %1769 = vmatprep.mubr.f32.mxu0 %v6579_v0  ;;  %1987 = vmatprep.mubr.f32.mxu1 %v6579_v0 }
 0x1a8   :  { %4907 = vmatmul.mubr.msk.f32.gmra.mrb[26].mxu0 %vm159_vm0, %v6958_v11  ;;  %4923 = vmatmul.mubr.msk.f32.gmra.mrb[18].mxu1 %vm159_vm0, %v6870_v3 }
 0x1a9   :  { %1775 = vmatprep.mubr.f32.mxu0 %v6579_v0  ;;  %1993 = vmatprep.mubr.f32.mxu1 %v6579_v0 }
 0x1ac   :  { %4908 = vmatmul.mubr.msk.f32.gmra.mrb[28].mxu0 %vm159_vm0, %v6969_v12  ;;  %4924 = vmatmul.mubr.msk.f32.gmra.mrb[20].mxu1 %vm159_vm0, %v6881_v4 }
 0x1ad   :  { %1781 = vmatprep.mubr.f32.mxu0 %v6579_v0  ;;  %1999 = vmatprep.mubr.f32.mxu1 %v6579_v0 }
 0x1b0   :  { %4909 = vmatmul.mubr.msk.f32.gmra.mrb[30].mxu0 %vm159_vm0, %v6980_v13  ;;  %4925 = vmatmul.mubr.msk.f32.gmra.mrb[22].mxu1 %vm159_vm0, %v6892_v5 }
 0x1b1   :  { %1787 = vmatprep.mubr.f32.mxu0 %v6579_v0  ;;  %2005 = vmatprep.mubr.f32.mxu1 %v6579_v0 }
 0x1b4   :  { %4910 = vmatmul.mubr.msk.f32.gmra.mrb[32].mxu0 %vm159_vm0, %v6991_v14  ;;  %4926 = vmatmul.mubr.msk.f32.gmra.mrb[24].mxu1 %vm159_vm0, %v6903_v6 }
 0x1b5   :  { %1793 = vmatprep.mubr.f32.mxu0 %v6579_v0  ;;  %2011 = vmatprep.mubr.f32.mxu1 %v6579_v0 }
 0x1b8   :  { %4911 = vmatmul.mubr.msk.f32.gmra.mrb[34].mxu0 %vm159_vm0, %v7002_v15  ;;  %4927 = vmatmul.mubr.msk.f32.gmra.mrb[26].mxu1 %vm159_vm0, %v6914_v7 }
 0x1b9   :  { %1799 = vmatprep.mubr.f32.mxu0 %v6579_v0  ;;  %2017 = vmatprep.mubr.f32.mxu1 %v6579_v0 }
 0x1bc   :  { %4912 = vmatmul.mubr.msk.f32.gmra.mrb[36].mxu0 %vm159_vm0, %v7497_v38  ;;  %4928 = vmatmul.mubr.msk.f32.gmra.mrb[28].mxu1 %vm159_vm0, %v6925_v8 }
 0x1bd   :  { %1805 = vmatprep.mubr.f32.mxu0 %v6579_v0  ;;  %2023 = vmatprep.mubr.f32.mxu1 %v6579_v0 }
 0x1c0   :  { %4913 = vmatmul.mubr.msk.f32.gmra.mrb[38].mxu0 %vm159_vm0, %v6772_v32  ;;  %4929 = vmatmul.mubr.msk.f32.gmra.mrb[30].mxu1 %vm159_vm0, %v6936_v9  ;;  %v7532_v32 = vld [vmem:[%s8459_s0 + $0xd0] sm:$0xff] }
 0x1c1   :  { %1811 = vmatprep.mubr.f32.mxu0 %v6579_v0  ;;  %2029 = vmatprep.mubr.f32.mxu1 %v6579_v0 }
 0x1c4   :  { %4914 = vmatmul.mubr.msk.f32.gmra.mrb[40].mxu0 %vm159_vm0, %v6792_v39  ;;  %4930 = vmatmul.mubr.msk.f32.gmra.mrb[32].mxu1 %vm159_vm0, %v6947_v10  ;;  %v2891_v39 = vld [vmem:[#allocation4 + $0xc0] sm:$0xff] }
 0x1c5   :  { %1817 = vmatprep.mubr.f32.mxu0 %v6579_v0  ;;  %2035 = vmatprep.mubr.f32.mxu1 %v6579_v0 }
 0x1c8   :  { %4915 = vmatmul.mubr.msk.f32.gmra.mrb[42].mxu0 %vm159_vm0, %v6826_v49  ;;  %4931 = vmatmul.mubr.msk.f32.gmra.mrb[34].mxu1 %vm159_vm0, %v6958_v11  ;;  %v2892_v49 = vld [vmem:[#allocation4 + $0xc8] sm:$0xff] }
 0x1c9   :  { %1823 = vmatprep.mubr.f32.mxu0 %v6579_v0  ;;  %2041 = vmatprep.mubr.f32.mxu1 %v6579_v0  ;;  %v5422_v59 = vpack.c.bf16 %v2892_v49, %v2891_v39  ;;  %v2901_v39 = vld [vmem:[#allocation4 + $0x110] sm:$0xff]  ;;  %v2902_v49 = vld [vmem:[#allocation4 + $0x118] sm:$0xff] }
 0x1ca   :  { %v5437_v60 = vpack.c.bf16 %v2902_v49, %v2901_v39 }
 0x1cc   :  { %4916 = vmatmul.mubr.msk.f32.gmra.mrb[44].mxu0 %vm159_vm0, %v7360_v36  ;;  %4932 = vmatmul.mubr.msk.f32.gmra.mrb[36].mxu1 %vm159_vm0, %v6969_v12 }
 0x1cd   :  { %1829 = vmatprep.mubr.f32.mxu0 %v6579_v0  ;;  %2047 = vmatprep.mubr.f32.mxu1 %v6579_v0 }
 0x1d0   :  { %4917 = vmatmul.mubr.msk.f32.gmra.mrb[46].mxu0 %vm159_vm0, %v7532_v32  ;;  %4933 = vmatmul.mubr.msk.f32.gmra.mrb[38].mxu1 %vm159_vm0, %v6980_v13 }
 0x1d1   :  { %2053 = vmatprep.mubr.f32.mxu1 %v6579_v0  ;;  %2226 = vmatprep.mubr.f32.mxu0 %v6579_v0 }
 0x1d4   :  { %4934 = vmatmul.mubr.msk.f32.gmra.mrb[40].mxu1 %vm159_vm0, %v6991_v14  ;;  %4950 = vmatmul.mubr.msk.f32.vlgmr.msra.gmra.mrb[0].mxu0 %vm159_vm0, %v6821_v48  ;;  %v5428_v48 = vpack.c.bf16 %v2896_v16, %v2895_v1  ;;  %v2903_v1 = vld [vmem:[#allocation4 + $0x120] sm:$0xff]  ;;  %v2904_v16 = vld [vmem:[#allocation4 + $0x128] sm:$0xff] }
 0x1d5   :  { %2059 = vmatprep.mubr.f32.mxu1 %v6579_v0  ;;  %2232 = vmatprep.mubr.f32.mxu0 %v6579_v0 }
 0x1d6   :  { %5423 = vmatpush1.bf16.msra.mxu0 %v5422_v59  ;;  %v3163_v59 = vld [vmem:[#allocation6 + $0x110] sm:$0xff] }
 0x1d7   :  { %5424 = vmatprep.subr.bf16.mxu0 %v6580_v58 }
 0x1d8   :  { %4935 = vmatmul.mubr.msk.f32.gmra.mrb[42].mxu1 %vm159_vm0, %v7002_v15  ;;  %4951 = vmatmul.mubr.msk.f32.gmra.mrb[2].mxu0 %vm159_vm0, %v6837_v55  ;;  %v5431_v55 = vpack.c.bf16 %v2898_v18, %v2897_v17  ;;  %v5440_v17 = vpack.c.bf16 %v2904_v16, %v2903_v1  ;;  %v3166_v18 = vld [vmem:[#allocation6 + $0x128] sm:$0xff] }
 0x1d9   :  { %2065 = vmatprep.mubr.f32.mxu1 %v6579_v0  ;;  %2238 = vmatprep.mubr.f32.mxu0 %v6579_v0 }
 0x1da   :  { %5426 = vmatpush1.bf16.msra.mxu0 %v5425_v63  ;;  %v5509_v63 = vpack.c.bf16 %v3164_v61, %v3163_v59 }
 0x1db   :  { %5427 = vmatprep.subr.bf16.mxu0 %v6580_v58 }
 0x1dc   :  { %4936 = vmatmul.mubr.msk.f32.gmra.mrb[44].mxu1 %vm159_vm0, %v7497_v38  ;;  %4952 = vmatmul.mubr.msk.f32.gmra.mrb[4].mxu0 %vm159_vm0, %v6847_v62  ;;  %v7578_v62 = vld [vmem:[%s8459_s0 + $0xb8] sm:$0xff] }
 0x1dd   :  { %2071 = vmatprep.mubr.f32.mxu1 %v6579_v0  ;;  %2244 = vmatprep.mubr.f32.mxu0 %v6579_v0 }
 0x1de   :  { %5429 = vmatpush1.bf16.msra.mxu0 %v5428_v48  ;;  %v3165_v48 = vld [vmem:[#allocation6 + $0x120] sm:$0xff] }
 0x1df   :  { %5430 = vmatprep.subr.bf16.mxu0 %v6580_v58 }
 0x1e0   :  { %4937 = vmatmul.mubr.msk.f32.gmra.mrb[46].mxu1 %vm159_vm0, %v7566_v19  ;;  %4953 = vmatmul.mubr.msk.f32.gmra.mrb[6].mxu0 %vm159_vm0, %v6859_v2  ;;  %v7589_v2 = vld [vmem:[%s8459_s0 + $0xc0] sm:$0xff] }
 0x1e1   :  { %2077 = vmatprep.mubr.f32.mxu1 %v6579_v0  ;;  %2250 = vmatprep.mubr.f32.mxu0 %v6579_v0 }
 0x1e2   :  { %5432 = vmatpush1.bf16.msra.mxu0 %v5431_v55  ;;  %v5512_v55 = vpack.c.bf16 %v3166_v18, %v3165_v48 }
 0x1e3   :  { %5433 = vmatprep.subr.bf16.mxu0 %v6580_v58 }
 0x1e4   :  { %4938 = vmatmul.mubr.msk.f32.gmra.mrb[48].mxu1 %vm159_vm0, %v7578_v62  ;;  %4954 = vmatmul.mubr.msk.f32.gmra.mrb[8].mxu0 %vm159_vm0, %v6870_v3  ;;  %v3153_v3 = vld [vmem:[#allocation6 + $0xc0] sm:$0xff] }
 0x1e5   :  { %2083 = vmatprep.mubr.f32.mxu1 %v6579_v0  ;;  %2256 = vmatprep.mubr.f32.mxu0 %v6579_v0 }
 0x1e6   :  { %5435 = vmatpush1.bf16.msra.mxu0 %v5434_v52 }
 0x1e7   :  { %5436 = vmatprep.subr.bf16.mxu0 %v6580_v58 }
 0x1e8   :  { %4939 = vmatmul.mubr.msk.f32.gmra.mrb[50].mxu1 %vm159_vm0, %v7589_v2  ;;  %4955 = vmatmul.mubr.msk.f32.gmra.mrb[10].mxu0 %vm159_vm0, %v6881_v4  ;;  %v5494_v4 = vpack.c.bf16 %v3154_v22, %v3153_v3  ;;  %v3167_v3 = vld [vmem:[#allocation6 + $0x130] sm:$0xff] }
 0x1e9   :  { %2089 = vmatprep.mubr.f32.mxu1 %v6579_v0  ;;  %2262 = vmatprep.mubr.f32.mxu0 %v6579_v0 }
 0x1ea   :  { %5438 = vmatpush1.bf16.msra.mxu0 %v5437_v60 }
 0x1eb   :  { %5439 = vmatprep.subr.bf16.mxu0 %v6580_v58 }
 0x1ec   :  { %4940 = vmatmul.mubr.msk.f32.gmra.mrb[52].mxu1 %vm159_vm0, %v7360_v36  ;;  %4956 = vmatmul.mubr.msk.f32.gmra.mrb[12].mxu0 %vm159_vm0, %v6892_v5  ;;  %v6437_v5 = vld [vmem:[%s8459_s0 + $0x20] sm:$0xff] }
 0x1ed   :  { %2095 = vmatprep.mubr.f32.mxu1 %v6579_v0  ;;  %2268 = vmatprep.mubr.f32.mxu0 %v6579_v0 }
 0x1ee   :  { %5441 = vmatpush1.bf16.msra.mxu0 %v5440_v17 }
 0x1ef   :  { %5442 = vmatprep.subr.bf16.mxu0 %v6580_v58 }
 0x1f0   :  { %4941 = vmatmul.mubr.msk.f32.gmra.mrb[54].mxu1 %vm159_vm0, %v7532_v32  ;;  %4957 = vmatmul.mubr.msk.f32.gmra.mrb[14].mxu0 %vm159_vm0, %v6903_v6  ;;  %v5497_v6 = vpack.c.bf16 %v3156_v24, %v3155_v23 }
 0x1f1   :  { %2274 = vmatprep.mubr.f32.mxu0 %v6579_v0  ;;  %2492 = vmatprep.mubr.f32.mxu1 %v6579_v0 }
 0x1f4   :  { %4958 = vmatmul.mubr.msk.f32.gmra.mrb[16].mxu0 %vm159_vm0, %v6914_v7  ;;  %4974 = vmatmul.mubr.msk.f32.vlgmr.msra.gmra.mrb[8].mxu1 %vm159_vm0, %v6437_v5  ;;  %v6438_v7 = vld [vmem:[%s8459_s0 + $0x28] sm:$0xff]  ;;  %v3169_v5 = vld [vmem:[#allocation6 + $0x140] sm:$0xff] }
 0x1f5   :  { %2280 = vmatprep.mubr.f32.mxu0 %v6579_v0  ;;  %2498 = vmatprep.mubr.f32.mxu1 %v6579_v0 }
 0x1f6   :  { %5495 = vmatpush1.bf16.msra.mxu1 %v5494_v4  ;;  %v3168_v4 = vld [vmem:[#allocation6 + $0x138] sm:$0xff] }
 0x1f7   :  { %5496 = vmatprep.subr.bf16.mxu1 %v6580_v58  ;;  %v5515_v23 = vpack.c.bf16 %v3168_v4, %v3167_v3 }
 0x1f8   :  { %4959 = vmatmul.mubr.msk.f32.gmra.mrb[18].mxu0 %vm159_vm0, %v6925_v8  ;;  %4975 = vmatmul.mubr.msk.f32.gmra.mrb[10].mxu1 %vm159_vm0, %v6438_v7  ;;  %v6439_v8 = vld [vmem:[%s8459_s0 + $0x30] sm:$0xff] }
 0x1f9   :  { %2286 = vmatprep.mubr.f32.mxu0 %v6579_v0  ;;  %2504 = vmatprep.mubr.f32.mxu1 %v6579_v0  ;;  %v3171_v7 = vld [vmem:[#allocation6 + $0x150] sm:$0xff] }
 0x1fa   :  { %5498 = vmatpush1.bf16.msra.mxu1 %v5497_v6  ;;  %v3170_v6 = vld [vmem:[#allocation6 + $0x148] sm:$0xff] }
 0x1fb   :  { %5499 = vmatprep.subr.bf16.mxu1 %v6580_v58  ;;  %v5518_v25 = vpack.c.bf16 %v3170_v6, %v3169_v5 }
 0x1fc   :  { %4960 = vmatmul.mubr.msk.f32.gmra.mrb[20].mxu0 %vm159_vm0, %v6936_v9  ;;  %4976 = vmatmul.mubr.msk.f32.gmra.mrb[12].mxu1 %vm159_vm0, %v6439_v8  ;;  %v6440_v9 = vld [vmem:[%s8459_s0 + $0x38] sm:$0xff]  ;;  %v2912_v8 = vld [vmem:[#allocation4 + $0x168] sm:$0xff] }
 0x1fd   :  { %2292 = vmatprep.mubr.f32.mxu0 %v6579_v0  ;;  %2510 = vmatprep.mubr.f32.mxu1 %v6579_v0 }
 0x1fe   :  { %5501 = vmatpush1.bf16.msra.mxu1 %v5500_v37  ;;  %v3172_v37 = vld [vmem:[#allocation6 + $0x158] sm:$0xff] }
 0x1ff   :  { %5502 = vmatprep.subr.bf16.mxu1 %v6580_v58  ;;  %v5521_v40 = vpack.c.bf16 %v3172_v37, %v3171_v7 }
 0x200   :  { %4961 = vmatmul.mubr.msk.f32.gmra.mrb[22].mxu0 %vm159_vm0, %v6947_v10  ;;  %4977 = vmatmul.mubr.msk.f32.gmra.mrb[14].mxu1 %vm159_vm0, %v6440_v9  ;;  %v6441_v10 = vld [vmem:[%s8459_s0 + $0x40] sm:$0xff]  ;;  %v5452_v9 = vpack.c.bf16 %v2912_v8, %v2911_v41 }
 0x201   :  { %2298 = vmatprep.mubr.f32.mxu0 %v6579_v0  ;;  %2516 = vmatprep.mubr.f32.mxu1 %v6579_v0  ;;  %v2782_v8 = vld [vmem:[%s8462_s3] sm:$0x3] }
 0x202   :  { %5504 = vmatpush1.bf16.msra.mxu1 %v5503_v42  ;;  %v3173_v42 = vld [vmem:[#allocation6 + $0x160] sm:$0xff] }
 0x203   :  { %5505 = vmatprep.subr.bf16.mxu1 %v6580_v58 }
 0x204   :  { %4962 = vmatmul.mubr.msk.f32.gmra.mrb[24].mxu0 %vm159_vm0, %v6958_v11  ;;  %4978 = vmatmul.mubr.msk.f32.gmra.mrb[16].mxu1 %vm159_vm0, %v6441_v10  ;;  %v6443_v11 = vld [vmem:[%s8459_s0 + $0x50] sm:$0xff]  ;;  %v3174_v10 = vld [vmem:[#allocation6 + $0x168] sm:$0xff] }
 0x205   :  { %2304 = vmatprep.mubr.f32.mxu0 %v6579_v0  ;;  %2522 = vmatprep.mubr.f32.mxu1 %v6579_v0 }
 0x206   :  { %5507 = vmatpush1.bf16.msra.mxu1 %v5506_v54 }
 0x207   :  { %5508 = vmatprep.subr.bf16.mxu1 %v6580_v58 }
 0x208   :  { %4963 = vmatmul.mubr.msk.f32.gmra.mrb[26].mxu0 %vm159_vm0, %v6969_v12  ;;  %4979 = vmatmul.mubr.msk.f32.gmra.mrb[18].mxu1 %vm159_vm0, %v6442_v43  ;;  %v6444_v12 = vld [vmem:[%s8459_s0 + $0x58] sm:$0xff]  ;;  %v5524_v43 = vpack.c.bf16 %v3174_v10, %v3173_v42 }
 0x209   :  { %2310 = vmatprep.mubr.f32.mxu0 %v6579_v0  ;;  %2528 = vmatprep.mubr.f32.mxu1 %v6579_v0 }
 0x20a   :  { %5510 = vmatpush1.bf16.msra.mxu1 %v5509_v63 }
 0x20b   :  { %5511 = vmatprep.subr.bf16.mxu1 %v6580_v58 }
 0x20c   :  { %4964 = vmatmul.mubr.msk.f32.gmra.mrb[28].mxu0 %vm159_vm0, %v6980_v13  ;;  %4980 = vmatmul.mubr.msk.f32.gmra.mrb[20].mxu1 %vm159_vm0, %v6443_v11  ;;  %v6445_v13 = vld [vmem:[%s8459_s0 + $0x60] sm:$0xff]  ;;  %v2913_v11 = vld [vmem:[#allocation4 + $0x170] sm:$0xff] }
 0x20d   :  { %2316 = vmatprep.mubr.f32.mxu0 %v6579_v0  ;;  %2534 = vmatprep.mubr.f32.mxu1 %v6579_v0 }
 0x20e   :  { %5513 = vmatpush1.bf16.msra.mxu1 %v5512_v55 }
 0x20f   :  { %5514 = vmatprep.subr.bf16.mxu1 %v6580_v58 }
 0x210   :  { %4965 = vmatmul.mubr.msk.f32.gmra.mrb[30].mxu0 %vm159_vm0, %v6991_v14  ;;  %4981 = vmatmul.mubr.msk.f32.gmra.mrb[22].mxu1 %vm159_vm0, %v6444_v12  ;;  %v6446_v14 = vld [vmem:[%s8459_s0 + $0x68] sm:$0xff]  ;;  %v2914_v12 = vld [vmem:[#allocation4 + $0x178] sm:$0xff] }
 0x211   :  { %2322 = vmatprep.mubr.f32.mxu0 %v6579_v0  ;;  %2540 = vmatprep.mubr.f32.mxu1 %v6579_v0 }
 0x212   :  { %5516 = vmatpush1.bf16.msra.mxu1 %v5515_v23 }
 0x213   :  { %5517 = vmatprep.subr.bf16.mxu1 %v6580_v58 }
 0x214   :  { %4966 = vmatmul.mubr.msk.f32.gmra.mrb[32].mxu0 %vm159_vm0, %v7002_v15  ;;  %4982 = vmatmul.mubr.msk.f32.gmra.mrb[24].mxu1 %vm159_vm0, %v6445_v13  ;;  %v6447_v15 = vld [vmem:[%s8459_s0 + $0x70] sm:$0xff] }
 0x215   :  { %2328 = vmatprep.mubr.f32.mxu0 %v6579_v0  ;;  %2546 = vmatprep.mubr.f32.mxu1 %v6579_v0  ;;  %v3175_v13 = vld [vmem:[#allocation6 + $0x170] sm:$0xff] }
 0x216   :  { %5519 = vmatpush1.bf16.msra.mxu1 %v5518_v25 }
 0x217   :  { %5520 = vmatprep.subr.bf16.mxu1 %v6580_v58 }
 0x218   :  { %4967 = vmatmul.mubr.msk.f32.gmra.mrb[34].mxu0 %vm159_vm0, %v7497_v38  ;;  %4983 = vmatmul.mubr.msk.f32.gmra.mrb[26].mxu1 %vm159_vm0, %v6446_v14  ;;  %v5455_v14 = vpack.c.bf16 %v2914_v12, %v2913_v11 }
 0x219   :  { %2334 = vmatprep.mubr.f32.mxu0 %v6579_v0  ;;  %2552 = vmatprep.mubr.f32.mxu1 %v6579_v0 }
 0x21a   :  { %5522 = vmatpush1.bf16.msra.mxu1 %v5521_v40 }
 0x21b   :  { %5523 = vmatprep.subr.bf16.mxu1 %v6580_v58 }
 0x21c   :  { %4968 = vmatmul.mubr.msk.f32.gmra.mrb[36].mxu0 %vm159_vm0, %v7566_v19  ;;  %4984 = vmatmul.mubr.msk.f32.gmra.mrb[28].mxu1 %vm159_vm0, %v6447_v15  ;;  %v3176_v15 = vld [vmem:[#allocation6 + $0x178] sm:$0xff] }
 0x21d   :  { %2340 = vmatprep.mubr.f32.mxu0 %v6579_v0  ;;  %2558 = vmatprep.mubr.f32.mxu1 %v6579_v0 }
 0x21e   :  { %5525 = vmatpush1.bf16.msra.mxu1 %v5524_v43 }
 0x21f   :  { %5526 = vmatprep.subr.bf16.mxu1 %v6580_v58 }
 0x220   :  { %4969 = vmatmul.mubr.msk.f32.gmra.mrb[38].mxu0 %vm159_vm0, %v7578_v62  ;;  %4985 = vmatmul.mubr.msk.f32.gmra.mrb[30].mxu1 %vm159_vm0, %v6448_v44  ;;  %v5527_v44 = vpack.c.bf16 %v3176_v15, %v3175_v13 }
 0x221   :  { %2346 = vmatprep.mubr.f32.mxu0 %v6579_v0  ;;  %2564 = vmatprep.mubr.f32.mxu1 %v6579_v0 }
 0x222   :  { %5528 = vmatpush1.bf16.msra.mxu1 %v5527_v44 }
 0x223   :  { %5529 = vmatprep.subr.bf16.mxu1 %v6580_v58 }
 0x224   :  { %4970 = vmatmul.mubr.msk.f32.gmra.mrb[40].mxu0 %vm159_vm0, %v7589_v2  ;;  %4986 = vmatmul.mubr.msk.f32.gmra.mrb[32].mxu1 %vm159_vm0, %v6449_v45 }
 0x225   :  { %2352 = vmatprep.mubr.f32.mxu0 %v6579_v0  ;;  %2570 = vmatprep.mubr.f32.mxu1 %v6579_v0 }
 0x228   :  { %4971 = vmatmul.mubr.msk.f32.gmra.mrb[42].mxu0 %vm159_vm0, %v7360_v36  ;;  %4987 = vmatmul.mubr.msk.f32.gmra.mrb[34].mxu1 %vm159_vm0, %v6450_v46 }
 0x229   :  { %2358 = vmatprep.mubr.f32.mxu0 %v6579_v0  ;;  %2576 = vmatprep.mubr.f32.mxu1 %v6579_v0 }
 0x22c   :  { %4972 = vmatmul.mubr.msk.f32.gmra.mrb[44].mxu0 %vm159_vm0, %v7532_v32  ;;  %4988 = vmatmul.mubr.msk.f32.gmra.mrb[36].mxu1 %vm159_vm0, %v6451_v20 }
 0x22d   :  { %2364 = vmatprep.mubr.f32.mxu0 %v6579_v0  ;;  %2582 = vmatprep.mubr.f32.mxu1 %v6579_v0 }
 0x230   :  { %4973 = vmatmul.mubr.msk.f32.gmra.mrb[46].mxu0 %vm159_vm0, %v7736_v51  ;;  %4989 = vmatmul.mubr.msk.f32.gmra.mrb[38].mxu1 %vm159_vm0, %v6452_v56 }
 0x231   :  { %2588 = vmatprep.mubr.f32.mxu1 %v6579_v0 }
 0x234   :  { %4990 = vmatmul.mubr.msk.f32.gmra.mrb[40].mxu1 %vm159_vm0, %v6453_v57 }
 0x235   :  { %2594 = vmatprep.mubr.f32.mxu1 %v6579_v0 }
 0x238   :  { %4991 = vmatmul.mubr.msk.f32.gmra.mrb[42].mxu1 %vm159_vm0, %v7497_v38  ;;  %v2905_v38 = vld [vmem:[#allocation4 + $0x130] sm:$0xff] }
 0x239   :  { %2600 = vmatprep.mubr.f32.mxu1 %v6579_v0 }
 0x23c   :  { %4992 = vmatmul.mubr.msk.f32.gmra.mrb[44].mxu1 %vm159_vm0, %v7566_v19  ;;  %v2906_v19 = vld [vmem:[#allocation4 + $0x138] sm:$0xff] }
 0x23d   :  { %2606 = vmatprep.mubr.f32.mxu1 %v6579_v0  ;;  %v5443_v22 = vpack.c.bf16 %v2906_v19, %v2905_v38  ;;  %v2784_v38 = vlaneseq }
 0x23f   :  { %5444 = vmatpush1.bf16.msra.mxu0 %v5443_v22 }
 0x240   :  { %4993 = vmatmul.mubr.msk.f32.gmra.mrb[46].mxu1 %vm159_vm0, %v7578_v62  ;;  %5445 = vmatprep.subr.bf16.mxu0 %v6580_v58  ;;  %v2907_v62 = vld [vmem:[#allocation4 + $0x140] sm:$0xff] }
 0x241   :  { %2612 = vmatprep.mubr.f32.mxu1 %v6579_v0 }
 0x244   :  { %4994 = vmatmul.mubr.msk.f32.gmra.mrb[48].mxu1 %vm159_vm0, %v7589_v2  ;;  %v2908_v2 = vld [vmem:[#allocation4 + $0x148] sm:$0xff] }
 0x245   :  { %2618 = vmatprep.mubr.f32.mxu1 %v6579_v0  ;;  %v5446_v24 = vpack.c.bf16 %v2908_v2, %v2907_v62  ;;  %v2785_v2 = vshrl.u32 %v2784_v38, 7 }
 0x247   :  { %5447 = vmatpush1.bf16.msra.mxu0 %v5446_v24  ;;  %v2786_v37 = vsub.s32 0, %v2785_v2  ;;  %v2790_v42 = vsub.s32 1, %v2785_v2 }
 0x248   :  { %4995 = vmatmul.mubr.msk.f32.gmra.mrb[50].mxu1 %vm159_vm0, %v7360_v36  ;;  %5448 = vmatprep.subr.bf16.mxu0 %v6580_v58  ;;  %v2909_v36 = vld [vmem:[#allocation4 + $0x150] sm:$0xff] }
 0x249   :  { %2624 = vmatprep.mubr.f32.mxu1 %v6579_v0  ;;  %v7832_v13 = vrot.slane %v2782_v8, %v2786_v37  ;;  %v2845_v37 = vld [vmem:[#allocation4 + $0x18] sm:$0xff] }
 0x24c   :  { %4996 = vmatmul.mubr.msk.f32.gmra.mrb[52].mxu1 %vm159_vm0, %v7532_v32  ;;  %v5449_v32 = vpack.c.bf16 %v2910_v27, %v2909_v36 }
 0x24d   :  { %2630 = vmatprep.mubr.f32.mxu1 %v6579_v0 }
 0x24e   :  { %5450 = vmatpush1.bf16.msra.mxu0 %v5449_v32 }
 0x24f   :  { %5451 = vmatprep.subr.bf16.mxu0 %v6580_v58 }
 0x250   :  { %4997 = vmatmul.mubr.msk.f32.gmra.mrb[54].mxu1 %vm159_vm0, %v7736_v51 }
 0x252   :  { %5453 = vmatpush1.bf16.msra.mxu0 %v5452_v9 }
 0x253   :  { %5454 = vmatprep.subr.bf16.mxu0 %v6580_v58 }
 0x256   :  { %5456 = vmatpush1.bf16.msra.mxu0 %v5455_v14 }
 0x257   :  { %5457 = vmatprep.subr.bf16.mxu0 %v6580_v58 }
 0x2a7   :  { %v2228_v45 = vpop.f32.mrb[0].mxu0 }
 0x2a8   :  { %v2230_v46 = vpop.f32.mrb[1].mxu0 }
 0x2ab   :  { %v2234_v20 = vpop.f32.mrb[2].mxu0 }
 0x2ac   :  { %v2236_v21 = vpop.f32.mrb[3].mxu0 }
 0x2af   :  { %v2240_v47 = vpop.f32.mrb[4].mxu0 }
 0x2b0   :  { %v2242_v50 = vpop.f32.mrb[5].mxu0 }
 0x2b3   :  { %v2246_v51 = vpop.f32.mrb[6].mxu0 }
 0x2b4   :  { %v2248_v52 = vpop.f32.mrb[7].mxu0 }
 0x2b7   :  { %v7786_v53 = vpop.f32.mrb[8].mxu0 }
 0x2b8   :  { %v7788_v54 = vpop.f32.mrb[9].mxu0 }
 0x2bb   :  { %v7790_v56 = vpop.f32.mrb[10].mxu0 }
 0x2bc   :  { %v7792_v57 = vpop.f32.mrb[11].mxu0 }
 0x2bf   :  { %v7794_v39 = vpop.f32.mrb[12].mxu0 }
 0x2c0   :  { %v7796_v49 = vpop.f32.mrb[13].mxu0 }
 0x2c3   :  { %v7798_v59 = vpop.f32.mrb[14].mxu0 }
 0x2c4   :  { %v7800_v60 = vpop.f32.mrb[15].mxu0 }
 0x2c7   :  { %v7802_v61 = vpop.f32.mrb[16].mxu0  ;;  %v2494_v63 = vpop.f32.mrb[8].mxu1 }
 0x2c8   :  { %v2685_v1 = vmax.f32 %v2228_v45, %v2494_v63  ;;  %v7804_v16 = vpop.f32.mrb[17].mxu0  ;;  %v2496_v48 = vpop.f32.mrb[9].mxu1 }
 0x2c9   :  { %v2686_v17 = vmax.f32 %v2230_v46, %v2496_v48  ;;  %v7838_v46 = vrot.slane %v2782_v8, %v2790_v42  ;;  %v2866_v48 = vld [vmem:[#allocation6] sm:$0xff]  ;;  %v2868_v8 = vld [vmem:[#allocation6 + $0x10] sm:$0xff]  ;;  %v2869_v42 = vld [vmem:[#allocation6 + $0x18] sm:$0xff] }
 0x2cb   :  { %v7806_v18 = vpop.f32.mrb[18].mxu0  ;;  %v2500_v55 = vpop.f32.mrb[10].mxu1  ;;  %v7813_v62 = vsel %vm2734_vm1, %v2686_v17, -inf  ;;  %v2867_v17 = vld [vmem:[#allocation6 + $0x8] sm:$0xff] }
 0x2cc   :  { %v2687_v19 = vmax.f32 %v2234_v20, %v2500_v55  ;;  %v7808_v3 = vpop.f32.mrb[19].mxu0  ;;  %v2502_v22 = vpop.f32.mrb[11].mxu1 }
 0x2cd   :  { %v2688_v4 = vmax.f32 %v2236_v21, %v2502_v22 }
 0x2ce   :  { %v7810_v23 = vmax.f32 %v2685_v1, %v2687_v19  ;;  %v2843_v1 = vld [vmem:[#allocation4 + $0x8] sm:$0xff] }
 0x2cf   :  { %v7817_v24 = vsel %vm2734_vm1, %v2688_v4, -inf  ;;  %v7819_v5 = vpop.f32.mrb[20].mxu0  ;;  %v2506_v6 = vpop.f32.mrb[12].mxu1 }
 0x2d0   :  { %v2737_v25 = vmax.f32 %v7813_v62, %v7817_v24  ;;  %v2689_v36 = vmax.f32 %v2240_v47, %v2506_v6  ;;  %v7823_v27 = vpop.f32.mrb[21].mxu0  ;;  %v2508_v7 = vpop.f32.mrb[13].mxu1  ;;  %v3529_v62 = vld [vmem:[#allocation6 + $0x180] sm:$0xff]  ;;  %v3530_v24 = vld [vmem:[#allocation6 + $0x188] sm:$0xff] }
 0x2d1   :  { %v2690_v32 = vmax.f32 %v2242_v50, %v2508_v7  ;;  %v5530_v7 = vpack.c.bf16 %v2867_v17, %v2866_v48  ;;  %v2871_v48 = vld [vmem:[#allocation6 + $0x28] sm:$0xff] }
 0x2d3   :  { %v7825_v40 = vpop.f32.mrb[22].mxu0  ;;  %v2512_v41 = vpop.f32.mrb[14].mxu1  ;;  %v2739_v14 = vsel %vm2734_vm1, %v2690_v32, -inf  ;;  %v2844_v32 = vld [vmem:[#allocation4 + $0x10] sm:$0xff] }
 0x2d4   :  { %v2691_v9 = vmax.f32 %v2246_v51, %v2512_v41  ;;  %v7830_v10 = vpop.f32.mrb[23].mxu0  ;;  %v2514_v43 = vpop.f32.mrb[15].mxu1  ;;  %v2842_v51 = vld [vmem:[#allocation4] sm:$0xff] }
 0x2d5   :  { %v2692_v11 = vmax.f32 %v2248_v52, %v2514_v43 }
 0x2d6   :  { %v2738_v12 = vmax.f32 %v2689_v36, %v2691_v9  ;;  %v5458_v36 = vpack.c.bf16 %v2843_v1, %v2842_v51  ;;  %v2870_v1 = vld [vmem:[#allocation6 + $0x20] sm:$0xff] }
 0x2d7   :  { %v2740_v15 = vsel %vm2734_vm1, %v2692_v11, -inf  ;;  %v7836_v44 = vpop.f32.mrb[24].mxu0  ;;  %v2518_v45 = vpop.f32.mrb[16].mxu1 }
 0x2d8   :  { %v2741_v20 = vmax.f32 %v2739_v14, %v2740_v15  ;;  %v2693_v21 = vmax.f32 %v7786_v53, %v2518_v45  ;;  %v7841_v47 = vpop.f32.mrb[25].mxu0  ;;  %v2520_v50 = vpop.f32.mrb[17].mxu1  ;;  %v2796_v52 = vadd.f32 %v7832_v13, %v2738_v12 }
 0x2d9   :  { %v2694_v63 = vmax.f32 %v7788_v54, %v2520_v50  ;;  %v2846_v50 = vld [vmem:[#allocation4 + $0x20] sm:$0xff] }
 0x2da   :  { %v2797_v55 = vadd.f32 %v7838_v46, %v2741_v20  ;;  %v7853_v54 = vmax.f32 %v2796_v52, 0.0 }
 0x2db   :  { %v7846_v19 = vpop.f32.mrb[26].mxu0  ;;  %v2524_v22 = vpop.f32.mrb[18].mxu1 }
 0x2dc   :  { %v7848_v4 = vmax.f32 %v2797_v55, 0.0  ;;  %v2695_v53 = vmax.f32 %v7790_v56, %v2524_v22  ;;  %v7851_v2 = vpop.f32.mrb[27].mxu0  ;;  %v2526_v6 = vpop.f32.mrb[19].mxu1  ;;  %v2743_v56 = vsel %vm2734_vm1, %v2694_v63, -inf  ;;  %v2847_v63 = vld [vmem:[#allocation4 + $0x28] sm:$0xff] }
 0x2dd   :  { %v2696_v41 = vmax.f32 %v7792_v57, %v2526_v6  ;;  %v5461_v57 = vpack.c.bf16 %v2845_v37, %v2844_v32  ;;  %v2848_v32 = vld [vmem:[#allocation4 + $0x30] sm:$0xff]  ;;  %v2849_v37 = vld [vmem:[#allocation4 + $0x38] sm:$0xff] }
 0x2de   :  { %v2742_v9 = vmax.f32 %v2693_v21, %v2695_v53  ;;  %4998 = vmatprep.mubr.msk.f32.mxu0 %vm2734_vm1, %v7848_v4  ;;  %5014 = vmatprep.mubr.msk.f32.mxu1 %vm2734_vm1, %v7848_v4  ;;  %v5533_v21 = vpack.c.bf16 %v2869_v42, %v2868_v8  ;;  %v2872_v42 = vld [vmem:[#allocation6 + $0x30] sm:$0xff] }
 0x2df   :  { %v2744_v43 = vsel %vm2734_vm1, %v2696_v41, -inf  ;;  %v7862_v11 = vpop.f32.mrb[28].mxu0  ;;  %v2530_v12 = vpop.f32.mrb[20].mxu1  ;;  %3004 = vmatmul.mubr.f32.vlgmr.msra.gmra.mrb[48].mxu0 %v7853_v54  ;;  %3242 = vmatmul.mubr.f32.vlgmr.msra.gmra.mrb[56].mxu1 %v7853_v54 }
 0x2e0   :  { %v2745_v14 = vmax.f32 %v2743_v56, %v2744_v43  ;;  %v2697_v15 = vmax.f32 %v7794_v39, %v2530_v12  ;;  %v7867_v45 = vpop.f32.mrb[29].mxu0  ;;  %v2532_v20 = vpop.f32.mrb[21].mxu1  ;;  %5459 = vmatpush1.bf16.msra.mxu0 %v5458_v36  ;;  %5531 = vmatpush1.bf16.msra.mxu1 %v5530_v7  ;;  %v2798_v51 = vadd.f32 %v7832_v13, %v2742_v9  ;;  %v2873_v9 = vld [vmem:[#allocation6 + $0x38] sm:$0xff] }
 0x2e1   :  { %v2698_v52 = vmax.f32 %v7796_v49, %v2532_v20  ;;  %5460 = vmatprep.subr.bf16.mxu0 %v6580_v58  ;;  %5532 = vmatprep.subr.bf16.mxu1 %v6580_v58  ;;  %v5464_v49 = vpack.c.bf16 %v2847_v63, %v2846_v50  ;;  %v5536_v7 = vpack.c.bf16 %v2871_v48, %v2870_v1  ;;  %v2851_v1 = vld [vmem:[#allocation4 + $0x48] sm:$0xff]  ;;  %v2874_v48 = vld [vmem:[#allocation6 + $0x40] sm:$0xff] }
 0x2e2   :  { %v2799_v39 = vadd.f32 %v7838_v46, %v2745_v14  ;;  %v7881_v41 = vmax.f32 %v2798_v51, 0.0  ;;  %v5539_v50 = vpack.c.bf16 %v2873_v9, %v2872_v42  ;;  %v2850_v51 = vld [vmem:[#allocation4 + $0x40] sm:$0xff]  ;;  %v2853_v42 = vld [vmem:[#allocation4 + $0x58] sm:$0xff] }
 0x2e3   :  { %v7874_v17 = vpop.f32.mrb[30].mxu0  ;;  %v2536_v55 = vpop.f32.mrb[22].mxu1  ;;  %v2747_v56 = vsel %vm2734_vm1, %v2698_v52, -inf }
 0x2e4   :  { %v7876_v22 = vmax.f32 %v2799_v39, 0.0  ;;  %v2699_v53 = vmax.f32 %v7798_v59, %v2536_v55  ;;  %v7879_v6 = vpop.f32.mrb[31].mxu0  ;;  %v2538_v36 = vpop.f32.mrb[23].mxu1  ;;  %5462 = vmatpush1.bf16.msra.mxu0 %v5461_v57  ;;  %5534 = vmatpush1.bf16.msra.mxu1 %v5533_v21  ;;  %v5467_v57 = vpack.c.bf16 %v2849_v37, %v2848_v32  ;;  %v2875_v39 = vld [vmem:[#allocation6 + $0x48] sm:$0xff] }
 0x2e5   :  { %v2700_v8 = vmax.f32 %v7800_v60, %v2538_v36  ;;  %5463 = vmatprep.subr.bf16.mxu0 %v6580_v58  ;;  %5535 = vmatprep.subr.bf16.mxu1 %v6580_v58  ;;  %v5542_v37 = vpack.c.bf16 %v2875_v39, %v2874_v48  ;;  %v2854_v39 = vld [vmem:[#allocation4 + $0x60] sm:$0xff] }
 0x2e6   :  { %v2746_v59 = vmax.f32 %v2697_v15, %v2699_v53  ;;  %4999 = vmatprep.mubr.msk.f32.mxu0 %vm2734_vm1, %v7876_v22  ;;  %5015 = vmatprep.mubr.msk.f32.mxu1 %vm2734_vm1, %v7876_v22 }
 0x2e7   :  { %v2748_v43 = vsel %vm2734_vm1, %v2700_v8, -inf  ;;  %v7892_v12 = vpop.f32.mrb[32].mxu0  ;;  %v2542_v60 = vpop.f32.mrb[24].mxu1  ;;  %3009 = vmatmul.mubr.f32.gmra.mrb[50].mxu0 %v7881_v41  ;;  %3247 = vmatmul.mubr.f32.gmra.mrb[58].mxu1 %v7881_v41  ;;  %v2852_v8 = vld [vmem:[#allocation4 + $0x50] sm:$0xff] }
 0x2e8   :  { %v2749_v14 = vmax.f32 %v2747_v56, %v2748_v43  ;;  %v2701_v15 = vmax.f32 %v7802_v61, %v2542_v60  ;;  %v7897_v20 = vpop.f32.mrb[33].mxu0  ;;  %v2544_v21 = vpop.f32.mrb[25].mxu1  ;;  %5465 = vmatpush1.bf16.msra.mxu0 %v5464_v49  ;;  %5537 = vmatpush1.bf16.msra.mxu1 %v5536_v7  ;;  %v2800_v52 = vadd.f32 %v7832_v13, %v2746_v59  ;;  %v2876_v56 = vld [vmem:[#allocation6 + $0x50] sm:$0xff]  ;;  %v2877_v43 = vld [vmem:[#allocation6 + $0x58] sm:$0xff] }
 0x2e9   :  { %v2702_v63 = vmax.f32 %v7804_v16, %v2544_v21  ;;  %5466 = vmatprep.subr.bf16.mxu0 %v6580_v58  ;;  %5538 = vmatprep.subr.bf16.mxu1 %v6580_v58  ;;  %v5470_v16 = vpack.c.bf16 %v2851_v1, %v2850_v51  ;;  %v5473_v21 = vpack.c.bf16 %v2853_v42, %v2852_v8 }
 0x2ea   :  { %v2801_v61 = vadd.f32 %v7838_v46, %v2749_v14  ;;  %v7911_v9 = vmax.f32 %v2800_v52, 0.0  ;;  %v5545_v1 = vpack.c.bf16 %v2877_v43, %v2876_v56  ;;  %v2856_v56 = vld [vmem:[#allocation4 + $0x70] sm:$0xff]  ;;  %v2857_v43 = vld [vmem:[#allocation4 + $0x78] sm:$0xff] }
 0x2eb   :  { %v7904_v55 = vpop.f32.mrb[34].mxu0  ;;  %v2548_v53 = vpop.f32.mrb[26].mxu1  ;;  %v2751_v60 = vsel %vm2734_vm1, %v2702_v63, -inf }
 0x2ec   :  { %v7906_v36 = vmax.f32 %v2801_v61, 0.0  ;;  %v2703_v49 = vmax.f32 %v7806_v18, %v2548_v53  ;;  %v7909_v7 = vpop.f32.mrb[35].mxu0  ;;  %v2550_v32 = vpop.f32.mrb[27].mxu1  ;;  %5468 = vmatpush1.bf16.msra.mxu0 %v5467_v57  ;;  %5540 = vmatpush1.bf16.msra.mxu1 %v5539_v50  ;;  %v2855_v61 = vld [vmem:[#allocation4 + $0x68] sm:$0xff] }
 0x2ed   :  { %v2704_v59 = vmax.f32 %v7808_v3, %v2550_v32  ;;  %5469 = vmatprep.subr.bf16.mxu0 %v6580_v58  ;;  %5541 = vmatprep.subr.bf16.mxu1 %v6580_v58 }
 0x2ee   :  { %v2750_v18 = vmax.f32 %v2701_v15, %v2703_v49  ;;  %5000 = vmatprep.mubr.msk.f32.mxu0 %vm2734_vm1, %v7906_v36  ;;  %5016 = vmatprep.mubr.msk.f32.mxu1 %vm2734_vm1, %v7906_v36  ;;  %v2878_v49 = vld [vmem:[#allocation6 + $0x60] sm:$0xff] }
 0x2ef   :  { %v2752_v57 = vsel %vm2734_vm1, %v2704_v59, -inf  ;;  %v7922_v14 = vpop.f32.mrb[36].mxu0  ;;  %v2554_v3 = vpop.f32.mrb[28].mxu1  ;;  %3014 = vmatmul.mubr.f32.gmra.mrb[52].mxu0 %v7911_v9  ;;  %3252 = vmatmul.mubr.f32.gmra.mrb[60].mxu1 %v7911_v9  ;;  %v5476_v59 = vpack.c.bf16 %v2855_v61, %v2854_v39 }
 0x2f0   :  { %v2753_v50 = vmax.f32 %v2751_v60, %v2752_v57  ;;  %v2705_v15 = vmax.f32 %v7819_v5, %v2554_v3  ;;  %v7927_v51 = vpop.f32.mrb[37].mxu0  ;;  %v2556_v52 = vpop.f32.mrb[29].mxu1  ;;  %5471 = vmatpush1.bf16.msra.mxu0 %v5470_v16  ;;  %5543 = vmatpush1.bf16.msra.mxu1 %v5542_v37  ;;  %v2802_v63 = vadd.f32 %v7832_v13, %v2750_v18  ;;  %v2879_v5 = vld [vmem:[#allocation6 + $0x68] sm:$0xff]  ;;  %v2880_v3 = vld [vmem:[#allocation6 + $0x70] sm:$0xff] }
 0x2f1   :  { %v2706_v48 = vmax.f32 %v7823_v27, %v2556_v52  ;;  %5472 = vmatprep.subr.bf16.mxu0 %v6580_v58  ;;  %5544 = vmatprep.subr.bf16.mxu1 %v6580_v58  ;;  %v5548_v57 = vpack.c.bf16 %v2879_v5, %v2878_v49 }
 0x2f2   :  { %v2803_v53 = vadd.f32 %v7838_v46, %v2753_v50  ;;  %v7941_v18 = vmax.f32 %v2802_v63, 0.0  ;;  %v2881_v50 = vld [vmem:[#allocation6 + $0x78] sm:$0xff]  ;;  %v5479_v63 = vpack.c.bf16 %v2857_v43, %v2856_v56  ;;  %v2859_v56 = vld [vmem:[#allocation4 + $0x88] sm:$0xff] }
 0x2f3   :  { %v7934_v32 = vpop.f32.mrb[38].mxu0  ;;  %v2560_v8 = vpop.f32.mrb[30].mxu1  ;;  %v5551_v5 = vpack.c.bf16 %v2881_v50, %v2880_v3  ;;  %v2883_v43 = vld [vmem:[#allocation6 + $0x88] sm:$0xff] }
 0x2f4   :  { %v7936_v16 = vmax.f32 %v2803_v53, 0.0  ;;  %v2707_v37 = vmax.f32 %v7825_v40, %v2560_v8  ;;  %v7939_v42 = vpop.f32.mrb[39].mxu0  ;;  %v2562_v27 = vpop.f32.mrb[31].mxu1  ;;  %5474 = vmatpush1.bf16.msra.mxu0 %v5473_v21  ;;  %5546 = vmatpush1.bf16.msra.mxu1 %v5545_v1  ;;  %v2755_v21 = vsel %vm2734_vm1, %v2706_v48, -inf }
 0x2f5   :  { %v2708_v60 = vmax.f32 %v7830_v10, %v2562_v27  ;;  %5475 = vmatprep.subr.bf16.mxu0 %v6580_v58  ;;  %5547 = vmatprep.subr.bf16.mxu1 %v6580_v58  ;;  %v2858_v27 = vld [vmem:[#allocation4 + $0x80] sm:$0xff] }
 0x2f6   :  { %v2754_v40 = vmax.f32 %v2705_v15, %v2707_v37  ;;  %5001 = vmatprep.mubr.msk.f32.mxu0 %vm2734_vm1, %v7936_v16  ;;  %5017 = vmatprep.mubr.msk.f32.mxu1 %vm2734_vm1, %v7936_v16 }
 0x2f7   :  { %v2756_v52 = vsel %vm2734_vm1, %v2708_v60, -inf  ;;  %v2348_v1 = vpop.f32.mrb[40].mxu0  ;;  %v2566_v10 = vpop.f32.mrb[32].mxu1  ;;  %3019 = vmatmul.mubr.f32.gmra.mrb[54].mxu0 %v7941_v18  ;;  %3257 = vmatmul.mubr.f32.gmra.mrb[62].mxu1 %v7941_v18 }
 0x2f8   :  { %v2757_v39 = vmax.f32 %v2755_v21, %v2756_v52  ;;  %v7955_v15 = vadd.f32 %v2348_v1, %v7257_v26  ;;  %v2709_v61 = vmax.f32 %v7836_v44, %v2566_v10  ;;  %v2350_v53 = vpop.f32.mrb[41].mxu0  ;;  %v2568_v49 = vpop.f32.mrb[33].mxu1  ;;  %5477 = vmatpush1.bf16.msra.mxu0 %v5476_v59  ;;  %v2804_v48 = vadd.f32 %v7832_v13, %v2754_v40  ;;  %v2882_v44 = vld [vmem:[#allocation6 + $0x80] sm:$0xff]  ;;  %v2860_v21 = vld [vmem:[#allocation4 + $0x90] sm:$0xff]  ;;  %v2861_v52 = vld [vmem:[#allocation4 + $0x98] sm:$0xff] }
 0x2f9   :  { %v7960_v8 = vadd.f32 %v2350_v53, %v7259_v28  ;;  %v2710_v37 = vmax.f32 %v7841_v47, %v2568_v49  ;;  %5549 = vmatpush1.bf16.msra.mxu1 %v5548_v57  ;;  %5478 = vmatprep.subr.bf16.mxu0 %v6580_v58  ;;  %v5482_v40 = vpack.c.bf16 %v2859_v56, %v2858_v27  ;;  %v2884_v53 = vld [vmem:[#allocation6 + $0x90] sm:$0xff]  ;;  %v2885_v49 = vld [vmem:[#allocation6 + $0x98] sm:$0xff] }
 0x2fa   :  { %v2805_v26 = vadd.f32 %v7838_v46, %v2757_v39  ;;  %5550 = vmatprep.subr.bf16.mxu1 %v6580_v58  ;;  %v7972_v1 = vmax.f32 %v2804_v48, 0.0 }
 0x2fb   :  { %v2354_v59 = vpop.f32.mrb[42].mxu0  ;;  %v2572_v60 = vpop.f32.mrb[34].mxu1 }
 0x2fc   :  { %v7966_v3 = vmax.f32 %v2805_v26, 0.0  ;;  %v7969_v28 = vadd.f32 %v2354_v59, %v7267_v31  ;;  %v2711_v47 = vmax.f32 %v7846_v19, %v2572_v60  ;;  %v2356_v57 = vpop.f32.mrb[43].mxu0  ;;  %v2574_v50 = vpop.f32.mrb[35].mxu1  ;;  %5480 = vmatpush1.bf16.msra.mxu0 %v5479_v63  ;;  %v5554_v31 = vpack.c.bf16 %v2883_v43, %v2882_v44 }
 0x2fd   :  { %v7975_v10 = vadd.f32 %v2356_v57, %v7269_v29  ;;  %v2712_v39 = vmax.f32 %v7851_v2, %v2574_v50  ;;  %5552 = vmatpush1.bf16.msra.mxu1 %v5551_v5  ;;  %5481 = vmatprep.subr.bf16.mxu0 %v6580_v58  ;;  %v2759_v63 = vsel %vm2734_vm1, %v2710_v37, -inf  ;;  %v5485_v2 = vpack.c.bf16 %v2861_v52, %v2860_v21  ;;  %v2863_v57 = vld [vmem:[#allocation4 + $0xa8] sm:$0xff] }
 0x2fe   :  { %v2758_v19 = vmax.f32 %v2709_v61, %v2711_v47  ;;  %5002 = vmatprep.mubr.msk.f32.mxu0 %vm2734_vm1, %v7966_v3  ;;  %5018 = vmatprep.mubr.msk.f32.mxu1 %vm2734_vm1, %v7966_v3  ;;  %v5557_v37 = vpack.c.bf16 %v2885_v49, %v2884_v53  ;;  %v2862_v47 = vld [vmem:[#allocation4 + $0xa0] sm:$0xff]  ;;  %v2887_v50 = vld [vmem:[#allocation6 + $0xa8] sm:$0xff] }
 0x2ff   :  { %v2760_v29 = vsel %vm2734_vm1, %v2712_v39, -inf  ;;  %v2360_v48 = vpop.f32.mrb[44].mxu0  ;;  %v2578_v27 = vpop.f32.mrb[36].mxu1  ;;  %3024 = vmatmul.mubr.f32.gmra.mrb[56].mxu0 %v7972_v1  ;;  %3262 = vmatmul.mubr.f32.gmra.mrb[64].mxu1 %v7972_v1  ;;  %v5488_v53 = vpack.c.bf16 %v2863_v57, %v2862_v47 }
 0x300   :  { %v2761_v5 = vmax.f32 %v2759_v63, %v2760_v29  ;;  %v7988_v61 = vadd.f32 %v2360_v48, %v7277_v30  ;;  %v2713_v56 = vmax.f32 %v7862_v11, %v2578_v27  ;;  %v2362_v26 = vpop.f32.mrb[45].mxu0  ;;  %v2580_v44 = vpop.f32.mrb[37].mxu1  ;;  %5553 = vmatprep.subr.bf16.mxu1 %v6580_v58  ;;  %v2806_v43 = vadd.f32 %v7832_v13, %v2758_v19  ;;  %v2886_v11 = vld [vmem:[#allocation6 + $0xa0] sm:$0xff]  ;;  %v2864_v48 = vld [vmem:[#allocation4 + $0xb0] sm:$0xff]  ;;  %v2865_v27 = vld [vmem:[#allocation4 + $0xb8] sm:$0xff] }
 0x301   :  { %v7994_v59 = vadd.f32 %v2362_v26, %v7279_v33  ;;  %v2714_v60 = vmax.f32 %v7867_v45, %v2580_v44  ;;  %5483 = vmatpush1.bf16.msra.mxu0 %v5482_v40  ;;  %5555 = vmatpush1.bf16.msra.mxu1 %v5554_v31  ;;  %v5560_v29 = vpack.c.bf16 %v2887_v50, %v2886_v11 }
 0x302   :  { %v2807_v30 = vadd.f32 %v7838_v46, %v2761_v5  ;;  %5484 = vmatprep.subr.bf16.mxu0 %v6580_v58  ;;  %5556 = vmatprep.subr.bf16.mxu1 %v6580_v58  ;;  %v8006_v49 = vmax.f32 %v2806_v43, 0.0 }
 0x303   :  { %v2366_v21 = vpop.f32.mrb[46].mxu0  ;;  %v2584_v52 = vpop.f32.mrb[38].mxu1  ;;  %v2763_v26 = vsel %vm2734_vm1, %v2714_v60, -inf }
 0x304   :  { %v8000_v39 = vmax.f32 %v2807_v30, 0.0  ;;  %v8003_v33 = vadd.f32 %v2366_v21, %v7287_v34  ;;  %v2715_v45 = vmax.f32 %v7874_v17, %v2584_v52  ;;  %v2368_v40 = vpop.f32.mrb[47].mxu0  ;;  %v2586_v31 = vpop.f32.mrb[39].mxu1  ;;  %v2888_v34 = vld [vmem:[#allocation6 + $0xb0] sm:$0xff]  ;;  %v2889_v17 = vld [vmem:[#allocation6 + $0xb8] sm:$0xff] }
 0x305   :  { %v8009_v19 = vadd.f32 %v2368_v40, %v7289_v35  ;;  %v2716_v63 = vmax.f32 %v7879_v6, %v2586_v31  ;;  %5486 = vmatpush1.bf16.msra.mxu0 %v5485_v2  ;;  %5558 = vmatpush1.bf16.msra.mxu1 %v5557_v37  ;;  %v5491_v37 = vpack.c.bf16 %v2865_v27, %v2864_v48 }
 0x306   :  { %v2762_v5 = vmax.f32 %v2713_v56, %v2715_v45  ;;  %5003 = vmatprep.mubr.msk.f32.mxu0 %vm2734_vm1, %v8000_v39  ;;  %5019 = vmatprep.mubr.msk.f32.mxu1 %vm2734_vm1, %v8000_v39  ;;  %v5563_v47 = vpack.c.bf16 %v2889_v17, %v2888_v34  ;;  %v2795_v48 = vadd.f32 %v7838_v46, %v2737_v25 }
 0x307   :  { %v2764_v35 = vsel %vm2734_vm1, %v2716_v63, -inf  ;;  %v2590_v44 = vpop.f32.mrb[40].mxu1  ;;  %3029 = vmatmul.mubr.f32.gmra.mrb[58].mxu0 %v8006_v49  ;;  %3267 = vmatmul.mubr.f32.gmra.mrb[66].mxu1 %v8006_v49 }
 0x308   :  { %v2765_v6 = vmax.f32 %v2763_v26, %v2764_v35  ;;  %v2717_v2 = vmax.f32 %v7892_v12, %v2590_v44  ;;  %v2592_v56 = vpop.f32.mrb[41].mxu1  ;;  %5487 = vmatprep.subr.bf16.mxu0 %v6580_v58  ;;  %5559 = vmatprep.subr.bf16.mxu1 %v6580_v58  ;;  %v2808_v43 = vadd.f32 %v7832_v13, %v2762_v5  ;;  %v3388_v26 = vld [vmem:[#allocation4 + $0x180] sm:$0xff]  ;;  %v3389_v35 = vld [vmem:[#allocation4 + $0x188] sm:$0xff]  ;;  %v2819_v25 = vmax.f32 %v2795_v48, 0.0 }
 0x309   :  { %v2718_v60 = vmax.f32 %v7897_v20, %v2592_v56  ;;  %5489 = vmatpush1.bf16.msra.mxu0 %v5488_v53  ;;  %5561 = vmatpush1.bf16.msra.mxu1 %v5560_v29  ;;  %v2794_v44 = vadd.f32 %v7832_v13, %v7810_v23 }
 0x30a   :  { %v2809_v57 = vadd.f32 %v7838_v46, %v2765_v6  ;;  %5490 = vmatprep.subr.bf16.mxu0 %v6580_v58  ;;  %5562 = vmatprep.subr.bf16.mxu1 %v6580_v58  ;;  %v8031_v21 = vmax.f32 %v2808_v43, 0.0 }
 0x30b   :  { %v2596_v12 = vpop.f32.mrb[42].mxu1  ;;  %v2767_v45 = vsel %vm2734_vm1, %v2718_v60, -inf }
 0x30c   :  { %v8028_v30 = vmax.f32 %v2809_v57, 0.0  ;;  %v2719_v11 = vmax.f32 %v7904_v55, %v2596_v12  ;;  %v2598_v50 = vpop.f32.mrb[43].mxu1  ;;  %v3390_v57 = vld [vmem:[#allocation4 + $0x190] sm:$0xff]  ;;  %v2818_v12 = vmax.f32 %v2794_v44, 0.0 }
 0x30d   :  { %v2720_v52 = vmax.f32 %v7909_v7, %v2598_v50  ;;  %5492 = vmatpush1.bf16.msra.mxu0 %v5491_v37  ;;  %5564 = vmatpush1.bf16.msra.mxu1 %v5563_v47  ;;  %v5602_v47 = vpack.c.bf16 %v3530_v24, %v3529_v62  ;;  %v3391_v50 = vld [vmem:[#allocation4 + $0x198] sm:$0xff] }
 0x30e   :  { %v2766_v20 = vmax.f32 %v2717_v2, %v2719_v11  ;;  %5004 = vmatprep.mubr.msk.f32.mxu0 %vm2734_vm1, %v8028_v30  ;;  %5020 = vmatprep.mubr.msk.f32.mxu1 %vm2734_vm1, %v8028_v30  ;;  %v3536_v62 = vld [vmem:[#allocation6 + $0x1b8] sm:$0xff] }
 0x30f   :  { %v2768_v40 = vsel %vm2734_vm1, %v2720_v52, -inf  ;;  %v2602_v31 = vpop.f32.mrb[44].mxu1  ;;  %3034 = vmatmul.mubr.f32.gmra.mrb[60].mxu0 %v8031_v21  ;;  %3272 = vmatmul.mubr.f32.gmra.mrb[68].mxu1 %v8031_v21  ;;  %v3531_v52 = vld [vmem:[#allocation6 + $0x190] sm:$0xff] }
 0x310   :  { %v2769_v55 = vmax.f32 %v2767_v45, %v2768_v40  ;;  %v2721_v7 = vmax.f32 %v7922_v14, %v2602_v31  ;;  %v2604_v53 = vpop.f32.mrb[45].mxu1  ;;  %5565 = vmatprep.subr.bf16.mxu0 %v6580_v58  ;;  %5601 = vmatprep.subr.bf16.mxu1 %v6580_v58  ;;  %v2810_v63 = vadd.f32 %v7832_v13, %v2766_v20  ;;  %v3532_v20 = vld [vmem:[#allocation6 + $0x198] sm:$0xff] }
 0x311   :  { %v2722_v29 = vmax.f32 %v7927_v51, %v2604_v53  ;;  %v5569_v31 = vpack.c.bf16 %v3391_v50, %v3390_v57  ;;  %v3393_v53 = vld [vmem:[#allocation4 + $0x1a8] sm:$0xff] }
 0x312   :  { %v2811_v27 = vadd.f32 %v7838_v46, %v2769_v55  ;;  %v8057_v6 = vmax.f32 %v2810_v63, 0.0  ;;  %v5605_v55 = vpack.c.bf16 %v3532_v20, %v3531_v52  ;;  %v3538_v57 = vld [vmem:[#allocation6 + $0x1c8] sm:$0xff]  ;;  %v3398_v20 = vld [vmem:[#allocation4 + $0x1d0] sm:$0xff] }
 0x313   :  { %v2608_v5 = vpop.f32.mrb[46].mxu1 }
 0x314   :  { %v8052_v34 = vmax.f32 %v2811_v27, 0.0  ;;  %v2723_v14 = vmax.f32 %v7934_v32, %v2608_v5  ;;  %v2610_v17 = vpop.f32.mrb[47].mxu1  ;;  %v8067_v32 = vsel %vm2734_vm1, %v2722_v29, -inf  ;;  %v3534_v29 = vld [vmem:[#allocation6 + $0x1a8] sm:$0xff] }
 0x315   :  { %v2724_v51 = vmax.f32 %v7939_v42, %v2610_v17  ;;  %v5566_v42 = vpack.c.bf16 %v3389_v35, %v3388_v26  ;;  %v3394_v35 = vld [vmem:[#allocation4 + $0x1b0] sm:$0xff] }
 0x316   :  { %v8060_v2 = vmax.f32 %v2721_v7, %v2723_v14  ;;  %5005 = vmatprep.mubr.msk.f32.mxu0 %vm2734_vm1, %v8052_v34  ;;  %5021 = vmatprep.mubr.msk.f32.mxu1 %vm2734_vm1, %v8052_v34  ;;  %v3392_v7 = vld [vmem:[#allocation4 + $0x1a0] sm:$0xff] }
 0x317   :  { %v8070_v23 = vsel %vm2734_vm1, %v2724_v51, -inf  ;;  %v2614_v56 = vpop.f32.mrb[48].mxu1  ;;  %3039 = vmatmul.mubr.f32.gmra.mrb[62].mxu0 %v8057_v6  ;;  %3277 = vmatmul.mubr.f32.gmra.mrb[70].mxu1 %v8057_v6  ;;  %v3535_v51 = vld [vmem:[#allocation6 + $0x1b0] sm:$0xff] }
 0x318   :  { %v2773_v37 = vmax.f32 %v8067_v32, %v8070_v23  ;;  %v2725_v43 = vmax.f32 %v7955_v15, %v2614_v56  ;;  %v2616_v60 = vpop.f32.mrb[49].mxu1  ;;  %5006 = vmatprep.mubr.msk.f32.mxu0 %vm2734_vm1, %v2819_v25  ;;  %5022 = vmatprep.mubr.msk.f32.mxu1 %vm2734_vm1, %v2819_v25  ;;  %v5611_v56 = vpack.c.bf16 %v3536_v62, %v3535_v51  ;;  %v3405_v51 = vld [vmem:[#allocation4 + $0x208] sm:$0xff]  ;;  %v3545_v62 = vld [vmem:[#allocation6 + $0x200] sm:$0xff] }
 0x319   :  { %v2726_v11 = vmax.f32 %v7960_v8, %v2616_v60  ;;  %v3533_v8 = vld [vmem:[#allocation6 + $0x1a0] sm:$0xff]  ;;  %v3397_v60 = vld [vmem:[#allocation4 + $0x1c8] sm:$0xff]  ;;  %v2812_v32 = vadd.f32 %v7832_v13, %v8060_v2 }
 0x31a   :  { %v5608_v26 = vpack.c.bf16 %v3534_v29, %v3533_v8  ;;  %v3542_v8 = vld [vmem:[#allocation6 + $0x1e8] sm:$0xff] }
 0x31b   :  { %v2620_v45 = vpop.f32.mrb[50].mxu1  ;;  %3112 = vmatmul.mubr.f32.vlgmr.msra.gmra.mrb[48].mxu0 %v2818_v12  ;;  %3347 = vmatmul.mubr.f32.vlgmr.msra.gmra.mrb[56].mxu1 %v2818_v12  ;;  %v8238_v2 = vmax.f32 %v2812_v32, 0.0 }
 0x31c   :  { %v2727_v40 = vmax.f32 %v7969_v28, %v2620_v45  ;;  %5567 = vmatpush1.bf16.msra.mxu0 %v5566_v42  ;;  %5603 = vmatpush1.bf16.msra.mxu1 %v5602_v47  ;;  %v2622_v15 = vpop.f32.mrb[51].mxu1  ;;  %v8091_v28 = vsel %vm2734_vm1, %v2726_v11, -inf  ;;  %v3396_v42 = vld [vmem:[#allocation4 + $0x1c0] sm:$0xff]  ;;  %v3399_v45 = vld [vmem:[#allocation4 + $0x1d8] sm:$0xff] }
 0x31d   :  { %v2728_v63 = vmax.f32 %v7975_v10, %v2622_v15  ;;  %5007 = vmatprep.mubr.msk.f32.mxu0 %vm2734_vm1, %v7848_v4  ;;  %5023 = vmatprep.mubr.msk.f32.mxu1 %vm2734_vm1, %v7848_v4  ;;  %v5572_v4 = vpack.c.bf16 %v3393_v53, %v3392_v7  ;;  %v3537_v47 = vld [vmem:[#allocation6 + $0x1c0] sm:$0xff]  ;;  %v5578_v50 = vpack.c.bf16 %v3397_v60, %v3396_v42  ;;  %v3540_v15 = vld [vmem:[#allocation6 + $0x1d8] sm:$0xff]  ;;  %v3401_v53 = vld [vmem:[#allocation4 + $0x1e8] sm:$0xff] }
 0x31e   :  { %v8086_v48 = vmax.f32 %v2725_v43, %v2727_v40  ;;  %5568 = vmatprep.subr.bf16.mxu0 %v6580_v58  ;;  %5604 = vmatprep.subr.bf16.mxu1 %v6580_v58  ;;  %v5614_v52 = vpack.c.bf16 %v3538_v57, %v3537_v47  ;;  %v3539_v40 = vld [vmem:[#allocation6 + $0x1d0] sm:$0xff]  ;;  %v3400_v7 = vld [vmem:[#allocation4 + $0x1e0] sm:$0xff] }
 0x31f   :  { %v8094_v27 = vsel %vm2734_vm1, %v2728_v63, -inf  ;;  %v2626_v10 = vpop.f32.mrb[52].mxu1  ;;  %3117 = vmatmul.mubr.f32.gmra.mrb[50].mxu0 %v7853_v54  ;;  %3352 = vmatmul.mubr.f32.gmra.mrb[58].mxu1 %v7853_v54  ;;  %v3395_v54 = vld [vmem:[#allocation4 + $0x1b8] sm:$0xff]  ;;  %v3541_v63 = vld [vmem:[#allocation6 + $0x1e0] sm:$0xff]  ;;  %v5584_v29 = vpack.c.bf16 %v3401_v53, %v3400_v7  ;;  %v3547_v42 = vld [vmem:[#allocation6 + $0x210] sm:$0xff] }
 0x320   :  { %v2777_v5 = vmax.f32 %v8091_v28, %v8094_v27  ;;  %v2729_v14 = vmax.f32 %v7988_v61, %v2626_v10  ;;  %5570 = vmatpush1.bf16.msra.mxu0 %v5569_v31  ;;  %5606 = vmatpush1.bf16.msra.mxu1 %v5605_v55  ;;  %v2628_v17 = vpop.f32.mrb[53].mxu1  ;;  %v5575_v25 = vpack.c.bf16 %v3395_v54, %v3394_v35  ;;  %v3404_v54 = vld [vmem:[#allocation4 + $0x200] sm:$0xff] }
 0x321   :  { %v2730_v44 = vmax.f32 %v7994_v59, %v2628_v17  ;;  %5008 = vmatprep.mubr.msk.f32.mxu0 %vm2734_vm1, %v7876_v22  ;;  %5024 = vmatprep.mubr.msk.f32.mxu1 %vm2734_vm1, %v7876_v22  ;;  %v5581_v31 = vpack.c.bf16 %v3399_v45, %v3398_v20  ;;  %v5617_v55 = vpack.c.bf16 %v3540_v15, %v3539_v40  ;;  %v3543_v17 = vld [vmem:[#allocation6 + $0x1f0] sm:$0xff]  ;;  %v3408_v57 = vld [vmem:[#allocation4 + $0x220] sm:$0xff]  ;;  %v3550_v20 = vld [vmem:[#allocation6 + $0x228] sm:$0xff] }
 0x322   :  { %5571 = vmatprep.subr.bf16.mxu0 %v6580_v58  ;;  %5607 = vmatprep.subr.bf16.mxu1 %v6580_v58  ;;  %v5620_v10 = vpack.c.bf16 %v3542_v8, %v3541_v63  ;;  %v3410_v40 = vld [vmem:[#allocation4 + $0x230] sm:$0xff]  ;;  %v3411_v15 = vld [vmem:[#allocation4 + $0x238] sm:$0xff]  ;;  %v3667_v63 = vld [vmem:[#allocation4 + $0x240] sm:$0xff]  ;;  %v2814_v28 = vadd.f32 %v7832_v13, %v8086_v48 }
 0x323   :  { %v2632_v61 = vpop.f32.mrb[54].mxu1  ;;  %3122 = vmatmul.mubr.f32.gmra.mrb[52].mxu0 %v7881_v41  ;;  %3357 = vmatmul.mubr.f32.gmra.mrb[60].mxu1 %v7881_v41  ;;  %v5599_v7 = vpack.c.bf16 %v3411_v15, %v3410_v40  ;;  %v3668_v8 = vld [vmem:[#allocation4 + $0x248] sm:$0xff]  ;;  %v3677_v15 = vld [vmem:[#allocation4 + $0x290] sm:$0xff] }
 0x324   :  { %v2731_v59 = vmax.f32 %v8003_v33, %v2632_v61  ;;  %5573 = vmatpush1.bf16.msra.mxu0 %v5572_v4  ;;  %5609 = vmatpush1.bf16.msra.mxu1 %v5608_v26  ;;  %v2634_v24 = vpop.f32.mrb[55].mxu1  ;;  %v8121_v33 = vsel %vm2734_vm1, %v2730_v44, -inf  ;;  %v3402_v4 = vld [vmem:[#allocation4 + $0x1f0] sm:$0xff]  ;;  %v3544_v26 = vld [vmem:[#allocation6 + $0x1f8] sm:$0xff]  ;;  %v3546_v61 = vld [vmem:[#allocation6 + $0x208] sm:$0xff]  ;;  %v8320_v48 = vmax.f32 %v2814_v28, 0.0 }
 0x325   :  { %v2732_v43 = vmax.f32 %v8009_v19, %v2634_v24  ;;  %5009 = vmatprep.mubr.msk.f32.mxu0 %vm2734_vm1, %v7906_v36  ;;  %5025 = vmatprep.mubr.msk.f32.mxu1 %vm2734_vm1, %v7906_v36  ;;  %v5623_v44 = vpack.c.bf16 %v3544_v26, %v3543_v17  ;;  %v5626_v24 = vpack.c.bf16 %v3546_v61, %v3545_v62  ;;  %v3669_v17 = vld [vmem:[#allocation4 + $0x250] sm:$0xff]  ;;  %v3670_v26 = vld [vmem:[#allocation4 + $0x258] sm:$0xff]  ;;  %v3671_v62 = vld [vmem:[#allocation4 + $0x260] sm:$0xff] }
 0x326   :  { %v8116_v12 = vmax.f32 %v2729_v14, %v2731_v59  ;;  %5574 = vmatprep.subr.bf16.mxu0 %v6580_v58  ;;  %5610 = vmatprep.subr.bf16.mxu1 %v6580_v58  ;;  %v3403_v14 = vld [vmem:[#allocation4 + $0x1f8] sm:$0xff]  ;;  %v5590_v59 = vpack.c.bf16 %v3405_v51, %v3404_v54  ;;  %v5641_v54 = vpack.c.bf16 %v3670_v26, %v3669_v17  ;;  %v3672_v61 = vld [vmem:[#allocation4 + $0x268] sm:$0xff]  ;;  %v3681_v17 = vld [vmem:[#allocation4 + $0x2b0] sm:$0xff] }
 0x327   :  { %v8124_v19 = vsel %vm2734_vm1, %v2732_v43, -inf  ;;  %3127 = vmatmul.mubr.f32.gmra.mrb[54].mxu0 %v7911_v9  ;;  %3362 = vmatmul.mubr.f32.gmra.mrb[62].mxu1 %v7911_v9  ;;  %v5587_v35 = vpack.c.bf16 %v3403_v14, %v3402_v4  ;;  %v3548_v43 = vld [vmem:[#allocation6 + $0x218] sm:$0xff]  ;;  %v5638_v4 = vpack.c.bf16 %v3668_v8, %v3667_v63  ;;  %v3679_v8 = vld [vmem:[#allocation4 + $0x2a0] sm:$0xff] }
 0x328   :  { %v2781_v11 = vmax.f32 %v8121_v33, %v8124_v19  ;;  %5576 = vmatpush1.bf16.msra.mxu0 %v5575_v25  ;;  %5612 = vmatpush1.bf16.msra.mxu1 %v5611_v56  ;;  %v3406_v25 = vld [vmem:[#allocation4 + $0x210] sm:$0xff]  ;;  %v3407_v56 = vld [vmem:[#allocation4 + $0x218] sm:$0xff]  ;;  %v5629_v47 = vpack.c.bf16 %v3548_v43, %v3547_v42 }
 0x329   :  { %5010 = vmatprep.mubr.msk.f32.mxu0 %vm2734_vm1, %v7936_v16  ;;  %5026 = vmatprep.mubr.msk.f32.mxu1 %vm2734_vm1, %v7936_v16  ;;  %v5593_v60 = vpack.c.bf16 %v3407_v56, %v3406_v25  ;;  %v3673_v56 = vld [vmem:[#allocation4 + $0x270] sm:$0xff]  ;;  %v3674_v42 = vld [vmem:[#allocation4 + $0x278] sm:$0xff] }
 0x32a   :  { %5577 = vmatprep.subr.bf16.mxu0 %v6580_v58  ;;  %5613 = vmatprep.subr.bf16.mxu1 %v6580_v58  ;;  %v3814_v43 = vld [vmem:[#allocation6 + $0x270] sm:$0xff]  ;;  %v4271_v28 = vld [vmem:[#allocation7 + $0x98] sm:$0xff] }
 0x32b   :  { %3132 = vmatmul.mubr.f32.gmra.mrb[56].mxu0 %v7941_v18  ;;  %3367 = vmatmul.mubr.f32.gmra.mrb[64].mxu1 %v7941_v18  ;;  %v4275_v33 = vld [vmem:[#allocation7 + $0xb8] sm:$0xff]  ;;  %v4261_v19 = vld [vmem:[#allocation7 + $0x50] sm:$0xff] }
 0x32c   :  { %5579 = vmatpush1.bf16.msra.mxu0 %v5578_v50  ;;  %5615 = vmatpush1.bf16.msra.mxu1 %v5614_v52  ;;  %v3409_v50 = vld [vmem:[#allocation4 + $0x228] sm:$0xff]  ;;  %v3549_v52 = vld [vmem:[#allocation6 + $0x220] sm:$0xff] }
 0x32d   :  { %5011 = vmatprep.mubr.msk.f32.mxu0 %vm2734_vm1, %v7966_v3  ;;  %5027 = vmatprep.mubr.msk.f32.mxu1 %vm2734_vm1, %v7966_v3  ;;  %v5632_v45 = vpack.c.bf16 %v3550_v20, %v3549_v52  ;;  %v3676_v52 = vld [vmem:[#allocation4 + $0x288] sm:$0xff]  ;;  %v3816_v20 = vld [vmem:[#allocation6 + $0x280] sm:$0xff] }
 0x32e   :  { %5580 = vmatprep.subr.bf16.mxu0 %v6580_v58  ;;  %5616 = vmatprep.subr.bf16.mxu1 %v6580_v58 }
 0x32f   :  { %3137 = vmatmul.mubr.f32.gmra.mrb[58].mxu0 %v7972_v1  ;;  %3372 = vmatmul.mubr.f32.gmra.mrb[66].mxu1 %v7972_v1 }
 0x330   :  { %5582 = vmatpush1.bf16.msra.mxu0 %v5581_v31  ;;  %5618 = vmatpush1.bf16.msra.mxu1 %v5617_v55  ;;  %v3551_v31 = vld [vmem:[#allocation6 + $0x230] sm:$0xff]  ;;  %v3552_v55 = vld [vmem:[#allocation6 + $0x238] sm:$0xff] }
 0x331   :  { %5012 = vmatprep.mubr.msk.f32.mxu0 %vm2734_vm1, %v8000_v39  ;;  %5028 = vmatprep.mubr.msk.f32.mxu1 %vm2734_vm1, %v8000_v39  ;;  %v5635_v53 = vpack.c.bf16 %v3552_v55, %v3551_v31  ;;  %v3678_v31 = vld [vmem:[#allocation4 + $0x298] sm:$0xff]  ;;  %v3818_v55 = vld [vmem:[#allocation6 + $0x290] sm:$0xff] }
 0x332   :  { %5583 = vmatprep.subr.bf16.mxu0 %v6580_v58  ;;  %5619 = vmatprep.subr.bf16.mxu1 %v6580_v58 }
 0x333   :  { %3142 = vmatmul.mubr.f32.gmra.mrb[60].mxu0 %v8006_v49  ;;  %3377 = vmatmul.mubr.f32.gmra.mrb[68].mxu1 %v8006_v49 }
 0x334   :  { %5585 = vmatpush1.bf16.msra.mxu0 %v5584_v29  ;;  %5621 = vmatpush1.bf16.msra.mxu1 %v5620_v10  ;;  %v3808_v29 = vld [vmem:[#allocation6 + $0x240] sm:$0xff]  ;;  %v3809_v10 = vld [vmem:[#allocation6 + $0x248] sm:$0xff] }
 0x335   :  { %5013 = vmatprep.mubr.msk.f32.mxu0 %vm2734_vm1, %v8028_v30  ;;  %5029 = vmatprep.mubr.msk.f32.mxu1 %vm2734_vm1, %v8028_v30  ;;  %v5674_v14 = vpack.c.bf16 %v3809_v10, %v3808_v29  ;;  %v2813_v29 = vadd.f32 %v7838_v46, %v2773_v37  ;;  %v3680_v10 = vld [vmem:[#allocation4 + $0x2a8] sm:$0xff] }
 0x336   :  { %5586 = vmatprep.subr.bf16.mxu0 %v6580_v58  ;;  %5622 = vmatprep.subr.bf16.mxu1 %v6580_v58  ;;  %v5656_v23 = vpack.c.bf16 %v3680_v10, %v3679_v8  ;;  %v3946_v8 = vld [vmem:[#allocation4 + $0x300] sm:$0xff] }
 0x337   :  { %3147 = vmatmul.mubr.f32.gmra.mrb[62].mxu0 %v8031_v21  ;;  %3382 = vmatmul.mubr.f32.gmra.mrb[70].mxu1 %v8031_v21  ;;  %v8228_v26 = vmax.f32 %v2813_v29, 0.0  ;;  %v3947_v29 = vld [vmem:[#allocation4 + $0x308] sm:$0xff]  ;;  %v4087_v10 = vld [vmem:[#allocation6 + $0x300] sm:$0xff] }
 0x338   :  { %5588 = vmatpush1.bf16.msra.mxu0 %v5587_v35  ;;  %5624 = vmatpush1.bf16.msra.mxu1 %v5623_v44  ;;  %v3810_v35 = vld [vmem:[#allocation6 + $0x250] sm:$0xff]  ;;  %v3811_v44 = vld [vmem:[#allocation6 + $0x258] sm:$0xff] }
 0x339   :  { %5030 = vmatprep.mubr.msk.f32.mxu0 %vm2734_vm1, %v7876_v22  ;;  %5038 = vmatprep.mubr.msk.f32.mxu1 %vm2734_vm1, %v7876_v22  ;;  %v5596_v22 = vpack.c.bf16 %v3409_v50, %v3408_v57  ;;  %v5677_v51 = vpack.c.bf16 %v3811_v44, %v3810_v35  ;;  %v3675_v50 = vld [vmem:[#allocation4 + $0x280] sm:$0xff]  ;;  %v3682_v35 = vld [vmem:[#allocation4 + $0x2b8] sm:$0xff]  ;;  %v3822_v44 = vld [vmem:[#allocation6 + $0x2b0] sm:$0xff] }
 0x33a   :  { %5589 = vmatprep.subr.bf16.mxu0 %v6580_v58  ;;  %5625 = vmatprep.subr.bf16.mxu1 %v6580_v58 }
 0x33c   :  { %5591 = vmatpush1.bf16.msra.mxu0 %v5590_v59  ;;  %5627 = vmatpush1.bf16.msra.mxu1 %v5626_v24  ;;  %v3812_v59 = vld [vmem:[#allocation6 + $0x260] sm:$0xff]  ;;  %v3813_v24 = vld [vmem:[#allocation6 + $0x268] sm:$0xff] }
 0x33d   :  { %5592 = vmatprep.subr.bf16.mxu0 %v6580_v58  ;;  %5628 = vmatprep.subr.bf16.mxu1 %v6580_v58  ;;  %v5680_v25 = vpack.c.bf16 %v3813_v24, %v3812_v59  ;;  %v3684_v59 = vld [vmem:[#allocation4 + $0x2c8] sm:$0xff]  ;;  %v3824_v24 = vld [vmem:[#allocation6 + $0x2c0] sm:$0xff] }
 0x340   :  { %5594 = vmatpush1.bf16.msra.mxu0 %v5593_v60  ;;  %5630 = vmatpush1.bf16.msra.mxu1 %v5629_v47  ;;  %v3815_v60 = vld [vmem:[#allocation6 + $0x278] sm:$0xff]  ;;  %v5647_v47 = vpack.c.bf16 %v3674_v42, %v3673_v56  ;;  %v3685_v42 = vld [vmem:[#allocation4 + $0x2d0] sm:$0xff] }
 0x341   :  { %5595 = vmatprep.subr.bf16.mxu0 %v6580_v58  ;;  %5631 = vmatprep.subr.bf16.mxu1 %v6580_v58  ;;  %v5683_v57 = vpack.c.bf16 %v3815_v60, %v3814_v43  ;;  %v3686_v43 = vld [vmem:[#allocation4 + $0x2d8] sm:$0xff]  ;;  %v3826_v60 = vld [vmem:[#allocation6 + $0x2d0] sm:$0xff] }
 0x344   :  { %5597 = vmatpush1.bf16.msra.mxu0 %v5596_v22  ;;  %5633 = vmatpush1.bf16.msra.mxu1 %v5632_v45  ;;  %v3817_v22 = vld [vmem:[#allocation6 + $0x288] sm:$0xff]  ;;  %v5650_v45 = vpack.c.bf16 %v3676_v52, %v3675_v50  ;;  %v3687_v52 = vld [vmem:[#allocation4 + $0x2e0] sm:$0xff] }
 0x345   :  { %5598 = vmatprep.subr.bf16.mxu0 %v6580_v58  ;;  %5634 = vmatprep.subr.bf16.mxu1 %v6580_v58  ;;  %v5686_v40 = vpack.c.bf16 %v3817_v22, %v3816_v20  ;;  %v3828_v20 = vld [vmem:[#allocation6 + $0x2e0] sm:$0xff]  ;;  %v3829_v22 = vld [vmem:[#allocation6 + $0x2e8] sm:$0xff] }
 0x348   :  { %5600 = vmatpush1.bf16.msra.mxu0 %v5599_v7  ;;  %5636 = vmatpush1.bf16.msra.mxu1 %v5635_v53  ;;  %v3819_v7 = vld [vmem:[#allocation6 + $0x298] sm:$0xff]  ;;  %v5653_v53 = vpack.c.bf16 %v3678_v31, %v3677_v15  ;;  %v3689_v15 = vld [vmem:[#allocation4 + $0x2f0] sm:$0xff] }
 0x349   :  { %5637 = vmatprep.subr.bf16.mxu0 %v6580_v58  ;;  %5673 = vmatprep.subr.bf16.mxu1 %v6580_v58  ;;  %v5689_v63 = vpack.c.bf16 %v3819_v7, %v3818_v55  ;;  %v3690_v31 = vld [vmem:[#allocation4 + $0x2f8] sm:$0xff]  ;;  %v3830_v55 = vld [vmem:[#allocation6 + $0x2f0] sm:$0xff] }
 0x34a   :  { %v3831_v7 = vld [vmem:[#allocation6 + $0x2f8] sm:$0xff] }
 0x34b   :  { %3480 = vmatmul.mubr.f32.vlgmr.msra.gmra.mrb[48].mxu0 %v7881_v41  ;;  %3618 = vmatmul.mubr.f32.vlgmr.msra.gmra.mrb[56].mxu1 %v7881_v41  ;;  %v5644_v41 = vpack.c.bf16 %v3672_v61, %v3671_v62  ;;  %v3683_v61 = vld [vmem:[#allocation4 + $0x2c0] sm:$0xff] }
 0x34c   :  { %5031 = vmatprep.mubr.msk.f32.mxu0 %vm2734_vm1, %v7906_v36  ;;  %5039 = vmatprep.mubr.msk.f32.mxu1 %vm2734_vm1, %v7906_v36 }
 0x34d   :  { %5639 = vmatpush1.bf16.msra.mxu0 %v5638_v4  ;;  %5675 = vmatpush1.bf16.msra.mxu1 %v5674_v14  ;;  %v3820_v4 = vld [vmem:[#allocation6 + $0x2a0] sm:$0xff]  ;;  %v3821_v14 = vld [vmem:[#allocation6 + $0x2a8] sm:$0xff] }
 0x34e   :  { %5640 = vmatprep.subr.bf16.mxu0 %v6580_v58  ;;  %5676 = vmatprep.subr.bf16.mxu1 %v6580_v58  ;;  %v5692_v37 = vpack.c.bf16 %v3821_v14, %v3820_v4  ;;  %v4088_v4 = vld [vmem:[#allocation6 + $0x308] sm:$0xff]  ;;  %v5710_v14 = vpack.c.bf16 %v3947_v29, %v3946_v8  ;;  %v4099_v8 = vld [vmem:[#allocation6 + $0x360] sm:$0xff] }
 0x34f   :  { %3485 = vmatmul.mubr.f32.gmra.mrb[50].mxu0 %v7911_v9  ;;  %3623 = vmatmul.mubr.f32.gmra.mrb[58].mxu1 %v7911_v9  ;;  %v5746_v32 = vpack.c.bf16 %v4088_v4, %v4087_v10  ;;  %v4100_v29 = vld [vmem:[#allocation6 + $0x368] sm:$0xff]  ;;  %v3960_v10 = vld [vmem:[#allocation4 + $0x370] sm:$0xff] }
 0x350   :  { %5032 = vmatprep.mubr.msk.f32.mxu0 %vm2734_vm1, %v7936_v16  ;;  %5040 = vmatprep.mubr.msk.f32.mxu1 %vm2734_vm1, %v7936_v16 }
 0x351   :  { %5642 = vmatpush1.bf16.msra.mxu0 %v5641_v54  ;;  %5678 = vmatpush1.bf16.msra.mxu1 %v5677_v51  ;;  %v3823_v54 = vld [vmem:[#allocation6 + $0x2b8] sm:$0xff]  ;;  %v5659_v51 = vpack.c.bf16 %v3682_v35, %v3681_v17  ;;  %v4089_v17 = vld [vmem:[#allocation6 + $0x310] sm:$0xff] }
 0x352   :  { %5643 = vmatprep.subr.bf16.mxu0 %v6580_v58  ;;  %5679 = vmatprep.subr.bf16.mxu1 %v6580_v58  ;;  %v5695_v62 = vpack.c.bf16 %v3823_v54, %v3822_v44  ;;  %v4090_v35 = vld [vmem:[#allocation6 + $0x318] sm:$0xff] }
 0x353   :  { %3490 = vmatmul.mubr.f32.gmra.mrb[52].mxu0 %v7941_v18  ;;  %3628 = vmatmul.mubr.f32.gmra.mrb[60].mxu1 %v7941_v18  ;;  %v5749_v54 = vpack.c.bf16 %v4090_v35, %v4089_v17  ;;  %v3962_v35 = vld [vmem:[#allocation4 + $0x380] sm:$0xff] }
 0x354   :  { %5033 = vmatprep.mubr.msk.f32.mxu0 %vm2734_vm1, %v7966_v3  ;;  %5041 = vmatprep.mubr.msk.f32.mxu1 %vm2734_vm1, %v7966_v3 }
 0x355   :  { %5645 = vmatpush1.bf16.msra.mxu0 %v5644_v41  ;;  %5681 = vmatpush1.bf16.msra.mxu1 %v5680_v25  ;;  %v3825_v41 = vld [vmem:[#allocation6 + $0x2c8] sm:$0xff]  ;;  %v5662_v25 = vpack.c.bf16 %v3684_v59, %v3683_v61  ;;  %v4091_v61 = vld [vmem:[#allocation6 + $0x320] sm:$0xff] }
 0x356   :  { %5646 = vmatprep.subr.bf16.mxu0 %v6580_v58  ;;  %5682 = vmatprep.subr.bf16.mxu1 %v6580_v58  ;;  %v5698_v56 = vpack.c.bf16 %v3825_v41, %v3824_v24  ;;  %v4092_v59 = vld [vmem:[#allocation6 + $0x328] sm:$0xff]  ;;  %v3952_v41 = vld [vmem:[#allocation4 + $0x330] sm:$0xff] }
 0x357   :  { %3495 = vmatmul.mubr.f32.gmra.mrb[54].mxu0 %v7972_v1  ;;  %3633 = vmatmul.mubr.f32.gmra.mrb[62].mxu1 %v7972_v1  ;;  %v5752_v24 = vpack.c.bf16 %v4092_v59, %v4091_v61  ;;  %v3964_v59 = vld [vmem:[#allocation4 + $0x390] sm:$0xff] }
 0x358   :  { %5034 = vmatprep.mubr.msk.f32.mxu0 %vm2734_vm1, %v8000_v39  ;;  %5042 = vmatprep.mubr.msk.f32.mxu1 %vm2734_vm1, %v8000_v39 }
 0x359   :  { %5648 = vmatpush1.bf16.msra.mxu0 %v5647_v47  ;;  %5684 = vmatpush1.bf16.msra.mxu1 %v5683_v57  ;;  %v3827_v47 = vld [vmem:[#allocation6 + $0x2d8] sm:$0xff]  ;;  %v5665_v57 = vpack.c.bf16 %v3686_v43, %v3685_v42 }
 0x35a   :  { %5649 = vmatprep.subr.bf16.mxu0 %v6580_v58  ;;  %5685 = vmatprep.subr.bf16.mxu1 %v6580_v58  ;;  %v5701_v50 = vpack.c.bf16 %v3827_v47, %v3826_v60  ;;  %v4094_v42 = vld [vmem:[#allocation6 + $0x338] sm:$0xff]  ;;  %v3954_v47 = vld [vmem:[#allocation4 + $0x340] sm:$0xff] }
 0x35b   :  { %3500 = vmatmul.mubr.f32.gmra.mrb[56].mxu0 %v8006_v49  ;;  %3638 = vmatmul.mubr.f32.gmra.mrb[64].mxu1 %v8006_v49 }
 0x35c   :  { %5035 = vmatprep.mubr.msk.f32.mxu0 %vm2734_vm1, %v8028_v30  ;;  %5043 = vmatprep.mubr.msk.f32.mxu1 %vm2734_vm1, %v8028_v30 }
 0x35d   :  { %5651 = vmatpush1.bf16.msra.mxu0 %v5650_v45  ;;  %5687 = vmatpush1.bf16.msra.mxu1 %v5686_v40  ;;  %v5704_v40 = vpack.c.bf16 %v3829_v22, %v3828_v20  ;;  %v3956_v22 = vld [vmem:[#allocation4 + $0x350] sm:$0xff] }
 0x35e   :  { %5652 = vmatprep.subr.bf16.mxu0 %v6580_v58  ;;  %5688 = vmatprep.subr.bf16.mxu1 %v6580_v58 }
 0x35f   :  { %3505 = vmatmul.mubr.f32.gmra.mrb[58].mxu0 %v8031_v21  ;;  %3643 = vmatmul.mubr.f32.gmra.mrb[66].mxu1 %v8031_v21 }
 0x360   :  { %5036 = vmatprep.mubr.msk.f32.mxu0 %vm2734_vm1, %v8052_v34  ;;  %5044 = vmatprep.mubr.msk.f32.mxu1 %vm2734_vm1, %v8052_v34 }
 0x361   :  { %5654 = vmatpush1.bf16.msra.mxu0 %v5653_v53  ;;  %5690 = vmatpush1.bf16.msra.mxu1 %v5689_v63  ;;  %v5671_v53 = vpack.c.bf16 %v3690_v31, %v3689_v15  ;;  %v5707_v63 = vpack.c.bf16 %v3831_v7, %v3830_v55  ;;  %v4098_v15 = vld [vmem:[#allocation6 + $0x358] sm:$0xff]  ;;  %v3958_v7 = vld [vmem:[#allocation4 + $0x360] sm:$0xff] }
 0x362   :  { %5655 = vmatprep.subr.bf16.mxu0 %v6580_v58  ;;  %5691 = vmatprep.subr.bf16.mxu1 %v6580_v58 }
 0x363   :  { %3510 = vmatmul.mubr.f32.gmra.mrb[60].mxu0 %v8057_v6  ;;  %3648 = vmatmul.mubr.f32.gmra.mrb[68].mxu1 %v8057_v6 }
 0x364   :  { %5037 = vmatprep.mubr.msk.f32.mxu0 %vm2734_vm1, %v8228_v26  ;;  %5045 = vmatprep.mubr.msk.f32.mxu1 %vm2734_vm1, %v8228_v26 }
 0x365   :  { %5657 = vmatpush1.bf16.msra.mxu0 %v5656_v23  ;;  %5693 = vmatpush1.bf16.msra.mxu1 %v5692_v37  ;;  %v3948_v23 = vld [vmem:[#allocation4 + $0x310] sm:$0xff]  ;;  %v3949_v37 = vld [vmem:[#allocation4 + $0x318] sm:$0xff] }
 0x366   :  { %5658 = vmatprep.subr.bf16.mxu0 %v6580_v58  ;;  %5694 = vmatprep.subr.bf16.mxu1 %v6580_v58  ;;  %v5713_v44 = vpack.c.bf16 %v3949_v37, %v3948_v23  ;;  %v4102_v23 = vld [vmem:[#allocation6 + $0x378] sm:$0xff] }
 0x367   :  { %3515 = vmatmul.mubr.f32.gmra.mrb[62].mxu0 %v8238_v2  ;;  %3653 = vmatmul.mubr.f32.gmra.mrb[70].mxu1 %v8238_v2 }
 0x368   :  { %5046 = vmatprep.mubr.msk.f32.mxu0 %vm2734_vm1, %v7906_v36  ;;  %5054 = vmatprep.mubr.msk.f32.mxu1 %vm2734_vm1, %v7906_v36  ;;  %v3688_v36 = vld [vmem:[#allocation4 + $0x2e8] sm:$0xff] }
 0x369   :  { %5660 = vmatpush1.bf16.msra.mxu0 %v5659_v51  ;;  %5696 = vmatpush1.bf16.msra.mxu1 %v5695_v62  ;;  %v5668_v45 = vpack.c.bf16 %v3688_v36, %v3687_v52  ;;  %v3950_v51 = vld [vmem:[#allocation4 + $0x320] sm:$0xff]  ;;  %v3951_v62 = vld [vmem:[#allocation4 + $0x328] sm:$0xff] }
 0x36a   :  { %5661 = vmatprep.subr.bf16.mxu0 %v6580_v58  ;;  %5697 = vmatprep.subr.bf16.mxu1 %v6580_v58  ;;  %v4096_v52 = vld [vmem:[#allocation6 + $0x348] sm:$0xff] }
 0x36d   :  { %5663 = vmatpush1.bf16.msra.mxu0 %v5662_v25  ;;  %5699 = vmatpush1.bf16.msra.mxu1 %v5698_v56  ;;  %v3953_v25 = vld [vmem:[#allocation4 + $0x338] sm:$0xff]  ;;  %v4093_v56 = vld [vmem:[#allocation6 + $0x330] sm:$0xff] }
 0x36e   :  { %5664 = vmatprep.subr.bf16.mxu0 %v6580_v58  ;;  %5700 = vmatprep.subr.bf16.mxu1 %v6580_v58  ;;  %v5719_v43 = vpack.c.bf16 %v3953_v25, %v3952_v41  ;;  %v5755_v60 = vpack.c.bf16 %v4094_v42, %v4093_v56  ;;  %v4106_v41 = vld [vmem:[#allocation6 + $0x398] sm:$0xff]  ;;  %v3966_v42 = vld [vmem:[#allocation4 + $0x3a0] sm:$0xff] }
 0x371   :  { %5666 = vmatpush1.bf16.msra.mxu0 %v5665_v57  ;;  %5702 = vmatpush1.bf16.msra.mxu1 %v5701_v50  ;;  %v3955_v57 = vld [vmem:[#allocation4 + $0x348] sm:$0xff]  ;;  %v4095_v50 = vld [vmem:[#allocation6 + $0x340] sm:$0xff] }
 0x372   :  { %5667 = vmatprep.subr.bf16.mxu0 %v6580_v58  ;;  %5703 = vmatprep.subr.bf16.mxu1 %v6580_v58  ;;  %v5722_v36 = vpack.c.bf16 %v3955_v57, %v3954_v47  ;;  %v5758_v20 = vpack.c.bf16 %v4096_v52, %v4095_v50  ;;  %v3968_v50 = vld [vmem:[#allocation4 + $0x3b0] sm:$0xff]  ;;  %v3969_v52 = vld [vmem:[#allocation4 + $0x3b8] sm:$0xff] }
 0x375   :  { %5669 = vmatpush1.bf16.msra.mxu0 %v5668_v45  ;;  %5705 = vmatpush1.bf16.msra.mxu1 %v5704_v40  ;;  %v3957_v45 = vld [vmem:[#allocation4 + $0x358] sm:$0xff]  ;;  %v4097_v40 = vld [vmem:[#allocation6 + $0x350] sm:$0xff] }
 0x376   :  { %5670 = vmatprep.subr.bf16.mxu0 %v6580_v58  ;;  %5706 = vmatprep.subr.bf16.mxu1 %v6580_v58  ;;  %v5725_v31 = vpack.c.bf16 %v3957_v45, %v3956_v22  ;;  %v5761_v55 = vpack.c.bf16 %v4098_v15, %v4097_v40  ;;  %v5743_v22 = vpack.c.bf16 %v3969_v52, %v3968_v50  ;;  %v4251_v40 = vld [vmem:[#allocation7] sm:$0xff]  ;;  %v4252_v15 = vld [vmem:[#allocation7 + $0x8] sm:$0xff] }
 0x379   :  { %5672 = vmatpush1.bf16.msra.mxu0 %v5671_v53  ;;  %5708 = vmatpush1.bf16.msra.mxu1 %v5707_v63  ;;  %v2815_v53 = vadd.f32 %v7838_v46, %v2777_v5  ;;  %v3959_v63 = vld [vmem:[#allocation4 + $0x368] sm:$0xff]  ;;  %v5764_v5 = vpack.c.bf16 %v4100_v29, %v4099_v8  ;;  %v4254_v8 = vld [vmem:[#allocation7 + $0x18] sm:$0xff]  ;;  %v4270_v29 = vld [vmem:[#allocation7 + $0x90] sm:$0xff] }
 0x37a   :  { %5709 = vmatprep.subr.bf16.mxu0 %v6580_v58  ;;  %5745 = vmatprep.subr.bf16.mxu1 %v6580_v58  ;;  %v5728_v27 = vpack.c.bf16 %v3959_v63, %v3958_v7  ;;  %v5806_v7 = vpack.c.bf16 %v4252_v15, %v4251_v40  ;;  %v8409_v15 = vld [vmem:[%s8465_s6] ss:$0 sm:$0xff] }
 0x37b   :  { %v8310_v4 = vmax.f32 %v2815_v53, 0.0  ;;  %v4253_v53 = vld [vmem:[#allocation7 + $0x10] sm:$0xff] }
 0x37c   :  { %3759 = vmatmul.mubr.f32.vlgmr.msra.gmra.mrb[48].mxu0 %v7911_v9  ;;  %3897 = vmatmul.mubr.f32.vlgmr.msra.gmra.mrb[56].mxu1 %v7911_v9  ;;  %v5716_v9 = vpack.c.bf16 %v3951_v62, %v3950_v51  ;;  %v4104_v51 = vld [vmem:[#allocation6 + $0x388] sm:$0xff] }
 0x37d   :  { %5047 = vmatprep.mubr.msk.f32.mxu0 %vm2734_vm1, %v7936_v16  ;;  %5055 = vmatprep.mubr.msk.f32.mxu1 %vm2734_vm1, %v7936_v16 }
 0x37e   :  { %5711 = vmatpush1.bf16.msra.mxu0 %v5710_v14  ;;  %5747 = vmatpush1.bf16.msra.mxu1 %v5746_v32  ;;  %v3961_v14 = vld [vmem:[#allocation4 + $0x378] sm:$0xff]  ;;  %v4101_v32 = vld [vmem:[#allocation6 + $0x370] sm:$0xff] }
 0x37f   :  { %5712 = vmatprep.subr.bf16.mxu0 %v6580_v58  ;;  %5748 = vmatprep.subr.bf16.mxu1 %v6580_v58  ;;  %v5731_v37 = vpack.c.bf16 %v3961_v14, %v3960_v10  ;;  %v5767_v17 = vpack.c.bf16 %v4102_v23, %v4101_v32  ;;  %v5785_v10 = vpack.c.bf16 %v4271_v28, %v4270_v29  ;;  %v4256_v14 = vld [vmem:[#allocation7 + $0x28] sm:$0xff]  ;;  %v4272_v32 = vld [vmem:[#allocation7 + $0xa0] sm:$0xff] }
 0x380   :  { %3764 = vmatmul.mubr.f32.gmra.mrb[50].mxu0 %v7941_v18  ;;  %3902 = vmatmul.mubr.f32.gmra.mrb[58].mxu1 %v7941_v18  ;;  %v4273_v23 = vld [vmem:[#allocation7 + $0xa8] sm:$0xff] }
 0x381   :  { %5048 = vmatprep.mubr.msk.f32.mxu0 %vm2734_vm1, %v7966_v3  ;;  %5056 = vmatprep.mubr.msk.f32.mxu1 %vm2734_vm1, %v7966_v3 }
 0x382   :  { %5714 = vmatpush1.bf16.msra.mxu0 %v5713_v44  ;;  %5750 = vmatpush1.bf16.msra.mxu1 %v5749_v54  ;;  %v3963_v44 = vld [vmem:[#allocation4 + $0x388] sm:$0xff]  ;;  %v4103_v54 = vld [vmem:[#allocation6 + $0x380] sm:$0xff] }
 0x383   :  { %5715 = vmatprep.subr.bf16.mxu0 %v6580_v58  ;;  %5751 = vmatprep.subr.bf16.mxu1 %v6580_v58  ;;  %v5734_v62 = vpack.c.bf16 %v3963_v44, %v3962_v35  ;;  %v5770_v61 = vpack.c.bf16 %v4104_v51, %v4103_v54  ;;  %v4260_v35 = vld [vmem:[#allocation7 + $0x48] sm:$0xff]  ;;  %v4278_v51 = vld [vmem:[#allocation7 + $0xd0] sm:$0xff] }
 0x384   :  { %3769 = vmatmul.mubr.f32.gmra.mrb[52].mxu0 %v7972_v1  ;;  %3907 = vmatmul.mubr.f32.gmra.mrb[60].mxu1 %v7972_v1  ;;  %v4264_v44 = vld [vmem:[#allocation7 + $0x68] sm:$0xff] }
 0x385   :  { %5049 = vmatprep.mubr.msk.f32.mxu0 %vm2734_vm1, %v8000_v39  ;;  %5057 = vmatprep.mubr.msk.f32.mxu1 %vm2734_vm1, %v8000_v39 }
 0x386   :  { %5717 = vmatpush1.bf16.msra.mxu0 %v5716_v9  ;;  %5753 = vmatpush1.bf16.msra.mxu1 %v5752_v24  ;;  %v3965_v9 = vld [vmem:[#allocation4 + $0x398] sm:$0xff]  ;;  %v4105_v24 = vld [vmem:[#allocation6 + $0x390] sm:$0xff] }
 0x387   :  { %5718 = vmatprep.subr.bf16.mxu0 %v6580_v58  ;;  %5754 = vmatprep.subr.bf16.mxu1 %v6580_v58  ;;  %v5737_v25 = vpack.c.bf16 %v3965_v9, %v3964_v59  ;;  %v5773_v56 = vpack.c.bf16 %v4106_v41, %v4105_v24  ;;  %v4266_v9 = vld [vmem:[#allocation7 + $0x78] sm:$0xff]  ;;  %v4280_v41 = vld [vmem:[#allocation7 + $0xe0] sm:$0xff] }
 0x388   :  { %3774 = vmatmul.mubr.f32.gmra.mrb[54].mxu0 %v8006_v49  ;;  %3912 = vmatmul.mubr.f32.gmra.mrb[62].mxu1 %v8006_v49 }
 0x389   :  { %5050 = vmatprep.mubr.msk.f32.mxu0 %vm2734_vm1, %v8028_v30  ;;  %5058 = vmatprep.mubr.msk.f32.mxu1 %vm2734_vm1, %v8028_v30 }
 0x38a   :  { %5720 = vmatpush1.bf16.msra.mxu0 %v5719_v43  ;;  %5756 = vmatpush1.bf16.msra.mxu1 %v5755_v60  ;;  %v4107_v43 = vld [vmem:[#allocation6 + $0x3a0] sm:$0xff]  ;;  %v4108_v60 = vld [vmem:[#allocation6 + $0x3a8] sm:$0xff] }
 0x38b   :  { %5721 = vmatprep.subr.bf16.mxu0 %v6580_v58  ;;  %5757 = vmatprep.subr.bf16.mxu1 %v6580_v58  ;;  %v5776_v57 = vpack.c.bf16 %v4108_v60, %v4107_v43 }
 0x38c   :  { %3779 = vmatmul.mubr.f32.gmra.mrb[56].mxu0 %v8031_v21  ;;  %3917 = vmatmul.mubr.f32.gmra.mrb[64].mxu1 %v8031_v21 }
 0x38d   :  { %5051 = vmatprep.mubr.msk.f32.mxu0 %vm2734_vm1, %v8052_v34  ;;  %5059 = vmatprep.mubr.msk.f32.mxu1 %vm2734_vm1, %v8052_v34 }
 0x38e   :  { %5723 = vmatpush1.bf16.msra.mxu0 %v5722_v36  ;;  %5759 = vmatpush1.bf16.msra.mxu1 %v5758_v20  ;;  %v4109_v36 = vld [vmem:[#allocation6 + $0x3b0] sm:$0xff]  ;;  %v4110_v20 = vld [vmem:[#allocation6 + $0x3b8] sm:$0xff] }
 0x38f   :  { %5724 = vmatprep.subr.bf16.mxu0 %v6580_v58  ;;  %5760 = vmatprep.subr.bf16.mxu1 %v6580_v58  ;;  %v5779_v45 = vpack.c.bf16 %v4110_v20, %v4109_v36 }
 0x390   :  { %3784 = vmatmul.mubr.f32.gmra.mrb[58].mxu0 %v8057_v6  ;;  %3922 = vmatmul.mubr.f32.gmra.mrb[66].mxu1 %v8057_v6 }
 0x391   :  { %5052 = vmatprep.mubr.msk.f32.mxu0 %vm2734_vm1, %v8228_v26  ;;  %5060 = vmatprep.mubr.msk.f32.mxu1 %vm2734_vm1, %v8228_v26 }
 0x392   :  { %5726 = vmatpush1.bf16.msra.mxu0 %v5725_v31  ;;  %5762 = vmatpush1.bf16.msra.mxu1 %v5761_v55  ;;  %v4268_v31 = vld [vmem:[#allocation7 + $0x80] sm:$0xff]  ;;  %v4269_v55 = vld [vmem:[#allocation7 + $0x88] sm:$0xff] }
 0x393   :  { %5727 = vmatprep.subr.bf16.mxu0 %v6580_v58  ;;  %5763 = vmatprep.subr.bf16.mxu1 %v6580_v58  ;;  %v5782_v63 = vpack.c.bf16 %v4269_v55, %v4268_v31  ;;  %v4513_v55 = vld [vmem:[#allocation7 + $0x180] sm:$0xff] }
 0x394   :  { %3789 = vmatmul.mubr.f32.gmra.mrb[60].mxu0 %v8238_v2  ;;  %3927 = vmatmul.mubr.f32.gmra.mrb[68].mxu1 %v8238_v2 }
 0x395   :  { %5053 = vmatprep.mubr.msk.f32.mxu0 %vm2734_vm1, %v8310_v4  ;;  %5061 = vmatprep.mubr.msk.f32.mxu1 %vm2734_vm1, %v8310_v4 }
 0x396   :  { %5729 = vmatpush1.bf16.msra.mxu0 %v5728_v27  ;;  %5765 = vmatpush1.bf16.msra.mxu1 %v5764_v5  ;;  %v5809_v27 = vpack.c.bf16 %v4254_v8, %v4253_v53  ;;  %v4255_v5 = vld [vmem:[#allocation7 + $0x20] sm:$0xff] }
 0x397   :  { %5730 = vmatprep.subr.bf16.mxu0 %v6580_v58  ;;  %5766 = vmatprep.subr.bf16.mxu1 %v6580_v58 }
 0x398   :  { %3794 = vmatmul.mubr.f32.gmra.mrb[62].mxu0 %v8320_v48  ;;  %3932 = vmatmul.mubr.f32.gmra.mrb[70].mxu1 %v8320_v48 }
 0x399   :  { %5062 = vmatprep.mubr.msk.f32.mxu0 %vm2734_vm1, %v7936_v16  ;;  %5070 = vmatprep.mubr.msk.f32.mxu1 %vm2734_vm1, %v7936_v16  ;;  %v3967_v16 = vld [vmem:[#allocation4 + $0x3a8] sm:$0xff] }
 0x39a   :  { %5732 = vmatpush1.bf16.msra.mxu0 %v5731_v37  ;;  %5768 = vmatpush1.bf16.msra.mxu1 %v5767_v17  ;;  %v5740_v47 = vpack.c.bf16 %v3967_v16, %v3966_v42  ;;  %v4257_v37 = vld [vmem:[#allocation7 + $0x30] sm:$0xff]  ;;  %v4258_v17 = vld [vmem:[#allocation7 + $0x38] sm:$0xff] }
 0x39b   :  { %5733 = vmatprep.subr.bf16.mxu0 %v6580_v58  ;;  %5769 = vmatprep.subr.bf16.mxu1 %v6580_v58  ;;  %v4282_v42 = vld [vmem:[#allocation7 + $0xf0] sm:$0xff]  ;;  %v4283_v16 = vld [vmem:[#allocation7 + $0xf8] sm:$0xff] }
 0x39c   :  { %v5803_v43 = vpack.c.bf16 %v4283_v16, %v4282_v42  ;;  %v4521_v42 = vld [vmem:[#allocation7 + $0x1c0] sm:$0xff]  ;;  %v4522_v16 = vld [vmem:[#allocation7 + $0x1c8] sm:$0xff] }
 0x39e   :  { %5735 = vmatpush1.bf16.msra.mxu0 %v5734_v62  ;;  %5771 = vmatpush1.bf16.msra.mxu1 %v5770_v61  ;;  %v4279_v62 = vld [vmem:[#allocation7 + $0xd8] sm:$0xff]  ;;  %v4265_v61 = vld [vmem:[#allocation7 + $0x70] sm:$0xff] }
 0x39f   :  { %5736 = vmatprep.subr.bf16.mxu0 %v6580_v58  ;;  %5772 = vmatprep.subr.bf16.mxu1 %v6580_v58  ;;  %v5797_v59 = vpack.c.bf16 %v4279_v62, %v4278_v51  ;;  %v5827_v24 = vpack.c.bf16 %v4266_v9, %v4265_v61 }
 0x3a2   :  { %5738 = vmatpush1.bf16.msra.mxu0 %v5737_v25  ;;  %5774 = vmatpush1.bf16.msra.mxu1 %v5773_v56  ;;  %v4281_v25 = vld [vmem:[#allocation7 + $0xe8] sm:$0xff] }
 0x3a3   :  { %5739 = vmatprep.subr.bf16.mxu0 %v6580_v58  ;;  %5775 = vmatprep.subr.bf16.mxu1 %v6580_v58  ;;  %v5800_v56 = vpack.c.bf16 %v4281_v25, %v4280_v41  ;;  %v4429_v41 = vld [vmem:[#allocation7 + $0x120] sm:$0xff] }
 0x3a6   :  { %5741 = vmatpush1.bf16.msra.mxu0 %v5740_v47  ;;  %5777 = vmatpush1.bf16.msra.mxu1 %v5776_v57 }
 0x3a7   :  { %5742 = vmatprep.subr.bf16.mxu0 %v6580_v58  ;;  %5778 = vmatprep.subr.bf16.mxu1 %v6580_v58 }
 0x3aa   :  { %5744 = vmatpush1.bf16.msra.mxu0 %v5743_v22  ;;  %5780 = vmatpush1.bf16.msra.mxu1 %v5779_v45 }
 0x3ab   :  { %5805 = vmatprep.subr.bf16.mxu1 %v6580_v58  ;;  %5781 = vmatprep.subr.bf16.mxu0 %v6580_v58 }
 0x3ad   :  { %4038 = vmatmul.mubr.f32.vlgmr.msra.gmra.mrb[48].mxu0 %v7941_v18  ;;  %4176 = vmatmul.mubr.f32.vlgmr.msra.gmra.mrb[56].mxu1 %v7941_v18  ;;  %v5812_v18 = vpack.c.bf16 %v4256_v14, %v4255_v5  ;;  %v4515_v14 = vld [vmem:[#allocation7 + $0x190] sm:$0xff] }
 0x3ae   :  { %5063 = vmatprep.mubr.msk.f32.mxu0 %vm2734_vm1, %v7966_v3  ;;  %5071 = vmatprep.mubr.msk.f32.mxu1 %vm2734_vm1, %v7966_v3  ;;  %v5788_v3 = vpack.c.bf16 %v4273_v23, %v4272_v32  ;;  %v4516_v32 = vld [vmem:[#allocation7 + $0x198] sm:$0xff] }
 0x3af   :  { %5807 = vmatpush3.bf16.msra.mxu1 %v5806_v7  ;;  %5783 = vmatpush3.bf16.msra.mxu0 %v5782_v63  ;;  %v4514_v7 = vld [vmem:[#allocation7 + $0x188] sm:$0xff] }
 0x3b0   :  { %5808 = vmatprep.subr.bf16.mxu1 %v6580_v58  ;;  %5784 = vmatprep.subr.bf16.mxu0 %v6580_v58  ;;  %v5854_v5 = vpack.c.bf16 %v4514_v7, %v4513_v55 }
 0x3b1   :  { %4043 = vmatmul.mubr.f32.gmra.mrb[50].mxu0 %v7972_v1  ;;  %4181 = vmatmul.mubr.f32.gmra.mrb[58].mxu1 %v7972_v1  ;;  %v5815_v1 = vpack.c.bf16 %v4258_v17, %v4257_v37 }
 0x3b2   :  { %5064 = vmatprep.mubr.msk.f32.mxu0 %vm2734_vm1, %v8000_v39  ;;  %5072 = vmatprep.mubr.msk.f32.mxu1 %vm2734_vm1, %v8000_v39  ;;  %v4259_v39 = vld [vmem:[#allocation7 + $0x40] sm:$0xff] }
 0x3b3   :  { %5810 = vmatpush3.bf16.msra.mxu1 %v5809_v27  ;;  %5786 = vmatpush3.bf16.msra.mxu0 %v5785_v10 }
 0x3b4   :  { %5811 = vmatprep.subr.bf16.mxu1 %v6580_v58  ;;  %5787 = vmatprep.subr.bf16.mxu0 %v6580_v58 }
 0x3b5   :  { %4048 = vmatmul.mubr.f32.gmra.mrb[52].mxu0 %v8006_v49  ;;  %4186 = vmatmul.mubr.f32.gmra.mrb[60].mxu1 %v8006_v49  ;;  %v5818_v49 = vpack.c.bf16 %v4260_v35, %v4259_v39  ;;  %v4425_v39 = vld [vmem:[#allocation7 + $0x100] sm:$0xff] }
 0x3b6   :  { %5065 = vmatprep.mubr.msk.f32.mxu0 %vm2734_vm1, %v8028_v30  ;;  %5073 = vmatprep.mubr.msk.f32.mxu1 %vm2734_vm1, %v8028_v30  ;;  %v2817_v30 = vadd.f32 %v7838_v46, %v2781_v11 }
 0x3b7   :  { %5813 = vmatpush3.bf16.msra.mxu1 %v5812_v18  ;;  %5789 = vmatpush3.bf16.msra.mxu0 %v5788_v3 }
 0x3b8   :  { %5814 = vmatprep.subr.bf16.mxu1 %v6580_v58  ;;  %5790 = vmatprep.subr.bf16.mxu0 %v6580_v58 }
 0x3b9   :  { %4053 = vmatmul.mubr.f32.gmra.mrb[54].mxu0 %v8031_v21  ;;  %4191 = vmatmul.mubr.f32.gmra.mrb[62].mxu1 %v8031_v21  ;;  %v2816_v21 = vadd.f32 %v7832_v13, %v8116_v12  ;;  %v4276_v13 = vld [vmem:[#allocation7 + $0xc0] sm:$0xff]  ;;  %v4277_v12 = vld [vmem:[#allocation7 + $0xc8] sm:$0xff] }
 0x3ba   :  { %5066 = vmatprep.mubr.msk.f32.mxu0 %vm2734_vm1, %v8052_v34  ;;  %5074 = vmatprep.mubr.msk.f32.mxu1 %vm2734_vm1, %v8052_v34  ;;  %v2841_v34 = vmax.f32 %v2817_v30, 0.0  ;;  %v4517_v30 = vld [vmem:[#allocation7 + $0x1a0] sm:$0xff] }
 0x3bb   :  { %5816 = vmatpush3.bf16.msra.mxu1 %v5815_v1  ;;  %v2840_v46 = vmax.f32 %v2816_v21, 0.0  ;;  %v5857_v1 = vpack.c.bf16 %v4516_v32, %v4515_v14  ;;  %v4518_v21 = vld [vmem:[#allocation7 + $0x1a8] sm:$0xff] }
 0x3bc   :  { %5817 = vmatprep.subr.bf16.mxu1 %v6580_v58  ;;  %v4526_v14 = vld [vmem:[#allocation7 + $0x1e8] sm:$0xff] }
 0x3bd   :  { %4058 = vmatmul.mubr.f32.gmra.mrb[56].mxu0 %v8057_v6  ;;  %4196 = vmatmul.mubr.f32.gmra.mrb[64].mxu1 %v8057_v6  ;;  %v4274_v6 = vld [vmem:[#allocation7 + $0xb0] sm:$0xff] }
 0x3be   :  { %5067 = vmatprep.mubr.msk.f32.mxu0 %vm2734_vm1, %v8228_v26  ;;  %5075 = vmatprep.mubr.msk.f32.mxu1 %vm2734_vm1, %v8228_v26  ;;  %v5791_v11 = vpack.c.bf16 %v4275_v33, %v4274_v6  ;;  %v4262_v26 = vld [vmem:[#allocation7 + $0x58] sm:$0xff] }
 0x3bf   :  { %5819 = vmatpush3.bf16.msra.mxu1 %v5818_v49  ;;  %v4426_v49 = vld [vmem:[#allocation7 + $0x108] sm:$0xff] }
 0x3c0   :  { %5820 = vmatprep.subr.bf16.mxu1 %v6580_v58  ;;  %5792 = vmatpush3.bf16.msra.mxu0 %v5791_v11 }
 0x3c1   :  { %4063 = vmatmul.mubr.f32.gmra.mrb[58].mxu0 %v8238_v2  ;;  %4201 = vmatmul.mubr.f32.gmra.mrb[66].mxu1 %v8238_v2  ;;  %v5821_v2 = vpack.c.bf16 %v4262_v26, %v4261_v19  ;;  %v5830_v26 = vpack.c.bf16 %v4426_v49, %v4425_v39  ;;  %v4437_v49 = vld [vmem:[#allocation7 + $0x160] sm:$0xff] }
 0x3c2   :  { %5068 = vmatprep.mubr.msk.f32.mxu0 %vm2734_vm1, %v8310_v4  ;;  %5076 = vmatprep.mubr.msk.f32.mxu1 %vm2734_vm1, %v8310_v4  ;;  %v4263_v4 = vld [vmem:[#allocation7 + $0x60] sm:$0xff] }
 0x3c3   :  { %5822 = vmatpush3.bf16.msra.mxu1 %v5821_v2  ;;  %5793 = vmatprep.subr.bf16.mxu0 %v6580_v58  ;;  %v5824_v54 = vpack.c.bf16 %v4264_v44, %v4263_v4  ;;  %v5860_v2 = vpack.c.bf16 %v4518_v21, %v4517_v30  ;;  %v4428_v4 = vld [vmem:[#allocation7 + $0x118] sm:$0xff]  ;;  %v4438_v30 = vld [vmem:[#allocation7 + $0x168] sm:$0xff] }
 0x3c4   :  { %5823 = vmatprep.subr.bf16.mxu1 %v6580_v58  ;;  %v4520_v44 = vld [vmem:[#allocation7 + $0x1b8] sm:$0xff]  ;;  %v5848_v21 = vpack.c.bf16 %v4438_v30, %v4437_v49 }
 0x3c5   :  { %4068 = vmatmul.mubr.f32.gmra.mrb[60].mxu0 %v8320_v48  ;;  %4206 = vmatmul.mubr.f32.gmra.mrb[68].mxu1 %v8320_v48  ;;  %v5794_v48 = vpack.c.bf16 %v4277_v12, %v4276_v13  ;;  %v4427_v13 = vld [vmem:[#allocation7 + $0x110] sm:$0xff] }
 0x3c6   :  { %5069 = vmatprep.mubr.msk.f32.mxu0 %vm2734_vm1, %v2841_v34  ;;  %5077 = vmatprep.mubr.msk.f32.mxu1 %vm2734_vm1, %v2841_v34  ;;  %v5833_v9 = vpack.c.bf16 %v4428_v4, %v4427_v13  ;;  %v4611_v13 = vld [vmem:[#allocation9 + $0x10] sm:$0xff]  ;;  %v4612_v4 = vld [vmem:[#allocation9 + $0x18] sm:$0xff] }
 0x3c7   :  { %5795 = vmatpush3.bf16.msra.mxu0 %v5794_v48  ;;  %5825 = vmatpush3.bf16.msra.mxu1 %v5824_v54  ;;  %v4519_v48 = vld [vmem:[#allocation7 + $0x1b0] sm:$0xff] }
 0x3c8   :  { %5796 = vmatprep.subr.bf16.mxu0 %v6580_v58  ;;  %5826 = vmatprep.subr.bf16.mxu1 %v6580_v58 }
 0x3c9   :  { %4073 = vmatmul.mubr.f32.gmra.mrb[62].mxu0 %v2840_v46  ;;  %4211 = vmatmul.mubr.f32.gmra.mrb[70].mxu1 %v2840_v46 }
 0x3ca   :  { %5233 = vmatprep.mubr.msk.f32.mxu1 %vm6581_vm2, %v6579_v0  ;;  %5198 = vmatprep.mubr.msk.f32.mxu0 %vm6581_vm2, %v6579_v0 }
 0x3cb   :  { %5798 = vmatpush3.bf16.msra.mxu0 %v5797_v59  ;;  %5828 = vmatpush3.bf16.msra.mxu1 %v5827_v24  ;;  %v5863_v24 = vpack.c.bf16 %v4520_v44, %v4519_v48  ;;  %v5881_v48 = vpack.c.bf16 %v4612_v4, %v4611_v13  ;;  %v4614_v44 = vld [vmem:[#allocation9 + $0x28] sm:$0xff] }
 0x3cc   :  { %5799 = vmatprep.subr.bf16.mxu0 %v6580_v58  ;;  %5853 = vmatprep.subr.bf16.mxu1 %v6580_v58 }
 0x3cf   :  { %5801 = vmatpush3.bf16.msra.mxu0 %v5800_v56  ;;  %v4430_v56 = vld [vmem:[#allocation7 + $0x128] sm:$0xff] }
 0x3d0   :  { %5802 = vmatprep.subr.bf16.mxu0 %v6580_v58 }
 0x3d3   :  { %5804 = vmatpush3.bf16.msra.mxu0 %v5803_v43 }
 0x3d4   :  { %5829 = vmatprep.subr.bf16.mxu0 %v6580_v58 }
 0x480   :  { %v4039_v60 = vpop.f32.mrb[48].mxu0  ;;  %v4177_v47 = vpop.f32.mrb[56].mxu1 }
 0x481   :  { %v4224_v57 = vmax.f32 %v4039_v60, %v4177_v47  ;;  %v4041_v50 = vpop.f32.mrb[49].mxu0  ;;  %v4179_v52 = vpop.f32.mrb[57].mxu1 }
 0x482   :  { %v5836_v52 = vpack.c.bf16 %v4430_v56, %v4429_v41  ;;  %v4620_v41 = vld [vmem:[#allocation9 + $0x58] sm:$0xff]  ;;  %v4621_v56 = vld [vmem:[#allocation9 + $0x60] sm:$0xff] }
 0x484   :  { %v4044_v36 = vpop.f32.mrb[50].mxu0  ;;  %v4182_v20 = vpop.f32.mrb[58].mxu1 }
 0x485   :  { %v4225_v22 = vmax.f32 %v4044_v36, %v4182_v20  ;;  %v4046_v45 = vpop.f32.mrb[51].mxu0  ;;  %v4184_v40 = vpop.f32.mrb[59].mxu1  ;;  %v5866_v36 = vpack.c.bf16 %v4522_v16, %v4521_v42  ;;  %v4431_v20 = vld [vmem:[#allocation7 + $0x130] sm:$0xff]  ;;  %v4622_v42 = vld [vmem:[#allocation9 + $0x68] sm:$0xff] }
 0x486   :  { %v4523_v45 = vld [vmem:[#allocation7 + $0x1d0] sm:$0xff]  ;;  %v4524_v40 = vld [vmem:[#allocation7 + $0x1d8] sm:$0xff]  ;;  %v5896_v16 = vpack.c.bf16 %v4622_v42, %v4621_v56 }
 0x487   :  { %v4232_v31 = vmax.f32 %v4224_v57, %v4225_v22  ;;  %v4432_v22 = vld [vmem:[#allocation7 + $0x138] sm:$0xff] }
 0x488   :  { %v4049_v53 = vpop.f32.mrb[52].mxu0  ;;  %v4187_v63 = vpop.f32.mrb[60].mxu1 }
 0x489   :  { %v4243_v8 = vadd.f32 %v8409_v15, %v4232_v31  ;;  %v4226_v29 = vmax.f32 %v4049_v53, %v4187_v63  ;;  %v4051_v28 = vpop.f32.mrb[53].mxu0  ;;  %v4189_v27 = vpop.f32.mrb[61].mxu1 }
 0x48a   :  { %v4433_v28 = vld [vmem:[#allocation7 + $0x140] sm:$0xff] }
 0x48b   :  { %v4247_v10 = vmax.f32 %v4243_v8, 0.0  ;;  %v5839_v8 = vpack.c.bf16 %v4432_v22, %v4431_v20 }
 0x48c   :  { %v4054_v23 = vpop.f32.mrb[54].mxu0  ;;  %v4192_v18 = vpop.f32.mrb[62].mxu1 }
 0x48d   :  { %v4227_v3 = vmax.f32 %v4054_v23, %v4192_v18  ;;  %v4056_v37 = vpop.f32.mrb[55].mxu0  ;;  %v4194_v17 = vpop.f32.mrb[63].mxu1  ;;  %5234 = vmatmul.mubr.f32.vlgmr.msra.gmra.mrb[72].mxu1 %v4247_v10  ;;  %v4525_v10 = vld [vmem:[#allocation7 + $0x1e0] sm:$0xff]  ;;  %v4435_v18 = vld [vmem:[#allocation7 + $0x150] sm:$0xff] }
 0x48e   :  { %5855 = vmatpush3.bf16.msra.mxu1 %v5854_v5  ;;  %5303 = vmatprep.mubr.msk.f32.mxu1 %vm6581_vm2, %v6579_v0  ;;  %v4434_v5 = vld [vmem:[#allocation7 + $0x148] sm:$0xff]  ;;  %v5872_v23 = vpack.c.bf16 %v4526_v14, %v4525_v10  ;;  %v4527_v37 = vld [vmem:[#allocation7 + $0x1f0] sm:$0xff]  ;;  %v4528_v17 = vld [vmem:[#allocation7 + $0x1f8] sm:$0xff] }
 0x48f   :  { %v4233_v35 = vmax.f32 %v4226_v29, %v4227_v3  ;;  %5856 = vmatprep.subr.bf16.mxu1 %v6580_v58  ;;  %v5869_v29 = vpack.c.bf16 %v4524_v40, %v4523_v45  ;;  %v5842_v32 = vpack.c.bf16 %v4434_v5, %v4433_v28  ;;  %v4436_v3 = vld [vmem:[#allocation7 + $0x158] sm:$0xff]  ;;  %v5875_v39 = vpack.c.bf16 %v4528_v17, %v4527_v37 }
 0x490   :  { %v4059_v34 = vpop.f32.mrb[56].mxu0  ;;  %v4197_v46 = vpop.f32.mrb[64].mxu1 }
 0x491   :  { %v4244_v6 = vadd.f32 %v8409_v15, %v4233_v35  ;;  %v4228_v33 = vmax.f32 %v4059_v34, %v4197_v46  ;;  %v4061_v19 = vpop.f32.mrb[57].mxu0  ;;  %v4199_v11 = vpop.f32.mrb[65].mxu1  ;;  %v4439_v46 = vld [vmem:[#allocation7 + $0x170] sm:$0xff] }
 0x492   :  { %5858 = vmatpush3.bf16.msra.mxu1 %v5857_v1  ;;  %v5845_v1 = vpack.c.bf16 %v4436_v3, %v4435_v18 }
 0x493   :  { %v4248_v12 = vmax.f32 %v4244_v6, 0.0  ;;  %5859 = vmatprep.subr.bf16.mxu1 %v6580_v58  ;;  %v4440_v6 = vld [vmem:[#allocation7 + $0x178] sm:$0xff] }
 0x494   :  { %v4064_v54 = vpop.f32.mrb[58].mxu0  ;;  %v4202_v51 = vpop.f32.mrb[66].mxu1 }
 0x495   :  { %v4229_v62 = vmax.f32 %v4064_v54, %v4202_v51  ;;  %v4066_v61 = vpop.f32.mrb[59].mxu0  ;;  %v4204_v59 = vpop.f32.mrb[67].mxu1  ;;  %5199 = vmatmul.mubr.f32.vlgmr.msra.gmra.mrb[64].mxu0 %v4248_v12  ;;  %v4615_v51 = vld [vmem:[#allocation9 + $0x30] sm:$0xff] }
 0x496   :  { %5831 = vmatpush3.bf16.msra.mxu0 %v5830_v26  ;;  %5861 = vmatpush3.bf16.msra.mxu1 %v5860_v2  ;;  %v4609_v26 = vld [vmem:[#allocation9] sm:$0xff]  ;;  %v4610_v2 = vld [vmem:[#allocation9 + $0x8] sm:$0xff] }
 0x497   :  { %v8417_v25 = vmax.f32 %v4228_v33, %v4229_v62  ;;  %5832 = vmatprep.subr.bf16.mxu0 %v6580_v58  ;;  %5862 = vmatprep.subr.bf16.mxu1 %v6580_v58  ;;  %v5851_v33 = vpack.c.bf16 %v4440_v6, %v4439_v46  ;;  %v5878_v12 = vpack.c.bf16 %v4610_v2, %v4609_v26  ;;  %v4616_v62 = vld [vmem:[#allocation9 + $0x38] sm:$0xff]  ;;  %v4618_v59 = vld [vmem:[#allocation9 + $0x48] sm:$0xff] }
 0x498   :  { %v4069_v43 = vpop.f32.mrb[60].mxu0  ;;  %v4207_v60 = vpop.f32.mrb[68].mxu1  ;;  %5268 = vmatprep.mubr.msk.f32.mxu0 %vm6581_vm2, %v6579_v0  ;;  %v5887_v61 = vpack.c.bf16 %v4616_v62, %v4615_v51 }
 0x499   :  { %v4230_v47 = vmax.f32 %v4069_v43, %v4207_v60  ;;  %v4071_v57 = vpop.f32.mrb[61].mxu0  ;;  %v4209_v50 = vpop.f32.mrb[69].mxu1  ;;  %v4245_v19 = vadd.f32 %v8409_v15, %v8417_v25  ;;  %v4623_v43 = vld [vmem:[#allocation9 + $0x70] sm:$0xff]  ;;  %v4624_v60 = vld [vmem:[#allocation9 + $0x78] sm:$0xff] }
 0x49a   :  { %5834 = vmatpush3.bf16.msra.mxu0 %v5833_v9  ;;  %5864 = vmatpush3.bf16.msra.mxu1 %v5863_v24  ;;  %v4619_v24 = vld [vmem:[#allocation9 + $0x50] sm:$0xff] }
 0x49b   :  { %5835 = vmatprep.subr.bf16.mxu0 %v6580_v58  ;;  %5865 = vmatprep.subr.bf16.mxu1 %v6580_v58  ;;  %v4249_v11 = vmax.f32 %v4245_v19, 0.0  ;;  %v5893_v25 = vpack.c.bf16 %v4620_v41, %v4619_v24 }
 0x49c   :  { %v4074_v31 = vpop.f32.mrb[62].mxu0  ;;  %v4212_v55 = vpop.f32.mrb[70].mxu1 }
 0x49d   :  { %v4231_v7 = vmax.f32 %v4074_v31, %v4212_v55  ;;  %v4076_v53 = vpop.f32.mrb[63].mxu0  ;;  %v4214_v63 = vpop.f32.mrb[71].mxu1 }
 0x49e   :  { %5837 = vmatpush3.bf16.msra.mxu0 %v5836_v52  ;;  %5867 = vmatpush3.bf16.msra.mxu1 %v5866_v36 }
 0x49f   :  { %v4235_v27 = vmax.f32 %v4230_v47, %v4231_v7  ;;  %5838 = vmatprep.subr.bf16.mxu0 %v6580_v58  ;;  %5868 = vmatprep.subr.bf16.mxu1 %v6580_v58  ;;  %v5899_v47 = vpack.c.bf16 %v4624_v60, %v4623_v43  ;;  %v5079_v7 = vld [vmem:[%s8467_s8] ss:$0 sm:$0xff] }
 0x4a1   :  { %v4246_v35 = vadd.f32 %v8409_v15, %v4235_v27  ;;  %v4613_v15 = vld [vmem:[#allocation9 + $0x20] sm:$0xff] }
 0x4a2   :  { %5840 = vmatpush3.bf16.msra.mxu0 %v5839_v8  ;;  %5870 = vmatpush3.bf16.msra.mxu1 %v5869_v29  ;;  %v5884_v54 = vpack.c.bf16 %v4614_v44, %v4613_v15  ;;  %v4703_v8 = vand.u32 127, %v2784_v38  ;;  %v5080_v29 = vld [vmem:[%s8469_s10] ss:$0 sm:$0xff] }
 0x4a3   :  { %5841 = vmatprep.subr.bf16.mxu0 %v6580_v58  ;;  %5871 = vmatprep.subr.bf16.mxu1 %v6580_v58  ;;  %v4250_v34 = vmax.f32 %v4246_v35, 0.0 }
 0x4a4   :  { %vm4704_vm3 = vcmp.lt.s32.totalorder %v4703_v8, 10 }
 0x4a6   :  { %5843 = vmatpush3.bf16.msra.mxu0 %v5842_v32  ;;  %5873 = vmatpush3.bf16.msra.mxu1 %v5872_v23 }
 0x4a7   :  { %5844 = vmatprep.subr.bf16.mxu0 %v6580_v58  ;;  %5874 = vmatprep.subr.bf16.mxu1 %v6580_v58 }
 0x4aa   :  { %5846 = vmatpush3.bf16.msra.mxu0 %v5845_v1  ;;  %5876 = vmatpush3.bf16.msra.mxu1 %v5875_v39 }
 0x4ab   :  { %5847 = vmatprep.subr.bf16.mxu0 %v6580_v58 }
 0x4ad   :  { %5304 = vmatmul.mubr.f32.vlgmr.msra.gmra.mrb[74].mxu1 %v4250_v34 }
 0x4ae   :  { %5849 = vmatpush3.bf16.msra.mxu0 %v5848_v21 }
 0x4af   :  { %5850 = vmatprep.subr.bf16.mxu0 %v6580_v58 }
 0x4b2   :  { %5852 = vmatpush3.bf16.msra.mxu0 %v5851_v33 }
 0x4b3   :  { %5877 = vmatprep.subr.bf16.mxu0 %v6580_v58 }
 0x4b5   :  { %5269 = vmatmul.mubr.f32.vlgmr.msra.gmra.mrb[66].mxu0 %v4249_v11 }
 0x4b6   :  { %5338 = vmatprep.mubr.msk.f32.mxu0 %vm6581_vm2, %v6579_v0  ;;  %5879 = vmatpush3.bf16.msra.mxu0 %v5878_v12  ;;  %v4617_v0 = vld [vmem:[#allocation9 + $0x40] sm:$0xff] }
 0x4b7   :  { %5880 = vmatprep.subr.bf16.mxu0 %v6580_v58  ;;  %v5890_v9 = vpack.c.bf16 %v4618_v59, %v4617_v0 }
 0x4ba   :  { %5882 = vmatpush3.bf16.msra.mxu0 %v5881_v48 }
 0x4bb   :  { %5883 = vmatprep.subr.bf16.mxu0 %v6580_v58 }
 0x4be   :  { %5885 = vmatpush3.bf16.msra.mxu0 %v5884_v54 }
 0x4bf   :  { %5886 = vmatprep.subr.bf16.mxu0 %v6580_v58 }
 0x4c2   :  { %5888 = vmatpush3.bf16.msra.mxu0 %v5887_v61 }
 0x4c3   :  { %5889 = vmatprep.subr.bf16.mxu0 %v6580_v58 }
 0x4c6   :  { %5891 = vmatpush3.bf16.msra.mxu0 %v5890_v9 }
 0x4c7   :  { %5892 = vmatprep.subr.bf16.mxu0 %v6580_v58 }
 0x4ca   :  { %5894 = vmatpush3.bf16.msra.mxu0 %v5893_v25 }
 0x4cb   :  { %5895 = vmatprep.subr.bf16.mxu0 %v6580_v58 }
 0x4ce   :  { %5897 = vmatpush3.bf16.msra.mxu0 %v5896_v16 }
 0x4cf   :  { %5898 = vmatprep.subr.bf16.mxu0 %v6580_v58 }
 0x4d2   :  { %5900 = vmatpush3.bf16.msra.mxu0 %v5899_v47 }
 0x560   :  { %v4420_v57 = vpop.f32.mrb[72].mxu1 }
 0x561   :  { %v5235_v50 = vpop.f32.mrb[73].mxu1 }
 0x568   :  { %v4350_v52 = vpop.f32.mrb[64].mxu0 }
 0x569   :  { %v4421_v36 = vadd.f32 %v4420_v57, %v4350_v52  ;;  %v5200_v20 = vpop.f32.mrb[65].mxu0 }
 0x580   :  { %v4595_v22 = vpop.f32.mrb[74].mxu1 }
 0x581   :  { %v5305_v45 = vpop.f32.mrb[75].mxu1 }
 0x588   :  { %v4507_v40 = vpop.f32.mrb[66].mxu0 }
 0x589   :  { %v4511_v31 = vadd.f32 %v4507_v40, %v4421_v36  ;;  %v5270_v55 = vpop.f32.mrb[67].mxu0 }
 0x58b   :  { %v4599_v53 = vadd.f32 %v4595_v22, %v4511_v31 }
 0x58d   :  { %v4607_v58 = vadd.f32 %v5079_v7, %v4599_v53 }
 0x58f   :  { %v4608_v63 = vmax.f32 %v4607_v58, 0.0 }
 0x591   :  { %5339 = vmatmul.mubr.f32.vlgmr.msra.gmra.mrb[68].mxu0 %v4608_v63 }
 0x664   :  { %v4698_v28 = vpop.f32.mrb[68].mxu0 }
 0x665   :  { %v4699_v27 = vadd.f32 %v5080_v29, %v4698_v28  ;;  %v5340_v5 = vpop.f32.mrb[69].mxu0 }
 0x667   :  { %v4705_v10 = vsel %vm4704_vm3, %v4699_v27, -1e+30 }
 0x668   :  { %4706 = vmax.xlane.f32.xlu0 %v4705_v10 }
 0x6f5   :  { %v4707_v14 = vpop.xlane.xlu0 %4706 }
 0x6f6   :  { %v4708_v32 = vsub.f32 %v4699_v27, %v4707_v14 }
 0x6f8   :  { %v4709_v23 = vmul.f32 1.442695, %v4708_v32 }
 0x6fa   :  { %6429 = vpow2.f32 %v4709_v23 }
 0x704   :  { %v6430_v18 = vpop.eup %6429 }
 0x705   :  { %v4711_v3 = vsel %vm4704_vm3, %v6430_v18, 0.0 }
 0x706   :  { %4712 = vadd.xlane.f32.xlu0 %v4711_v3 }
 0x793   :  { %v4713_v38 = vpop.xlane.xlu0 %4712 }
 0x794   :  { %6431 = vlog2.f32 %v4713_v38 }
 0x79e   :  { %v6432_v37 = vpop.eup %6431 }
 0x79f   :  { %v4715_v17 = vmul.f32 0.6931472, %v6432_v37 }
 0x7a1   :  { %v4716_v1 = vsub.f32 %v4708_v32, %v4715_v17 }
 0x7a3   :  { %v4717_v39 = vsel %vm4704_vm3, %v4716_v1, 0.0 }
 0x7a4   :  { %4718 = vst [vmem:[%s8470_s11] sm:$0xff] %v4717_v39 }
 0x7a5   :  { %4723 = vsyncpa [#allocation3], 1 }
 0x7a6   :  { %4724 = vsyncpa [#allocation5], 1 }
 0x7a7   :  { %4725 = vsyncpa [#allocation8], 1 }

</bundles_post_ra>
